<compile_context>
chip_gen: v6e
topology: v6e:2x2x1
jax: 0.10.0
libtpu: 0.0.40
codegen_flags: <defaults>
</compile_context>

<pallas_src>
import jax
import jax.numpy as jnp
from jax.experimental import pallas as pl
from jax.experimental.pallas import tpu as pltpu


H1 = 2048    # fc1_1 output width
H2 = 1024    # fc2_1 output width
TK = 1024    # K-chunk of h1 streamed per grid step (2 steps; sweepable)
LANE = 128   # lane width used to pad the fc3 output


def style_mlp_kernel(alpha_ref,          # SMEM (2,): PReLU slopes for layers 1 and 2
                     x_ref,              # (B, D_in)   bf16, resident
                     w1_ref, t1_ref,     # (D_in, TK)  bf16, (1, TK) f32   [bn1 scale folded into w1]
                     w2_ref,             # (TK, H2)    bf16                [bn2 scale folded into w2]
                     t2_ref,             # (1, H2)     f32, resident
                     w3_ref, b3_ref,     # (H2, Cp)    bf16, (1, Cp) f32, resident (Cp = lane-padded classes)
                     o_ref,              # (B, Cp)     f32
                     acc_ref):           # VMEM scratch (B, H2) f32 -- fc2 accumulator
    k = pl.program_id(0)

    @pl.when(k == 0)
    def _():
        acc_ref[...] = jnp.zeros_like(acc_ref)

    # ---- fc1_1 + bn1_1 (scale folded into w1, bias+shift in t1) + PReLU, this K-chunk ----
    h1 = jnp.dot(x_ref[...], w1_ref[...], preferred_element_type=jnp.float32)
    h1 = h1 + t1_ref[...]
    a1 = alpha_ref[0]
    h1 = jnp.where(h1 > 0, h1, a1 * h1)
    # drop1_1: identity at inference

    # ---- partial fc2_1 over this K-chunk (bf16 MXU, f32 accumulate) ----
    acc_ref[...] += jnp.dot(h1.astype(w2_ref.dtype), w2_ref[...],
                            preferred_element_type=jnp.float32)

    @pl.when(k == pl.num_programs(0) - 1)
    def _():
        # ---- bn2_1 shift + PReLU + fc3_1 (lane-dense padded output) ----
        h2 = acc_ref[...] + t2_ref[...]
        a2 = alpha_ref[1]
        h2 = jnp.where(h2 > 0, h2, a2 * h2)
        # drop2_1: identity at inference
        out = jnp.dot(h2.astype(w3_ref.dtype), w3_ref[...],
                      preferred_element_type=jnp.float32) + b3_ref[...]
        o_ref[...] = out.astype(o_ref.dtype)


def style_model_forward(x, params):
    B, D_in = x.shape
    Cp = params["w3"].shape[1]          # lane-padded class count (multiple of 128)
    C = params["num_classes"]           # true class count
    assert H1 % TK == 0
    kt = H1 // TK

    xb = x.astype(jnp.bfloat16)

    grid_spec = pltpu.PrefetchScalarGridSpec(
        num_scalar_prefetch=0,
        grid=(kt,),
        in_specs=[
            pl.BlockSpec(memory_space=pltpu.SMEM),              # alpha (whole, SMEM)
            pl.BlockSpec((B, D_in), lambda k: (0, 0)),          # x      : resident
            pl.BlockSpec((D_in, TK), lambda k: (0, k)),         # w1 col-chunk
            pl.BlockSpec((1, TK),    lambda k: (0, k)),         # t1 chunk
            pl.BlockSpec((TK, H2),   lambda k: (k, 0)),         # w2 row-chunk (dominant DMA, pipelined)
            pl.BlockSpec((1, H2),    lambda k: (0, 0)),         # t2     : resident
            pl.BlockSpec((H2, Cp),   lambda k: (0, 0)),         # w3     : resident, lane-padded
            pl.BlockSpec((1, Cp),    lambda k: (0, 0)),         # b3     : resident, lane-padded
        ],
        out_specs=pl.BlockSpec((B, Cp), lambda k: (0, 0)),
        scratch_shapes=[pltpu.VMEM((B, H2), jnp.float32)],
    )

    out_p = pl.pallas_call(
        style_mlp_kernel,
        out_shape=jax.ShapeDtypeStruct((B, Cp), jnp.float32),
        grid_spec=grid_spec,
        compiler_params=pltpu.CompilerParams(
            dimension_semantics=("arbitrary",),          # K is a reduction/accumulation axis
            vmem_limit_bytes=32 << 20,                   # v7x-safe (<= 64 MiB physical); footprint ~5 MiB
        ),
    )(params["alpha"], xb,
      params["w1"], params["t1"],
      params["w2"], params["t2"],
      params["w3"], params["b3"])

    return out_p[:, :C]


def make_params(key, inputsize, num_classes, eps=1e-5):
    """Deterministic synthetic parameters (PyTorch shapes: Linear(in,out), BatchNorm1d(out)),
    with eval-mode BN folded into the preceding Linear, weights quantized to bf16, and the
    fc3 weight/bias zero-padded to a lane-dense (multiple-of-128) class dimension."""
    ks = jax.random.split(key, 16)

    def linear(kw, kb, fan_in, fan_out):
        bound = 1.0 / jnp.sqrt(fan_in)
        w = jax.random.uniform(kw, (fan_in, fan_out), jnp.float32, -bound, bound)
        b = jax.random.uniform(kb, (fan_out,), jnp.float32, -bound, bound)
        return w, b

    def bn(kg, kb, km, kv, n):
        gamma = 1.0 + 0.1 * jax.random.normal(kg, (n,), jnp.float32)
        beta = 0.1 * jax.random.normal(kb, (n,), jnp.float32)
        mean = 0.1 * jax.random.normal(km, (n,), jnp.float32)
        var = jnp.abs(jax.random.normal(kv, (n,), jnp.float32)) + 0.5
        return gamma, beta, mean, var

    w1, b1 = linear(ks[0], ks[1], inputsize, H1)
    g1, be1, m1, v1 = bn(ks[2], ks[3], ks[4], ks[5], H1)
    w2, b2 = linear(ks[6], ks[7], H1, H2)
    g2, be2, m2, v2 = bn(ks[8], ks[9], ks[10], ks[11], H2)
    w3, b3 = linear(ks[12], ks[13], H2, num_classes)

    # Fold eval-mode BatchNorm + Linear bias:
    #   bn(xW + b) = x (W*s) + (b*s + beta - mean*s),   s = gamma / sqrt(var + eps)
    s1 = g1 / jnp.sqrt(v1 + eps)
    s2 = g2 / jnp.sqrt(v2 + eps)
    w1f = (w1 * s1[None, :]).astype(jnp.bfloat16)
    t1 = (b1 * s1 + be1 - m1 * s1).reshape(1, H1)
    w2f = (w2 * s2[None, :]).astype(jnp.bfloat16)
    t2 = (b2 * s2 + be2 - m2 * s2).reshape(1, H2)

    # Pad fc3 to a lane-dense output width (zero columns are sliced off in the wrapper).
    Cp = ((num_classes + LANE - 1) // LANE) * LANE
    w3p = jnp.zeros((H2, Cp), jnp.float32).at[:, :num_classes].set(w3).astype(jnp.bfloat16)
    b3p = jnp.zeros((Cp,), jnp.float32).at[:num_classes].set(b3).reshape(1, Cp)
    # TODO(synk): on v5e/v6e w2 could go further to int8 (native i8 MXU); bf16 kept for v7x portability.

    # nn.PReLU() default single slope = 0.25 for each of the two PReLU layers
    alpha = jnp.array([0.25, 0.25], jnp.float32)

    return {
        "alpha": alpha,
        "w1": w1f, "t1": t1,
        "w2": w2f, "t2": t2,
        "w3": w3p, "b3": b3p,
        "num_classes": num_classes,
    }


def reference_forward(x, p):
    """Pure-JAX reference using the SAME folded/bf16-quantized/padded parameters."""
    xb = x.astype(jnp.bfloat16)
    h1 = jnp.dot(xb, p["w1"], preferred_element_type=jnp.float32) + p["t1"]
    h1 = jnp.where(h1 > 0, h1, p["alpha"][0] * h1)
    h2 = jnp.dot(h1.astype(jnp.bfloat16), p["w2"], preferred_element_type=jnp.float32) + p["t2"]
    h2 = jnp.where(h2 > 0, h2, p["alpha"][1] * h2)
    out = jnp.dot(h2.astype(jnp.bfloat16), p["w3"], preferred_element_type=jnp.float32) + p["b3"]
    return out[:, :p["num_classes"]]


if __name__ == "__main__":
    B = 8            # batch (raise to 128+ in production to amortize the weight DMA)
    INPUTSIZE = 32   # StyleModel inputsize
    NUM_CLASSES = 8
    # keep_probability only affects Dropout, which is identity at inference.

    key = jax.random.PRNGKey(0)
    kx, kp = jax.random.split(key)
    x = jax.random.normal(kx, (B, INPUTSIZE), jnp.float32)
    params = make_params(kp, INPUTSIZE, NUM_CLASSES)

    out = style_model_forward(x, params)
    out = jax.block_until_ready(out)

    ref = reference_forward(x, params)
    assert out.shape == (B, NUM_CLASSES)
    assert jnp.allclose(out, ref, atol=5e-3, rtol=5e-3), float(jnp.max(jnp.abs(out - ref)))

    print("KERNEL_OK")
</pallas_src>

<mosaic_0001>
module attributes {stable_mosaic.version = 11 : i64} {
  func.func @style_mlp_kernel(%arg0: i32, %arg1: memref<2xf32, #tpu.memory_space<smem>>, %arg2: memref<8x32xbf16, #tpu.memory_space<vmem>>, %arg3: memref<32x1024xbf16, #tpu.memory_space<vmem>>, %arg4: memref<1x1024xf32, #tpu.memory_space<vmem>>, %arg5: memref<1024x1024xbf16, #tpu.memory_space<vmem>>, %arg6: memref<1x1024xf32, #tpu.memory_space<vmem>>, %arg7: memref<1024x128xbf16, #tpu.memory_space<vmem>>, %arg8: memref<1x128xf32, #tpu.memory_space<vmem>>, %arg9: memref<8x128xf32, #tpu.memory_space<vmem>>, %arg10: memref<8x1024xf32, #tpu.memory_space<vmem>>) attributes {dimension_semantics = [#tpu.dimension_semantics<arbitrary>], iteration_bounds = array<i64: 2>, scalar_prefetch = 0 : i64, scratch_operands = 1 : i64, tpu.core_type = #tpu.core_type<tc>, window_params = [{transform_indices = @transform_0, window_bounds = array<i64: 2>}, {pipeline_mode = #tpu.pipeline_mode<synchronous>, transform_indices = @transform_1, window_bounds = array<i64: 8, 32>}, {transform_indices = @transform_2, window_bounds = array<i64: 32, 1024>}, {transform_indices = @transform_3, window_bounds = array<i64: 1, 1024>}, {transform_indices = @transform_4, window_bounds = array<i64: 1024, 1024>}, {pipeline_mode = #tpu.pipeline_mode<synchronous>, transform_indices = @transform_5, window_bounds = array<i64: 1, 1024>}, {pipeline_mode = #tpu.pipeline_mode<synchronous>, transform_indices = @transform_6, window_bounds = array<i64: 1024, 128>}, {pipeline_mode = #tpu.pipeline_mode<synchronous>, transform_indices = @transform_7, window_bounds = array<i64: 1, 128>}, {pipeline_mode = #tpu.pipeline_mode<synchronous>, transform_indices = @transform_8, window_bounds = array<i64: 8, 128>}]} {
    %c0_i32 = arith.constant 0 : i32
    %0 = arith.cmpi eq, %arg0, %c0_i32 : i32
    %1 = arith.extui %0 : i1 to i32
    %c0_i32_0 = arith.constant 0 : i32
    %2 = arith.cmpi ne, %1, %c0_i32_0 : i32
    scf.if %2 {
      %cst_16 = arith.constant 0.000000e+00 : f32
      %24 = vector.broadcast %cst_16 : f32 to vector<8x1024xf32>
      %c0_17 = arith.constant 0 : index
      %c0_18 = arith.constant 0 : index
      %25 = vector.load %arg10[%c0_17, %c0_18] : memref<8x1024xf32, #tpu.memory_space<vmem>>, vector<8x1024xf32>
      tpu.vector_store %arg10[%c0_17, %c0_18], %24 {strides = array<i32>} : memref<8x1024xf32, #tpu.memory_space<vmem>>, vector<8x1024xf32>,
    } else {
    }
    %c0 = arith.constant 0 : index
    %c0_1 = arith.constant 0 : index
    %3 = vector.load %arg2[%c0, %c0_1] : memref<8x32xbf16, #tpu.memory_space<vmem>>, vector<8x32xbf16>
    %c0_2 = arith.constant 0 : index
    %c0_3 = arith.constant 0 : index
    %4 = vector.load %arg3[%c0_2, %c0_3] : memref<32x1024xbf16, #tpu.memory_space<vmem>>, vector<32x1024xbf16>
    %cst = arith.constant dense<0.000000e+00> : vector<8x1024xf32>
    %5 = tpu.matmul %3, %4, %cst {dimension_numbers = #tpu.dot_dimension_numbers<[1], [0], [0], [1], [0, 0, 1, 1], [], []>} : vector<8x32xbf16>, vector<32x1024xbf16>, vector<8x1024xf32> -> vector<8x1024xf32>
    %c0_4 = arith.constant 0 : index
    %c0_5 = arith.constant 0 : index
    %6 = vector.load %arg4[%c0_4, %c0_5] : memref<1x1024xf32, #tpu.memory_space<vmem>>, vector<1x1024xf32>
    %7 = vector.broadcast %6 : vector<1x1024xf32> to vector<8x1024xf32>
    %8 = arith.addf %5, %7 : vector<8x1024xf32>
    %c0_6 = arith.constant 0 : index
    %9 = memref.load %arg1[%c0_6] : memref<2xf32, #tpu.memory_space<smem>>
    %cst_7 = arith.constant 0.000000e+00 : f32
    %10 = vector.broadcast %cst_7 : f32 to vector<8x1024xf32>
    %11 = arith.cmpf ogt, %8, %10 : vector<8x1024xf32>
    %12 = vector.broadcast %9 : f32 to vector<8x1024xf32>
    %13 = arith.mulf %12, %8 : vector<8x1024xf32>
    %14 = arith.select %11, %8, %13 : vector<8x1024xi1>, vector<8x1024xf32>
    %c0_8 = arith.constant 0 : index
    %c0_9 = arith.constant 0 : index
    %15 = vector.load %arg10[%c0_8, %c0_9] : memref<8x1024xf32, #tpu.memory_space<vmem>>, vector<8x1024xf32>
    %16 = arith.truncf %14 : vector<8x1024xf32> to vector<8x1024xbf16>
    %c0_10 = arith.constant 0 : index
    %c0_11 = arith.constant 0 : index
    %17 = vector.load %arg5[%c0_10, %c0_11] : memref<1024x1024xbf16, #tpu.memory_space<vmem>>, vector<1024x1024xbf16>
    %cst_12 = arith.constant dense<0.000000e+00> : vector<8x1024xf32>
    %18 = tpu.matmul %16, %17, %cst_12 {dimension_numbers = #tpu.dot_dimension_numbers<[1], [0], [0], [1], [0, 0, 1, 1], [], []>} : vector<8x1024xbf16>, vector<1024x1024xbf16>, vector<8x1024xf32> -> vector<8x1024xf32>
    %19 = arith.addf %15, %18 : vector<8x1024xf32>
    %c0_13 = arith.constant 0 : index
    %c0_14 = arith.constant 0 : index
    %20 = vector.load %arg10[%c0_13, %c0_14] : memref<8x1024xf32, #tpu.memory_space<vmem>>, vector<8x1024xf32>
    tpu.vector_store %arg10[%c0_13, %c0_14], %19 {strides = array<i32>} : memref<8x1024xf32, #tpu.memory_space<vmem>>, vector<8x1024xf32>,
    %c1_i32 = arith.constant 1 : i32
    %21 = arith.cmpi eq, %arg0, %c1_i32 : i32
    %22 = arith.extui %21 : i1 to i32
    %c0_i32_15 = arith.constant 0 : i32
    %23 = arith.cmpi ne, %22, %c0_i32_15 : i32
    scf.if %23 {
      %c0_16 = arith.constant 0 : index
      %c0_17 = arith.constant 0 : index
      %24 = vector.load %arg10[%c0_16, %c0_17] : memref<8x1024xf32, #tpu.memory_space<vmem>>, vector<8x1024xf32>
      %c0_18 = arith.constant 0 : index
      %c0_19 = arith.constant 0 : index
      %25 = vector.load %arg6[%c0_18, %c0_19] : memref<1x1024xf32, #tpu.memory_space<vmem>>, vector<1x1024xf32>
      %26 = vector.broadcast %25 : vector<1x1024xf32> to vector<8x1024xf32>
      %27 = arith.addf %24, %26 : vector<8x1024xf32>
      %c1 = arith.constant 1 : index
      %28 = memref.load %arg1[%c1] : memref<2xf32, #tpu.memory_space<smem>>
      %cst_20 = arith.constant 0.000000e+00 : f32
      %29 = vector.broadcast %cst_20 : f32 to vector<8x1024xf32>
      %30 = arith.cmpf ogt, %27, %29 : vector<8x1024xf32>
      %31 = vector.broadcast %28 : f32 to vector<8x1024xf32>
      %32 = arith.mulf %31, %27 : vector<8x1024xf32>
      %33 = arith.select %30, %27, %32 : vector<8x1024xi1>, vector<8x1024xf32>
      %34 = arith.truncf %33 : vector<8x1024xf32> to vector<8x1024xbf16>
      %c0_21 = arith.constant 0 : index
      %c0_22 = arith.constant 0 : index
      %35 = vector.load %arg7[%c0_21, %c0_22] : memref<1024x128xbf16, #tpu.memory_space<vmem>>, vector<1024x128xbf16>
      %cst_23 = arith.constant dense<0.000000e+00> : vector<8x128xf32>
      %36 = tpu.matmul %34, %35, %cst_23 {dimension_numbers = #tpu.dot_dimension_numbers<[1], [0], [0], [1], [0, 0, 1, 1], [], []>} : vector<8x1024xbf16>, vector<1024x128xbf16>, vector<8x128xf32> -> vector<8x128xf32>
      %c0_24 = arith.constant 0 : index
      %c0_25 = arith.constant 0 : index
      %37 = vector.load %arg8[%c0_24, %c0_25] : memref<1x128xf32, #tpu.memory_space<vmem>>, vector<1x128xf32>
      %38 = vector.broadcast %37 : vector<1x128xf32> to vector<8x128xf32>
      %39 = arith.addf %36, %38 : vector<8x128xf32>
      %c0_26 = arith.constant 0 : index
      %c0_27 = arith.constant 0 : index
      %40 = vector.load %arg9[%c0_26, %c0_27] : memref<8x128xf32, #tpu.memory_space<vmem>>, vector<8x128xf32>
      tpu.vector_store %arg9[%c0_26, %c0_27], %39 {strides = array<i32>} : memref<8x128xf32, #tpu.memory_space<vmem>>, vector<8x128xf32>,
    } else {
    }
    return
  }
  func.func @transform_0(%arg0: i32) -> i32 {
    %c0_i32 = arith.constant 0 : i32
    %c0_i32_0 = arith.constant 0 : i32
    return %c0_i32 : i32
  }
  func.func @transform_1(%arg0: i32) -> (i32, i32) {
    %c0_i32 = arith.constant 0 : i32
    %c0_i32_0 = arith.constant 0 : i32
    %c0_i32_1 = arith.constant 0 : i32
    return %c0_i32, %c0_i32_0 : i32, i32
  }
  func.func @transform_2(%arg0: i32) -> (i32, i32) {
    %c0_i32 = arith.constant 0 : i32
    %c0_i32_0 = arith.constant 0 : i32
    return %c0_i32, %arg0 : i32, i32
  }
  func.func @transform_3(%arg0: i32) -> (i32, i32) {
    %c0_i32 = arith.constant 0 : i32
    %c0_i32_0 = arith.constant 0 : i32
    return %c0_i32, %arg0 : i32, i32
  }
  func.func @transform_4(%arg0: i32) -> (i32, i32) {
    %c0_i32 = arith.constant 0 : i32
    %c0_i32_0 = arith.constant 0 : i32
    return %arg0, %c0_i32 : i32, i32
  }
  func.func @transform_5(%arg0: i32) -> (i32, i32) {
    %c0_i32 = arith.constant 0 : i32
    %c0_i32_0 = arith.constant 0 : i32
    %c0_i32_1 = arith.constant 0 : i32
    return %c0_i32, %c0_i32_0 : i32, i32
  }
  func.func @transform_6(%arg0: i32) -> (i32, i32) {
    %c0_i32 = arith.constant 0 : i32
    %c0_i32_0 = arith.constant 0 : i32
    %c0_i32_1 = arith.constant 0 : i32
    return %c0_i32, %c0_i32_0 : i32, i32
  }
  func.func @transform_7(%arg0: i32) -> (i32, i32) {
    %c0_i32 = arith.constant 0 : i32
    %c0_i32_0 = arith.constant 0 : i32
    %c0_i32_1 = arith.constant 0 : i32
    return %c0_i32, %c0_i32_0 : i32, i32
  }
  func.func @transform_8(%arg0: i32) -> (i32, i32) {
    %c0_i32 = arith.constant 0 : i32
    %c0_i32_0 = arith.constant 0 : i32
    %c0_i32_1 = arith.constant 0 : i32
    return %c0_i32, %c0_i32_0 : i32, i32
  }
}

</mosaic_0001>

<bundles_post_ra>
// kernel: tpu_custom_call.1
= control target key start
LH: loop header
LB: loop body
LE: loop exit
PB: predicated region body
PF: predicated region fallthrough
CT: control target
= control target key end

     0   :  { %s7709_s0 = inlined_call_operand.hbm [shape: f32[2], index: 0, kind: input, shape index: {}]   ;;  %s7710_s1 = inlined_call_operand.hbm [shape: bf16[8,32], index: 1, kind: input, shape index: {}]   ;;  %s7711_s2 = inlined_call_operand.hbm [shape: bf16[32,2048], index: 2, kind: input, shape index: {}]   ;;  %s7712_s3 = inlined_call_operand.hbm [shape: f32[1,2048], index: 3, kind: input, shape index: {}]   ;;  %s7713_s4 = inlined_call_operand.hbm [shape: bf16[2048,1024], index: 4, kind: input, shape index: {}]   ;;  %s7714_s5 = inlined_call_operand.hbm [shape: f32[1,1024], index: 5, kind: input, shape index: {}]   ;;  %s7715_s6 = inlined_call_operand.hbm [shape: bf16[1024,128], index: 6, kind: input, shape index: {}]   ;;  %s7716_s7 = inlined_call_operand.hbm [shape: f32[1,128], index: 7, kind: input, shape index: {}]   ;;  %s7717_s8 = inlined_call_operand.hbm [shape: f32[8,128], index: 8, kind: output, shape index: {}]  }
   0x1   :  { %7727 = sst [smem:[#allocation26_spill]] %s7711_s2 }
   0x2   :  { %7728 = sst [smem:[#allocation27_spill]] %s7714_s5 }
   0x3   :  { %7729 = sst [smem:[#allocation28_spill]] %s7715_s6 }
   0x4   :  { %13 = vsyncpa [#allocation6], 0 }
   0x5   :  { %14 = vsyncpa [#allocation4], 0 }
   0x6   :  { %15 = vsyncpa [#allocation9], 0 }
   0x7   :  { %17 = vsyncpa [#allocation9 + $0x1], 0 }
   0x8   :  { %18 = vsyncpa [#allocation12], 0 }
   0x9   :  { %20 = vsyncpa [#allocation12 + $0x1], 0 }
   0xa   :  { %21 = vsyncpa [#allocation15], 0 }
   0xb   :  { %22 = vsyncpa [#allocation5], 0  ;;  %s6734_s27 = smov 0   ;;  %s6736_s28 = smov 0  }
   0xc   :  { %s6738_s29 = smov 0   ;;  %s6740_s30 = smov 0  }
   0xd LB: > { %s6753_s9 = sadd.s32 4294967295, %s6671_s30   ;;  %p90_p0 = scmp.ne.s32.totalorder %s6663_s28, %s6659_s27  ;;  %s6671_s30 = sphi %s6740_s30, %s7760_s30   ;;  %s6667_s29 = sphi %s6738_s29, %s7759_s29   ;;  %s6663_s28 = sphi %s6736_s28, %s7758_s28   ;;  %s6659_s27 = sphi %s6734_s27, %s7757_s27  }
   0xe   : > { %p7718_p1 = scmp.eq.s32.totalorder %s6753_s9, 0  ;;  %p5490_p2 = scmp.ge.s32.totalorder %s6671_s30, 1 }
   0xf   : > { %p237_p3 = scmp.lt.s32.totalorder %s6671_s30, 3  ;;  %s6673_s12 = smov [#allocation13]  }
  0x10   : > { %p6762_p5 = por %p7718_p1, %p90_p0  ;;  %s270_s13 = sshll.u32 %s6673_s12, 4  ;;  %s271_s13 = int_to_ptr.vmem [resolvable:$true] %s270_s13 }
  0x11   : > { %p6766_p6 = pnand %p5490_p2, %p237_p3  ;;  %s6674_s14 = smov [#allocation14]  }
  0x12   : > { %s7730_s10 = scalar_select %p6762_p5, 1, 0 }
  0x13   : > { %s7731_s11 = scalar_select %p6766_p6, 1, 0 }
  0x14   : > { %p6242_p7 = pneg %p6766_p6  ;;  %s280_s15 = sshll.u32 %s6674_s14, 4  ;;  %s281_s15 = int_to_ptr.vmem [resolvable:$true] %s280_s15 }
  0x15   : > { %s6401_s17 = scalar_lea.vmem %s271_s13, 128  ;;  %p6409_p13 = scmp.lt.s32.totalorder %s271_s13, %s271_s13 }
  0x16   : > { %p6774_p8 = pnand %p6242_p7, %p7718_p1  ;;  %p6402_p10 = scmp.ne.s32.totalorder %s271_s13, %s6401_s17 }
  0x17   : > { %p6410_p0 = scmp.lt.s32.totalorder %s6401_s17, %s6401_s17 }
  0x18   : > { %s7732_s16 = scalar_select %p6774_p8, 1, 0 }
  0x19   : > { %p7722_p9 = pneg %p6774_p8  ;;  %p6411_p2 = por %p6410_p0, %p6409_p13 }
  0x1b   : > { %p6404_p11 = pnand %p6402_p10, %p7722_p9 }
  0x1d   : > { %p6405_p12 = pneg %p6404_p11 }
  0x1f   : > { %p6412_p3 = pnand %p6411_p2, %p6405_p12 }
  0x21   : > { %6415 = shalt.err (!%p6412_p3)
}
  0x22   : > { %s7733_s5 = sld [smem:[#allocation27_spill]]  ;;  %s6427_s20 = scalar_lea.vmem %s281_s15, 8192 }
  0x23   : > { %p6428_p7 = scmp.ne.s32.totalorder %s281_s15, %s6427_s20  ;;  %p6435_p10 = scmp.lt.s32.totalorder %s281_s15, %s281_s15 }
  0x24   : > { %p6436_p11 = scmp.lt.s32.totalorder %s6427_s20, %s6427_s20 }
  0x25   : > { %p6430_p4 = pnand %p6428_p7, %p7722_p9 }
  0x26   : > { %p6437_p5 = por %p6436_p11, %p6435_p10 }
  0x27   : > { %p6431_p1 = pneg %p6430_p4 }
  0x28   : > { %6251 = dma.hbm_to_vmem [thread:$0]  (!%p6774_p8), %s7733_s5, 128, %s271_s13, [#allocation12]  }
  0x29   : > { %p6438_p6 = pnand %p6437_p5, %p6431_p1 }
  0x2b   : > { %6441 = shalt.err (!%p6438_p6)
}
  0x2c   : > { %s6675_s21 = smov 64   ;;  %s6676_s22 = smov 4  }
  0x2d   : > { %s7734_s6 = sld [smem:[#allocation28_spill]]  ;;  %s6797_s25 = sadd.s32 1, %s6671_s30  }
  0x2e   : > { %s77_s26 = sadd.s32 1, %s6667_s29  ;;  %s74_s27 = ssub.s32 %s6671_s30, %s6797_s25 }
  0x2f   : > { %p84_p1 = scmp.ne.s32.totalorder %s6667_s29, %s6663_s28  ;;  %p75_p4 = scmp.eq.s32.totalorder %s74_s27, 0 }
  0x30   : > { %p85_p5 = scmp.eq.s32.totalorder %s6671_s30, 0  ;;  %p6273_p6 = scmp.lt.s32.totalorder %s6671_s30, 2 }
  0x31   : > { %s7721_s12 = sand.u32 1, %s6671_s30   ;;  %s6811_s14 = sand.u32 1, %s6667_s29  }
  0x32   : > { %s6808_s13 = scalar_select %p75_p4, %s6667_s29, %s77_s26  }
  0x33   : > { %6254 = dma.hbm_to_vmem [thread:$0]  (!%p6774_p8), %s7734_s6, 8192, %s281_s15, [#allocation15], %s6675_s21, %s6675_s21, %s6676_s22  }
  0x34   : > { %7735 = sst [smem:[#allocation25_spill]] %s6808_s13  ;;  %p86_p12 = por %p85_p5, %p84_p1 }
  0x35   : > { %s6120_s17 = sshll.u32 %s6671_s30, 9  ;;  %s5497_s18 = sshll.u32 %s6811_s14, 7 }
  0x36   : > { %s7736_s2 = sld [smem:[#allocation26_spill]]  ;;  %p6820_p13 = pnand %p6273_p6, %p86_p12 }
  0x37   : > { %s309_s22 = scalar_lea.vmem [#allocation8], %s5497_s18  ;;  %s6828_s24 = scalar_lea.sflag [#allocation9], %s7721_s12 }
  0x38   : > { %s316_s23 = sshll.u32 %s309_s22, 4  ;;  %p6834_p2 = pneg %p6820_p13  ;;  %s6824_s23 = int_to_ptr.vmem [resolvable:$true] %s316_s23 }
  0x3c   : > { %s6818_s20 = scalar_lea.hbm %s7736_s2, %s6120_s17  ;;  %s6447_s18 = scalar_lea.hbm %s7736_s2, 4096 }
  0x3d   : > { %s6442_s26 = scalar_lea.hbm %s6818_s20, 2048  ;;  %p6448_p10 = scmp.lt.s32.totalorder %s6818_s20, %s7736_s2 }
  0x3e   : > { %p6443_p0 = scmp.ne.s32.totalorder %s6818_s20, %s6442_s26  ;;  %p6449_p11 = scmp.lt.s32.totalorder %s6447_s18, %s6442_s26 }
  0x40   : > { %p6445_p3 = pnand %p6834_p2, %p6443_p0  ;;  %p6450_p1 = por %p6449_p11, %p6448_p10 }
  0x42   : > { %p6446_p7 = pneg %p6445_p3 }
  0x44   : > { %p6451_p4 = pnand %p6450_p1, %p6446_p7 }
  0x46   : > { %6454 = shalt.err (!%p6451_p4)
}
  0x47   : > { %s6455_s12 = scalar_lea.vmem %s6824_s23, 2048  ;;  %s6677_s5 = smov [#allocation8]  }
  0x48   : > { %p6456_p5 = scmp.ne.s32.totalorder %s6824_s23, %s6455_s12  ;;  %s6460_s17 = sshll.u32 %s6677_s5, 4  ;;  %s6461_s17 = int_to_ptr.vmem [resolvable:$false] %s6460_s17 }
  0x49   : > { %s6462_s15 = scalar_lea.vmem %s6461_s17, 4096  ;;  %p6463_p0 = scmp.lt.s32.totalorder %s6824_s23, %s6461_s17 }
  0x4a   : > { %p6458_p6 = pnand %p6456_p5, %p6834_p2  ;;  %p6464_p3 = scmp.lt.s32.totalorder %s6462_s15, %s6455_s12 }
  0x4c   : > { %p6459_p12 = pneg %p6458_p6  ;;  %p6465_p9 = por %p6464_p3, %p6463_p0 }
  0x4e   : > { %p6466_p8 = pnand %p6465_p9, %p6459_p12 }
  0x50   : > { %6469 = shalt.err (!%p6466_p8)
}
  0x51   : > { %s6678_s26 = smov 1024   ;;  %s7725_s18 = smov 512  }
  0x52   : > { %s7726_s19 = smov 32   ;;  %s6681_s5 = smov [#allocation3]  }
  0x53   : > { %6261 = dma.hbm_to_vmem [thread:$0]  (!%p6820_p13), %s6818_s20, 2048, %s6824_s23, %s6828_s24, %s6678_s26, %s7725_s18, %s7726_s19  }
  0x54   : > { %p7739_p7 = scmp.ne.s32.totalorder %s7732_s16, 0  ;;  %s6682_s17 = smov [#allocation7]  }
  0x55   : > { %s259_s15 = sshll.u32 %s6682_s17, 4  ;;  %s6683_s2 = smov [#allocation16]   ;;  %s260_s15 = int_to_ptr.vmem [resolvable:$true] %s259_s15 }
  0x56   : > { %6245 = dma.hbm_to_smem (!%p7739_p7), %s7709_s0, 16, %s6681_s5, [#allocation6]  }
  0x57   : > { %s294_s6 = sshll.u32 %s6683_s2, 4  ;;  %s6492_s13 = scalar_lea.vmem %s260_s15, 64  ;;  %s295_s6 = int_to_ptr.vmem [resolvable:$true] %s294_s6 }
  0x58   : > { %p6493_p8 = scmp.ne.s32.totalorder %s260_s15, %s6492_s13  ;;  %p7740_p9 = pneg %p7739_p7 }
  0x59   : > { %p6500_p1 = scmp.lt.s32.totalorder %s260_s15, %s260_s15  ;;  %p6501_p4 = scmp.lt.s32.totalorder %s6492_s13, %s6492_s13 }
  0x5a   : > { %p6495_p10 = pnand %p6493_p8, %p7740_p9 }
  0x5b   : > { %p6502_p5 = por %p6501_p4, %p6500_p1 }
  0x5c   : > { %p6496_p11 = pneg %p6495_p10 }
  0x5e   : > { %p6503_p6 = pnand %p6502_p5, %p6496_p11 }
  0x60   : > { %6506 = shalt.err (!%p6503_p6)
}
  0x61   : > { %6248 = dma.hbm_to_vmem [thread:$0]  (!%p7739_p7), %s7710_s1, 64, %s260_s15, [#allocation4]  }
  0x62   : > { %s5500_s2 = sshll.u32 %s6811_s14, 3  ;;  %s6518_s26 = scalar_lea.vmem %s295_s6, 16 }
  0x63   : > { %p6519_p12 = scmp.ne.s32.totalorder %s295_s6, %s6518_s26  ;;  %p7741_p0 = pmov %p7740_p9 }
  0x64   : > { %s6525_s13 = scalar_lea.vmem %s295_s6, 32  ;;  %p6526_p9 = scmp.lt.s32.totalorder %s295_s6, %s295_s6 }
  0x65   : > { %p6521_p3 = pnand %p6519_p12, %p7741_p0  ;;  %p6527_p10 = scmp.lt.s32.totalorder %s6525_s13, %s6518_s26 }
  0x67   : > { %p6522_p8 = pneg %p6521_p3  ;;  %p6528_p11 = por %p6527_p10, %p6526_p9 }
  0x69   : > { %p6529_p1 = pnand %p6528_p11, %p6522_p8 }
  0x6b   : > { %6532 = shalt.err (!%p6529_p1)
}
  0x6c   : > { %6257 = dma.hbm_to_vmem [thread:$0]  (!%p7739_p7), %s7716_s7, 16, %s295_s6, [#allocation15]  }
  0x6d   : > { %s6121_s12 = sshll.u32 %s6671_s30, 7  ;;  %s330_s23 = scalar_lea.vmem [#allocation10], %s5500_s2 }
  0x6e   : > { %s336_s20 = scalar_lea.hbm %s7712_s3, %s6121_s12  ;;  %s338_s18 = sshll.u32 %s330_s23, 4  ;;  %s339_s18 = int_to_ptr.vmem [resolvable:$true] %s338_s18 }
  0x6f   : > { %s6533_s26 = scalar_lea.hbm %s336_s20, 128  ;;  %s6538_s5 = scalar_lea.hbm %s7712_s3, 256 }
  0x70   : > { %p6534_p4 = scmp.ne.s32.totalorder %s336_s20, %s6533_s26  ;;  %p6539_p7 = scmp.lt.s32.totalorder %s336_s20, %s7712_s3 }
  0x71   : > { %p6540_p12 = scmp.lt.s32.totalorder %s6538_s5, %s6533_s26 }
  0x72   : > { %p6536_p5 = pnand %p6534_p4, %p6834_p2 }
  0x73   : > { %p6541_p0 = por %p6540_p12, %p6539_p7 }
  0x74   : > { %p6537_p6 = pneg %p6536_p5 }
  0x76   : > { %p6542_p3 = pnand %p6541_p0, %p6537_p6 }
  0x78   : > { %6545 = shalt.err (!%p6542_p3)
}
  0x79   : > { %s6546_s6 = scalar_lea.vmem %s339_s18, 128  ;;  %s6684_s2 = smov [#allocation10]  }
  0x7a   : > { %p6547_p8 = scmp.ne.s32.totalorder %s339_s18, %s6546_s6  ;;  %s6551_s12 = sshll.u32 %s6684_s2, 4  ;;  %s6552_s12 = int_to_ptr.vmem [resolvable:$false] %s6551_s12 }
  0x7b   : > { %s6553_s17 = scalar_lea.vmem %s6552_s12, 256  ;;  %p6554_p11 = scmp.lt.s32.totalorder %s339_s18, %s6552_s12 }
  0x7c   : > { %p6549_p9 = pnand %p6547_p8, %p6834_p2  ;;  %p6555_p1 = scmp.lt.s32.totalorder %s6553_s17, %s6546_s6 }
  0x7e   : > { %p6550_p10 = pneg %p6549_p9  ;;  %p6556_p4 = por %p6555_p1, %p6554_p11 }
  0x80   : > { %p6557_p5 = pnand %p6556_p4, %p6550_p10 }
  0x82   : > { %6560 = shalt.err (!%p6557_p5)
}
  0x83   : > { %6264 = dma.hbm_to_vmem [thread:$0]  (!%p6820_p13), %s336_s20, 128, %s339_s18, %s6828_s24  }
  0x84   : > { %s5503_s19 = sshll.u32 %s6811_s14, 12  ;;  %s6123_s15 = sshll.u32 %s6671_s30, 16 }
  0x85   : > { %s6903_s16 = scalar_lea.hbm %s7713_s4, %s6123_s15  ;;  %s349_s13 = scalar_lea.vmem [#allocation11], %s5503_s19 }
  0x86   : > { %s357_s5 = sshll.u32 %s349_s13, 4  ;;  %s7742_s22 = sand.u32 1, %s6671_s30   ;;  %s6905_s5 = int_to_ptr.vmem [resolvable:$true] %s357_s5 }
  0x87   : > { %s346_s6 = scalar_lea.sflag [#allocation12], %s7742_s22  ;;  %s6561_s2 = scalar_lea.hbm %s6903_s16, 65536 }
  0x88   : > { %p6562_p6 = scmp.ne.s32.totalorder %s6903_s16, %s6561_s2  ;;  %s6566_s18 = scalar_lea.hbm %s7713_s4, 131072 }
  0x89   : > { %p6567_p0 = scmp.lt.s32.totalorder %s6903_s16, %s7713_s4  ;;  %p6568_p3 = scmp.lt.s32.totalorder %s6566_s18, %s6561_s2 }
  0x8a   : > { %p6564_p7 = pnand %p6562_p6, %p6834_p2 }
  0x8b   : > { %p6569_p8 = por %p6568_p3, %p6567_p0 }
  0x8c   : > { %p6565_p12 = pneg %p6564_p7 }
  0x8e   : > { %p6570_p9 = pnand %p6569_p8, %p6565_p12 }
  0x90   : > { %6573 = shalt.err (!%p6570_p9)
}
  0x91   : > { %s6574_s30 = scalar_lea.vmem %s6905_s5, 65536  ;;  %s6685_s17 = smov [#allocation11]  }
  0x92   : > { %p6575_p10 = scmp.ne.s32.totalorder %s6905_s5, %s6574_s30  ;;  %s6579_s19 = sshll.u32 %s6685_s17, 4  ;;  %s6580_s19 = int_to_ptr.vmem [resolvable:$false] %s6579_s19 }
  0x93   : > { %s6581_s15 = scalar_lea.vmem %s6580_s19, 131072  ;;  %p6582_p4 = scmp.lt.s32.totalorder %s6905_s5, %s6580_s19 }
  0x94   : > { %p6577_p11 = pnand %p6575_p10, %p6834_p2  ;;  %p6583_p5 = scmp.lt.s32.totalorder %s6581_s15, %s6574_s30 }
  0x96   : > { %p6578_p1 = pneg %p6577_p11  ;;  %p6584_p6 = por %p6583_p5, %p6582_p4 }
  0x98   : > { %p6585_p7 = pnand %p6584_p6, %p6578_p1 }
  0x9a   : > { %6588 = shalt.err (!%p6585_p7)
}
  0x9b   : > { %s7743_s23 = smov 32   ;;  %s7744_s26 = smov 512  }
  0x9c   : > { %6267 = dma.hbm_to_vmem [thread:$0]  (!%p6820_p13), %s6903_s16, 65536, %s6905_s5, %s346_s6, %s7744_s26, %s7744_s26, %s7743_s23  }
  0x9d   : > { %p7745_p2 = scmp.ne.s32.totalorder %s7731_s11, 0 }
  0x9e   : > { %p7746_p12 = scmp.eq.s32.totalorder (!%p7745_p2), %s6753_s9, 0 }
  0x9f   : > { %369 = sbr.rel (%p7745_p2) target bundleno = 1346 (0x542), region = 52 }
  0xa4   : > { %6630 = dma.done.wait (%p7746_p12), [#allocation6], 16   ;;  %p7747_p0 = pmov %p7746_p12 }
  0xa6   : > { %6632 = vsyncadd (%p7747_p0), [#allocation6], 4294967280  ;;  %p7748_p3 = pmov %p7747_p0 }
  0xa7   : > { %p7749_p8 = pmov %p7747_p0 }
  0xa8   : > { %6634 = dma.done.wait (%p7748_p3), [#allocation4], 64  }
  0xa9   : > { %6636 = vsyncadd (%p7749_p8), [#allocation4], 4294967232  ;;  %s379_s21 = sand.u32 1, %s6753_s9   ;;  %s381_s27 = sand.u32 1, %s6663_s28  }
  0xaa   : > { %s5510_s16 = sshll.u32 %s381_s27, 7  ;;  %s380_s11 = scalar_lea.sflag [#allocation9], %s379_s21 }
  0xab   : > { %s6944_s13 = scalar_lea.vmem [#allocation8], %s5510_s16  ;;  %p7750_p13 = scmp.ne.s32.totalorder %s7730_s10, 0 }
  0xad   : > { %6638 = dma.done.wait (%p7750_p13), %s380_s11, 2176  }
  0xae   : > { %6640 = vsyncadd (%p7750_p13), %s380_s11, 4294965120  ;;  %s5511_s5 = sshll.u32 %s381_s27, 3  ;;  %s5512_s22 = sshll.u32 %s381_s27, 12 }
  0xaf   : > { %s6950_s6 = scalar_lea.vmem [#allocation10], %s5511_s5  ;;  %s398_s2 = scalar_lea.sflag [#allocation12], %s379_s21 }
  0xb0   : > { %s6952_s14 = scalar_lea.vmem [#allocation11], %s5512_s22 }
  0xb1   : > { %6642 = dma.done.wait (%p7750_p13), %s398_s2, 65536  }
  0xb2   : > { %6644 = vsyncadd (%p7750_p13), %s398_s2, 4294901760  ;;  %p7751_p9 = pmov %p7747_p0 }
  0xb3   : > { %p7752_p10 = pmov %p7747_p0 }
  0xb4   : > { %6646 = dma.done.wait (%p7751_p9), [#allocation12], 128  }
  0xb5   : > { %6648 = vsyncadd (%p7752_p10), [#allocation12], 4294967168  ;;  %p7753_p11 = pmov %p7747_p0 }
  0xb6   : > { %p7754_p1 = pmov %p7747_p0 }
  0xb7   : > { %6650 = dma.done.wait (%p7753_p11), [#allocation15], 8208  }
  0xb8   : > { %6652 = vsyncadd (%p7754_p1), [#allocation15], 4294959088 }
  0xb9   : > { %418 = sfence }
  0xba   : > { %p7755_p4 = scmp.ne.s32.totalorder %s6753_s9, 0 }
  0xbc   : > { %459 = sbr.rel (%p7755_p4) target bundleno = 198 (0xc6), region = 88 }
  0xc1   : > { %v6686_v0 = vmov 0.0  }
  0xc2   : > { %460 = vst [vmem:[#allocation2 + $0x30] sm:$0xff] %v6686_v0  ;;  %461 = vst [vmem:[#allocation2] sm:$0xff] %v6686_v0 }
  0xc3   : > { %462 = vst [vmem:[#allocation2 + $0x18] sm:$0xff] %v6686_v0  ;;  %463 = vst [vmem:[#allocation2 + $0x10] sm:$0xff] %v6686_v0 }
  0xc4   : > { %464 = vst [vmem:[#allocation2 + $0x8] sm:$0xff] %v6686_v0  ;;  %465 = vst [vmem:[#allocation2 + $0x20] sm:$0xff] %v6686_v0 }
  0xc5   : > { %466 = vst [vmem:[#allocation2 + $0x28] sm:$0xff] %v6686_v0  ;;  %467 = vst [vmem:[#allocation2 + $0x38] sm:$0xff] %v6686_v0 }
  0xc6 PF: > { %v477_v1 = vld [vmem:[%s6944_s13 + $0x40] sm:$0xff]  ;;  %v478_v3 = vld [vmem:[%s6944_s13 + $0x48] sm:$0xff]  ;;  %v6687_v9 = vmov 0   ;;  %v479_v16 = vld [vmem:[%s6944_s13 + $0x50] sm:$0xff]  ;;  %vm607_vm0 = vcmask 261120   ;;  %s775_s10 = sld [smem:[#allocation3]] }
  0xc7   : > { %v481_v2 = vld [vmem:[%s6944_s13 + $0x60] sm:$0xff]  ;;  %v482_v5 = vld [vmem:[%s6944_s13 + $0x68] sm:$0xff]  ;;  %643 = vmatprep.mubr.bf16.mxu0 %v6687_v9  ;;  %684 = vmatprep.mubr.bf16.mxu1 %v6687_v9  ;;  %v483_v17 = vld [vmem:[%s6944_s13 + $0x70] sm:$0xff]  ;;  %p6049_p5 = scmp.ne.s32.totalorder %s6753_s9, 1 }
  0xc8   : > { %v5526_v4 = vcombine.high %v477_v1, %v481_v2  ;;  %v5525_v6 = vcombine.low %v477_v1, %v481_v2  ;;  %v469_v7 = vld [vmem:[%s6944_s13] sm:$0xff]  ;;  %v5528_v10 = vcombine.high %v478_v3, %v482_v5  ;;  %v5527_v11 = vcombine.low %v478_v3, %v482_v5  ;;  %v470_v13 = vld [vmem:[%s6944_s13 + $0x8] sm:$0xff]  ;;  %v480_v18 = vld [vmem:[%s6944_s13 + $0x58] sm:$0xff]  ;;  %s6050_s24 = sld [smem:[#allocation3 + $0x1]] (!%p6049_p5) }
  0xc9   : > { %v473_v8 = vld [vmem:[%s6944_s13 + $0x20] sm:$0xff]  ;;  %v474_v14 = vld [vmem:[%s6944_s13 + $0x28] sm:$0xff]  ;;  %v484_v20 = vld [vmem:[%s6944_s13 + $0x78] sm:$0xff]  ;;  %v5530_v22 = vcombine.high %v479_v16, %v483_v17  ;;  %v5529_v29 = vcombine.low %v479_v16, %v483_v17 }
  0xca   : > { %v5518_v12 = vcombine.high %v469_v7, %v473_v8  ;;  %623 = vmatprep.subr.bf16.mxu0 %v5526_v4  ;;  %v5520_v15 = vcombine.high %v470_v13, %v474_v14  ;;  %664 = vmatprep.subr.bf16.mxu1 %v5528_v10  ;;  %v5517_v19 = vcombine.low %v469_v7, %v473_v8  ;;  %v471_v24 = vld [vmem:[%s6944_s13 + $0x10] sm:$0xff]  ;;  %v472_v26 = vld [vmem:[%s6944_s13 + $0x18] sm:$0xff] }
  0xcb   : > { %624 = vmatpush1.bf16.msra.mxu0 %v5525_v6  ;;  %665 = vmatpush1.bf16.msra.mxu1 %v5527_v11  ;;  %v5519_v21 = vcombine.low %v470_v13, %v474_v14  ;;  %v5532_v23 = vcombine.high %v480_v18, %v484_v20  ;;  %v475_v25 = vld [vmem:[%s6944_s13 + $0x30] sm:$0xff]  ;;  %v476_v27 = vld [vmem:[%s6944_s13 + $0x38] sm:$0xff]  ;;  %v5531_v30 = vcombine.low %v480_v18, %v484_v20 }
  0xcc   : > { %625 = vmatprep.subr.bf16.mxu0 %v5518_v12  ;;  %666 = vmatprep.subr.bf16.mxu1 %v5520_v15  ;;  %v468_v28 = vld [vmem:[#allocation7] sm:$0xf]  ;;  %v5522_v31 = vcombine.high %v471_v24, %v475_v25  ;;  %v5524_v32 = vcombine.high %v472_v26, %v476_v27  ;;  %v873_v33 = vld [vmem:[%s6952_s14 + $0x1c0] sm:$0xff]  ;;  %v5521_v37 = vcombine.low %v471_v24, %v475_v25 }
  0xcd   : > { %v877_v34 = vld [vmem:[%s6952_s14 + $0x1e0] sm:$0xff]  ;;  %v5523_v38 = vcombine.low %v472_v26, %v476_v27 }
  0xce   : > { %v1001_v35 = vld [vmem:[%s6952_s14 + $0x5c0] sm:$0xff]  ;;  %v5594_v39 = vcombine.high %v873_v33, %v877_v34  ;;  %v5593_v45 = vcombine.low %v873_v33, %v877_v34 }
  0xcf   : > { %626 = vmatpush1.bf16.msra.mxu0 %v5517_v19  ;;  %667 = vmatpush1.bf16.msra.mxu1 %v5519_v21  ;;  %v1005_v36 = vld [vmem:[%s6952_s14 + $0x5e0] sm:$0xff] }
  0xd0   : > { %705 = vmatprep.subr.bf16.mxu0 %v5530_v22  ;;  %746 = vmatprep.subr.bf16.mxu1 %v5532_v23  ;;  %v5722_v40 = vcombine.high %v1001_v35, %v1005_v36  ;;  %v865_v41 = vld [vmem:[%s6952_s14 + $0x180] sm:$0xff]  ;;  %v5721_v46 = vcombine.low %v1001_v35, %v1005_v36 }
  0xd1   : > { %v869_v42 = vld [vmem:[%s6952_s14 + $0x1a0] sm:$0xff] }
  0xd2   : > { %5533 = vmatmul.mubr.msk.bf16.vlgmr.msra.gmra.mxu0 %vm607_vm0, %v468_v28  ;;  %5534 = vmatmul.mubr.msk.bf16.vlgmr.msra.gmra.mxu1 %vm607_vm0, %v468_v28  ;;  %v993_v43 = vld [vmem:[%s6952_s14 + $0x580] sm:$0xff]  ;;  %v5586_v47 = vcombine.high %v865_v41, %v869_v42  ;;  %v5585_v53 = vcombine.low %v865_v41, %v869_v42 }
  0xd3   : > { %706 = vmatpush1.bf16.msra.mxu0 %v5529_v29  ;;  %747 = vmatpush1.bf16.msra.mxu1 %v5531_v30  ;;  %v997_v44 = vld [vmem:[%s6952_s14 + $0x5a0] sm:$0xff] }
  0xd4   : > { %707 = vmatprep.subr.bf16.mxu0 %v5522_v31  ;;  %748 = vmatprep.subr.bf16.mxu1 %v5524_v32  ;;  %v5714_v48 = vcombine.high %v993_v43, %v997_v44  ;;  %v857_v49 = vld [vmem:[%s6952_s14 + $0x140] sm:$0xff]  ;;  %v5713_v54 = vcombine.low %v993_v43, %v997_v44 }
  0xd5   : > { %725 = vmatprep.mubr.bf16.mxu0 %v6687_v9  ;;  %766 = vmatprep.mubr.bf16.mxu1 %v6687_v9  ;;  %v861_v50 = vld [vmem:[%s6952_s14 + $0x160] sm:$0xff] }
  0xd6   : > { %v985_v51 = vld [vmem:[%s6952_s14 + $0x540] sm:$0xff]  ;;  %v5578_v55 = vcombine.high %v857_v49, %v861_v50  ;;  %v5577_v61 = vcombine.low %v857_v49, %v861_v50 }
  0xd7   : > { %708 = vmatpush1.bf16.msra.mxu0 %v5521_v37  ;;  %749 = vmatpush1.bf16.msra.mxu1 %v5523_v38  ;;  %v989_v52 = vld [vmem:[%s6952_s14 + $0x560] sm:$0xff] }
  0xd8   : > { %3889 = vmatprep.subr.bf16.mxu0 %v5594_v39  ;;  %3930 = vmatprep.subr.bf16.mxu1 %v5722_v40  ;;  %v5706_v56 = vcombine.high %v985_v51, %v989_v52  ;;  %v849_v57 = vld [vmem:[%s6952_s14 + $0x100] sm:$0xff]  ;;  %v5705_v62 = vcombine.low %v985_v51, %v989_v52 }
  0xd9   : > { %v853_v58 = vld [vmem:[%s6952_s14 + $0x120] sm:$0xff] }
  0xda   : > { %5535 = vmatmul.mubr.msk.bf16.vlgmr.msra.gmra.mxu0 %vm607_vm0, %v468_v28  ;;  %5536 = vmatmul.mubr.msk.bf16.vlgmr.msra.gmra.mxu1 %vm607_vm0, %v468_v28  ;;  %v977_v59 = vld [vmem:[%s6952_s14 + $0x500] sm:$0xff]  ;;  %v5570_v63 = vcombine.high %v849_v57, %v853_v58  ;;  %v5569_v5 = vcombine.low %v849_v57, %v853_v58 }
  0xdb   : > { %3890 = vmatpush1.bf16.msra.mxu0 %v5593_v45  ;;  %3931 = vmatpush1.bf16.msra.mxu1 %v5721_v46  ;;  %v981_v60 = vld [vmem:[%s6952_s14 + $0x520] sm:$0xff] }
  0xdc   : > { %3891 = vmatprep.subr.bf16.mxu0 %v5586_v47  ;;  %3932 = vmatprep.subr.bf16.mxu1 %v5714_v48  ;;  %v5698_v0 = vcombine.high %v977_v59, %v981_v60  ;;  %v841_v1 = vld [vmem:[%s6952_s14 + $0xc0] sm:$0xff]  ;;  %v5697_v6 = vcombine.low %v977_v59, %v981_v60 }
  0xdd   : > { %v845_v2 = vld [vmem:[%s6952_s14 + $0xe0] sm:$0xff] }
  0xde   : > { %v969_v3 = vld [vmem:[%s6952_s14 + $0x4c0] sm:$0xff]  ;;  %v5562_v7 = vcombine.high %v841_v1, %v845_v2  ;;  %v5561_v13 = vcombine.low %v841_v1, %v845_v2 }
  0xdf   : > { %3892 = vmatpush1.bf16.msra.mxu0 %v5585_v53  ;;  %3933 = vmatpush1.bf16.msra.mxu1 %v5713_v54  ;;  %v973_v4 = vld [vmem:[%s6952_s14 + $0x4e0] sm:$0xff] }
  0xe0   : > { %3893 = vmatprep.subr.bf16.mxu0 %v5578_v55  ;;  %3934 = vmatprep.subr.bf16.mxu1 %v5706_v56  ;;  %v5690_v8 = vcombine.high %v969_v3, %v973_v4  ;;  %v833_v9 = vld [vmem:[%s6952_s14 + $0x80] sm:$0xff]  ;;  %v5689_v14 = vcombine.low %v969_v3, %v973_v4 }
  0xe1   : > { %v837_v10 = vld [vmem:[%s6952_s14 + $0xa0] sm:$0xff] }
  0xe2   : > { %v961_v11 = vld [vmem:[%s6952_s14 + $0x480] sm:$0xff]  ;;  %v5554_v15 = vcombine.high %v833_v9, %v837_v10  ;;  %v5553_v21 = vcombine.low %v833_v9, %v837_v10 }
  0xe3   : > { %3894 = vmatpush1.bf16.msra.mxu0 %v5577_v61  ;;  %3935 = vmatpush1.bf16.msra.mxu1 %v5705_v62  ;;  %v965_v12 = vld [vmem:[%s6952_s14 + $0x4a0] sm:$0xff] }
  0xe4   : > { %3895 = vmatprep.subr.bf16.mxu0 %v5570_v63  ;;  %3936 = vmatprep.subr.bf16.mxu1 %v5698_v0  ;;  %v5682_v16 = vcombine.high %v961_v11, %v965_v12  ;;  %v825_v17 = vld [vmem:[%s6952_s14 + $0x40] sm:$0xff]  ;;  %v5681_v22 = vcombine.low %v961_v11, %v965_v12 }
  0xe5   : > { %v829_v18 = vld [vmem:[%s6952_s14 + $0x60] sm:$0xff] }
  0xe6   : > { %v953_v19 = vld [vmem:[%s6952_s14 + $0x440] sm:$0xff]  ;;  %v5546_v23 = vcombine.high %v825_v17, %v829_v18  ;;  %v5545_v29 = vcombine.low %v825_v17, %v829_v18 }
  0xe7   : > { %3896 = vmatpush1.bf16.msra.mxu0 %v5569_v5  ;;  %3937 = vmatpush1.bf16.msra.mxu1 %v5697_v6  ;;  %v957_v20 = vld [vmem:[%s6952_s14 + $0x460] sm:$0xff] }
  0xe8   : > { %3897 = vmatprep.subr.bf16.mxu0 %v5562_v7  ;;  %3938 = vmatprep.subr.bf16.mxu1 %v5690_v8  ;;  %v5674_v24 = vcombine.high %v953_v19, %v957_v20  ;;  %v817_v25 = vld [vmem:[%s6952_s14] sm:$0xff]  ;;  %v5673_v30 = vcombine.low %v953_v19, %v957_v20 }
  0xe9   : > { %v821_v26 = vld [vmem:[%s6952_s14 + $0x20] sm:$0xff] }
  0xea   : > { %v945_v27 = vld [vmem:[%s6952_s14 + $0x400] sm:$0xff]  ;;  %v5538_v31 = vcombine.high %v817_v25, %v821_v26  ;;  %v5537_v37 = vcombine.low %v817_v25, %v821_v26 }
  0xeb   : > { %3898 = vmatpush1.bf16.msra.mxu0 %v5561_v13  ;;  %3939 = vmatpush1.bf16.msra.mxu1 %v5689_v14  ;;  %v949_v28 = vld [vmem:[%s6952_s14 + $0x420] sm:$0xff] }
  0xec   : > { %3899 = vmatprep.subr.bf16.mxu0 %v5554_v15  ;;  %3940 = vmatprep.subr.bf16.mxu1 %v5682_v16  ;;  %v5666_v32 = vcombine.high %v945_v27, %v949_v28  ;;  %v937_v33 = vld [vmem:[%s6952_s14 + $0x3c0] sm:$0xff]  ;;  %v5665_v38 = vcombine.low %v945_v27, %v949_v28 }
  0xed   : > { %v941_v34 = vld [vmem:[%s6952_s14 + $0x3e0] sm:$0xff] }
  0xee   : > { %v1065_v35 = vld [vmem:[%s6952_s14 + $0x7c0] sm:$0xff]  ;;  %v5658_v39 = vcombine.high %v937_v33, %v941_v34  ;;  %v5657_v45 = vcombine.low %v937_v33, %v941_v34 }
  0xef   : > { %3900 = vmatpush1.bf16.msra.mxu0 %v5553_v21  ;;  %3941 = vmatpush1.bf16.msra.mxu1 %v5681_v22  ;;  %v1069_v36 = vld [vmem:[%s6952_s14 + $0x7e0] sm:$0xff] }
  0xf0   : > { %3901 = vmatprep.subr.bf16.mxu0 %v5546_v23  ;;  %3942 = vmatprep.subr.bf16.mxu1 %v5674_v24  ;;  %v5786_v40 = vcombine.high %v1065_v35, %v1069_v36  ;;  %v929_v41 = vld [vmem:[%s6952_s14 + $0x380] sm:$0xff]  ;;  %v5785_v46 = vcombine.low %v1065_v35, %v1069_v36 }
  0xf1   : > { %v933_v42 = vld [vmem:[%s6952_s14 + $0x3a0] sm:$0xff] }
  0xf2   : > { %v1057_v43 = vld [vmem:[%s6952_s14 + $0x780] sm:$0xff]  ;;  %v5650_v47 = vcombine.high %v929_v41, %v933_v42  ;;  %v5649_v53 = vcombine.low %v929_v41, %v933_v42 }
  0xf3   : > { %3902 = vmatpush1.bf16.msra.mxu0 %v5545_v29  ;;  %3943 = vmatpush1.bf16.msra.mxu1 %v5673_v30  ;;  %v1061_v44 = vld [vmem:[%s6952_s14 + $0x7a0] sm:$0xff] }
  0xf4   : > { %3903 = vmatprep.subr.bf16.mxu0 %v5538_v31  ;;  %3944 = vmatprep.subr.bf16.mxu1 %v5666_v32  ;;  %v5778_v48 = vcombine.high %v1057_v43, %v1061_v44  ;;  %v921_v49 = vld [vmem:[%s6952_s14 + $0x340] sm:$0xff]  ;;  %v5777_v54 = vcombine.low %v1057_v43, %v1061_v44  ;;  %v487_v43 = vlaneseq }
  0xf5   : > { %v925_v50 = vld [vmem:[%s6952_s14 + $0x360] sm:$0xff] }
  0xf6   : > { %v1049_v51 = vld [vmem:[%s6952_s14 + $0x740] sm:$0xff]  ;;  %v5642_v55 = vcombine.high %v921_v49, %v925_v50  ;;  %v5641_v61 = vcombine.low %v921_v49, %v925_v50  ;;  %v7072_v44 = vshrl.u32 %v487_v43, 7 }
  0xf7   : > { %3904 = vmatpush1.bf16.msra.mxu0 %v5537_v37  ;;  %3945 = vmatpush1.bf16.msra.mxu1 %v5665_v38  ;;  %v1053_v52 = vld [vmem:[%s6952_s14 + $0x760] sm:$0xff] }
  0xf8   : > { %3905 = vmatprep.subr.bf16.mxu0 %v5658_v39  ;;  %3946 = vmatprep.subr.bf16.mxu1 %v5786_v40  ;;  %v5770_v56 = vcombine.high %v1049_v51, %v1053_v52  ;;  %v913_v57 = vld [vmem:[%s6952_s14 + $0x300] sm:$0xff]  ;;  %v5769_v62 = vcombine.low %v1049_v51, %v1053_v52  ;;  %v501_v49 = vsub.s32 3, %v7072_v44 }
  0xf9   : > { %v917_v58 = vld [vmem:[%s6952_s14 + $0x320] sm:$0xff] }
  0xfa   : > { %v1041_v59 = vld [vmem:[%s6952_s14 + $0x700] sm:$0xff]  ;;  %v5634_v63 = vcombine.high %v913_v57, %v917_v58  ;;  %v5633_v5 = vcombine.low %v913_v57, %v917_v58 }
  0xfb   : > { %3906 = vmatpush2.bf16.msra.mxu0 %v5657_v45  ;;  %3947 = vmatpush2.bf16.msra.mxu1 %v5785_v46  ;;  %v1045_v60 = vld [vmem:[%s6952_s14 + $0x720] sm:$0xff]  ;;  %v489_v45 = vsub.s32 0, %v7072_v44  ;;  %v7076_v46 = vld [vmem:[%s6950_s6] sm:$0xff] }
  0xfc   : > { %3907 = vmatprep.subr.bf16.mxu0 %v5650_v47  ;;  %3948 = vmatprep.subr.bf16.mxu1 %v5778_v48  ;;  %v5762_v0 = vcombine.high %v1041_v59, %v1045_v60  ;;  %v905_v1 = vld [vmem:[%s6952_s14 + $0x2c0] sm:$0xff]  ;;  %v5761_v6 = vcombine.low %v1041_v59, %v1045_v60  ;;  %v497_v47 = vsub.s32 2, %v7072_v44  ;;  %v493_v48 = vsub.s32 1, %v7072_v44 }
  0xfd   : > { %v909_v2 = vld [vmem:[%s6952_s14 + $0x2e0] sm:$0xff]  ;;  %v490_v50 = vrot.slane %v7076_v46, %v489_v45 }
  0xfe   : > { %v1033_v3 = vld [vmem:[%s6952_s14 + $0x6c0] sm:$0xff]  ;;  %v5626_v7 = vcombine.high %v905_v1, %v909_v2  ;;  %v5625_v13 = vcombine.low %v905_v1, %v909_v2  ;;  %v498_v51 = vrot.slane %v7076_v46, %v497_v47  ;;  %v494_v52 = vrot.slane %v7076_v46, %v493_v48 }
  0xff   : > { %3908 = vmatpush2.bf16.msra.mxu0 %v5649_v53  ;;  %3949 = vmatpush2.bf16.msra.mxu1 %v5777_v54  ;;  %v1037_v4 = vld [vmem:[%s6952_s14 + $0x6e0] sm:$0xff]  ;;  %v7090_v54 = vstv %s775_s10 }
 0x100   : > { %3909 = vmatprep.subr.bf16.mxu0 %v5642_v55  ;;  %3950 = vmatprep.subr.bf16.mxu1 %v5770_v56  ;;  %v5754_v8 = vcombine.high %v1033_v3, %v1037_v4  ;;  %v897_v9 = vld [vmem:[%s6952_s14 + $0x280] sm:$0xff]  ;;  %v5753_v14 = vcombine.low %v1033_v3, %v1037_v4  ;;  %v502_v55 = vrot.slane %v7076_v46, %v501_v49  ;;  %v517_v3 = vsub.s32 7, %v7072_v44 }
 0x101   : > { %v901_v10 = vld [vmem:[%s6952_s14 + $0x2a0] sm:$0xff] }
 0x102   : > { %v1025_v11 = vld [vmem:[%s6952_s14 + $0x680] sm:$0xff]  ;;  %v5618_v15 = vcombine.high %v897_v9, %v901_v10  ;;  %v5617_v17 = vcombine.low %v897_v9, %v901_v10 }
 0x103   : > { %3910 = vmatpush2.bf16.msra.mxu0 %v5641_v61  ;;  %3951 = vmatpush2.bf16.msra.mxu1 %v5769_v62  ;;  %v1029_v12 = vld [vmem:[%s6952_s14 + $0x6a0] sm:$0xff] }
 0x104   : > { %3911 = vmatprep.subr.bf16.mxu0 %v5634_v63  ;;  %3952 = vmatprep.subr.bf16.mxu1 %v5762_v0  ;;  %v5746_v16 = vcombine.high %v1025_v11, %v1029_v12  ;;  %v5745_v18 = vcombine.low %v1025_v11, %v1029_v12  ;;  %v889_v19 = vld [vmem:[%s6952_s14 + $0x240] sm:$0xff]  ;;  %v509_v63 = vsub.s32 5, %v7072_v44 }
 0x105   : > { %v893_v20 = vld [vmem:[%s6952_s14 + $0x260] sm:$0xff] }
 0x106   : > { %v1017_v21 = vld [vmem:[%s6952_s14 + $0x640] sm:$0xff]  ;;  %v5610_v22 = vcombine.high %v889_v19, %v893_v20  ;;  %v5609_v24 = vcombine.low %v889_v19, %v893_v20  ;;  %v518_v20 = vrot.slane %v7076_v46, %v517_v3 }
 0x107   : > { %3912 = vmatpush2.bf16.msra.mxu0 %v5633_v5  ;;  %3953 = vmatpush2.bf16.msra.mxu1 %v5761_v6  ;;  %v1021_v23 = vld [vmem:[%s6952_s14 + $0x660] sm:$0xff] }
 0x108   : > { %3913 = vmatprep.subr.bf16.mxu0 %v5626_v7  ;;  %3954 = vmatprep.subr.bf16.mxu1 %v5754_v8  ;;  %v5737_v25 = vcombine.low %v1017_v21, %v1021_v23  ;;  %v5738_v26 = vcombine.high %v1017_v21, %v1021_v23  ;;  %v881_v27 = vld [vmem:[%s6952_s14 + $0x200] sm:$0xff] }
 0x109   : > { %v885_v28 = vld [vmem:[%s6952_s14 + $0x220] sm:$0xff] }
 0x10a   : > { %v1009_v29 = vld [vmem:[%s6952_s14 + $0x600] sm:$0xff]  ;;  %v5602_v30 = vcombine.high %v881_v27, %v885_v28  ;;  %v5601_v32 = vcombine.low %v881_v27, %v885_v28 }
 0x10b   : > { %3914 = vmatpush2.bf16.msra.mxu0 %v5625_v13  ;;  %3955 = vmatpush2.bf16.msra.mxu1 %v5753_v14  ;;  %v1013_v31 = vld [vmem:[%s6952_s14 + $0x620] sm:$0xff] }
 0x10c   : > { %3915 = vmatprep.subr.bf16.mxu0 %v5618_v15  ;;  %3956 = vmatprep.subr.bf16.mxu1 %v5746_v16  ;;  %v5729_v33 = vcombine.low %v1009_v29, %v1013_v31  ;;  %v5730_v34 = vcombine.high %v1009_v29, %v1013_v31  ;;  %v7053_v35 = vld [vmem:[%s6952_s14 + $0x9c0] sm:$0xff]  ;;  %v510_v16 = vrot.slane %v7076_v46, %v509_v63 }
 0x10d   : > { %v7056_v36 = vld [vmem:[%s6952_s14 + $0x9e0] sm:$0xff] }
 0x10e   : > { %v7059_v37 = vld [vmem:[%s6952_s14 + $0xdc0] sm:$0xff]  ;;  %v5850_v38 = vcombine.high %v7053_v35, %v7056_v36  ;;  %v5849_v40 = vcombine.low %v7053_v35, %v7056_v36 }
 0x10f   : > { %3916 = vmatpush2.bf16.msra.mxu0 %v5617_v17  ;;  %3957 = vmatpush2.bf16.msra.mxu1 %v5745_v18  ;;  %v7064_v39 = vld [vmem:[%s6952_s14 + $0xde0] sm:$0xff] }
 0x110   : > { %3917 = vmatprep.subr.bf16.mxu0 %v5610_v22  ;;  %3958 = vmatprep.subr.bf16.mxu1 %v5738_v26  ;;  %v5977_v41 = vcombine.low %v7059_v37, %v7064_v39  ;;  %v5978_v42 = vcombine.high %v7059_v37, %v7064_v39  ;;  %v1121_v9 = vld [vmem:[%s6952_s14 + $0x980] sm:$0xff] }
 0x111   : > { %v1125_v10 = vld [vmem:[%s6952_s14 + $0x9a0] sm:$0xff] }
 0x112   : > { %v1249_v14 = vld [vmem:[%s6952_s14 + $0xd80] sm:$0xff]  ;;  %v5842_v23 = vcombine.high %v1121_v9, %v1125_v10 }
 0x113   : > { %3918 = vmatpush2.bf16.msra.mxu0 %v5609_v24  ;;  %3959 = vmatpush2.bf16.msra.mxu1 %v5737_v25  ;;  %v1253_v15 = vld [vmem:[%s6952_s14 + $0xda0] sm:$0xff] }
 0x114   : > { %3919 = vmatprep.subr.bf16.mxu0 %v5602_v30  ;;  %3960 = vmatprep.subr.bf16.mxu1 %v5730_v34  ;;  %v5970_v26 = vcombine.high %v1249_v14, %v1253_v15  ;;  %v1113_v27 = vld [vmem:[%s6952_s14 + $0x940] sm:$0xff]  ;;  %v5841_v34 = vcombine.low %v1121_v9, %v1125_v10  ;;  %v5969_v43 = vcombine.low %v1249_v14, %v1253_v15 }
 0x115   : > { %v1117_v28 = vld [vmem:[%s6952_s14 + $0x960] sm:$0xff] }
 0x116   : > { %v1241_v30 = vld [vmem:[%s6952_s14 + $0xd40] sm:$0xff] }
 0x117   : > { %3920 = vmatpush2.bf16.msra.mxu0 %v5601_v32  ;;  %3961 = vmatpush2.bf16.msra.mxu1 %v5729_v33  ;;  %v1245_v31 = vld [vmem:[%s6952_s14 + $0xd60] sm:$0xff] }
 0x118   : > { %3971 = vmatprep.subr.bf16.mxu0 %v5850_v38  ;;  %4012 = vmatprep.subr.bf16.mxu1 %v5978_v42  ;;  %v1105_v35 = vld [vmem:[%s6952_s14 + $0x900] sm:$0xff] }
 0x119   : > { %v1109_v36 = vld [vmem:[%s6952_s14 + $0x920] sm:$0xff] }
 0x11a   : > { %v1237_v37 = vld [vmem:[%s6952_s14 + $0xd20] sm:$0xff] }
 0x11b   : > { %v1089_v10 = vld [vmem:[%s6952_s14 + $0x880] sm:$0xff] }
 0x192   : > { %v645_v53 = vpop.f32.mrf.mxu0  ;;  %v686_v57 = vpop.f32.mrf.mxu1 }
 0x193   : > { %v646_v56 = vadd.f32 %v645_v53, %v490_v50  ;;  %v687_v58 = vadd.f32 %v686_v57, %v498_v51  ;;  %v5834_v50 = vcombine.high %v1113_v27, %v1117_v28  ;;  %v5962_v53 = vcombine.high %v1241_v30, %v1245_v31 }
 0x194   : > { %v647_v59 = vpop.f32.mrf.mxu0  ;;  %v688_v62 = vpop.f32.mrf.mxu1  ;;  %v5833_v57 = vcombine.low %v1113_v27, %v1117_v28  ;;  %v1213_v27 = vld [vmem:[%s6952_s14 + $0xc60] sm:$0xff] }
 0x195   : > { %vm776_vm1 = vcmp.gt.f32.partialorder %v646_v56, 0.0  ;;  %v785_v60 = vmul.f32 %v7090_v54, %v646_v56  ;;  %v648_v61 = vadd.f32 %v647_v59, %v494_v52  ;;  %vm778_vm2 = vcmp.gt.f32.partialorder %v687_v58, 0.0 }
 0x196   : > { %v787_v0 = vmul.f32 %v7090_v54, %v687_v58  ;;  %v689_v1 = vadd.f32 %v688_v62, %v502_v55  ;;  %v649_v2 = vpop.f32.mrf.mxu0  ;;  %v690_v5 = vpop.f32.mrf.mxu1 }
 0x197   : > { %vm777_vm3 = vcmp.gt.f32.partialorder %v648_v61, 0.0  ;;  %v786_v4 = vmul.f32 %v7090_v54, %v648_v61  ;;  %v793_v6 = vsel %vm776_vm1, %v646_v56, %v785_v60  ;;  %v1233_v56 = vld [vmem:[%s6952_s14 + $0xd00] sm:$0xff]  ;;  %v5961_v60 = vcombine.low %v1241_v30, %v1245_v31 }
 0x198   : > { %vm779_vm4 = vcmp.gt.f32.partialorder %v689_v1, 0.0  ;;  %v788_v7 = vmul.f32 %v7090_v54, %v689_v1  ;;  %v650_v8 = vpop.f32.mrf.mxu0  ;;  %v795_v11 = vsel %vm778_vm2, %v687_v58, %v787_v0  ;;  %v691_v13 = vpop.f32.mrf.mxu1  ;;  %v7115_v21 = vpack.c.bf16 %v793_v6, %v793_v6  ;;  %v1101_v2 = vld [vmem:[%s6952_s14 + $0x8e0] sm:$0xff] }
 0x199   : > { %v794_v12 = vsel %vm777_vm3, %v648_v61, %v786_v4  ;;  %v7121_v25 = vpack.c.bf16 %v795_v11, %v795_v11  ;;  %v5826_v61 = vcombine.high %v1105_v35, %v1109_v36  ;;  %v5954_v0 = vcombine.high %v1233_v56, %v1237_v37  ;;  %v1225_v4 = vld [vmem:[%s6952_s14 + $0xcc0] sm:$0xff] }
 0x19a   : > { %v7108_v17 = vpack.c.bf16 %v794_v12, %v794_v12  ;;  %v796_v18 = vsel %vm779_vm4, %v689_v1, %v788_v7  ;;  %v7110_v19 = vpop.f32.mrf.mxu0  ;;  %v7119_v24 = vpop.f32.mrf.mxu1  ;;  %v1097_v1 = vld [vmem:[%s6952_s14 + $0x8c0] sm:$0xff]  ;;  %v5825_v6 = vcombine.low %v1105_v35, %v1109_v36  ;;  %v5953_v7 = vcombine.low %v1233_v56, %v1237_v37 }
 0x19b   : > { %v7117_v22 = vpack.c.bf16 %v796_v18, %v796_v18  ;;  %v1229_v5 = vld [vmem:[%s6952_s14 + $0xce0] sm:$0xff]  ;;  %v5818_v8 = vcombine.high %v1097_v1, %v1101_v2  ;;  %v5817_v14 = vcombine.low %v1097_v1, %v1101_v2 }
 0x19c   : > { %3921 = vmatprep.mubr.bf16.mxu0 %v7108_v17  ;;  %v729_v29 = vpop.f32.mrf.mxu0  ;;  %v770_v33 = vpop.f32.mrf.mxu1  ;;  %v5946_v9 = vcombine.high %v1225_v4, %v1229_v5  ;;  %v1093_v11 = vld [vmem:[%s6952_s14 + $0x8a0] sm:$0xff]  ;;  %v5945_v15 = vcombine.low %v1225_v4, %v1229_v5 }
 0x19d   : > { %3962 = vmatprep.mubr.bf16.mxu1 %v7117_v22  ;;  %3922 = vmatmul.mubr.bf16.vlgmr.msra.gmra.mxu0 %v7115_v21  ;;  %v730_v32 = vadd.f32 %v729_v29, %v510_v16  ;;  %v771_v42 = vadd.f32 %v770_v33, %v518_v20  ;;  %v1217_v12 = vld [vmem:[%s6952_s14 + $0xc80] sm:$0xff]  ;;  %v5810_v16 = vcombine.high %v1089_v10, %v1093_v11 }
 0x19e   : > { %3963 = vmatmul.mubr.bf16.vlgmr.msra.gmra.mxu1 %v7121_v25  ;;  %3972 = vmatpush1.bf16.msra.mxu0 %v5849_v40  ;;  %v731_v38 = vpop.f32.mrf.mxu0  ;;  %v772_v52 = vpop.f32.mrf.mxu1  ;;  %v1221_v13 = vld [vmem:[%s6952_s14 + $0xca0] sm:$0xff]  ;;  %v5809_v28 = vcombine.low %v1089_v10, %v1093_v11 }
 0x19f   : > { %4013 = vmatpush1.bf16.msra.mxu1 %v5977_v41  ;;  %3973 = vmatprep.subr.bf16.mxu0 %v5842_v23  ;;  %vm781_vm5 = vcmp.gt.f32.partialorder %v730_v32, 0.0  ;;  %v790_v51 = vmul.f32 %v7090_v54, %v730_v32  ;;  %vm783_vm6 = vcmp.gt.f32.partialorder %v771_v42, 0.0  ;;  %v792_v40 = vmul.f32 %v7090_v54, %v771_v42  ;;  %v1081_v20 = vld [vmem:[%s6952_s14 + $0x840] sm:$0xff] }
 0x1a0   : > { %4014 = vmatprep.subr.bf16.mxu1 %v5970_v26  ;;  %v732_v55 = vpop.f32.mrf.mxu0  ;;  %v773_v41 = vpop.f32.mrf.mxu1  ;;  %v5938_v18 = vcombine.high %v1217_v12, %v1221_v13  ;;  %v1085_v23 = vld [vmem:[%s6952_s14 + $0x860] sm:$0xff]  ;;  %v5937_v29 = vcombine.low %v1217_v12, %v1221_v13 }
 0x1a1   : > { %v798_v39 = vsel %vm781_vm5, %v730_v32, %v790_v51  ;;  %v800_v59 = vsel %vm783_vm6, %v771_v42, %v792_v40  ;;  %v1209_v26 = vld [vmem:[%s6952_s14 + $0xc40] sm:$0xff]  ;;  %v5802_v30 = vcombine.high %v1081_v20, %v1085_v23  ;;  %v5801_v42 = vcombine.low %v1081_v20, %v1085_v23 }
 0x1a2   : > { %3974 = vmatpush1.bf16.msra.mxu0 %v5841_v34  ;;  %v7143_v58 = vpack.c.bf16 %v798_v39, %v798_v39  ;;  %v7145_v62 = vpack.c.bf16 %v800_v59, %v800_v59  ;;  %v5930_v31 = vcombine.high %v1209_v26, %v1213_v27  ;;  %v1073_v32 = vld [vmem:[%s6952_s14 + $0x800] sm:$0xff] }
 0x1a3   : > { %4015 = vmatpush1.bf16.msra.mxu1 %v5969_v43  ;;  %3975 = vmatprep.subr.bf16.mxu0 %v5834_v50  ;;  %v1077_v33 = vld [vmem:[%s6952_s14 + $0x820] sm:$0xff]  ;;  %v5929_v43 = vcombine.low %v1209_v26, %v1213_v27 }
 0x1a4   : > { %4016 = vmatprep.subr.bf16.mxu1 %v5962_v53  ;;  %4003 = vmatprep.mubr.bf16.mxu0 %v7143_v58  ;;  %v1201_v34 = vld [vmem:[%s6952_s14 + $0xc00] sm:$0xff]  ;;  %v5794_v50 = vcombine.high %v1073_v32, %v1077_v33  ;;  %v5793_v40 = vcombine.low %v1073_v32, %v1077_v33  ;;  %v505_v32 = vsub.s32 4, %v7072_v44 }
 0x1a5   : > { %4044 = vmatprep.mubr.bf16.mxu1 %v7145_v62  ;;  %v1205_v38 = vld [vmem:[%s6952_s14 + $0xc20] sm:$0xff] }
 0x1a6   : > { %3976 = vmatpush1.bf16.msra.mxu0 %v5833_v57  ;;  %v5922_v51 = vcombine.high %v1201_v34, %v1205_v38  ;;  %v1193_v52 = vld [vmem:[%s6952_s14 + $0xbc0] sm:$0xff]  ;;  %v5921_v55 = vcombine.low %v1201_v34, %v1205_v38 }
 0x1a7   : > { %4017 = vmatpush1.bf16.msra.mxu1 %v5961_v60  ;;  %3977 = vmatprep.subr.bf16.mxu0 %v5826_v61  ;;  %v1197_v53 = vld [vmem:[%s6952_s14 + $0xbe0] sm:$0xff] }
 0x1a8   : > { %4018 = vmatprep.subr.bf16.mxu1 %v5954_v0  ;;  %v1321_v35 = vld [vmem:[%s6952_s14 + $0xfc0] sm:$0xff]  ;;  %v5914_v56 = vcombine.high %v1193_v52, %v1197_v53  ;;  %v5913_v60 = vcombine.low %v1193_v52, %v1197_v53 }
 0x1a9   : > { %v1325_v36 = vld [vmem:[%s6952_s14 + $0xfe0] sm:$0xff] }
 0x1aa   : > { %3978 = vmatpush1.bf16.msra.mxu0 %v5825_v6  ;;  %v6042_v37 = vcombine.high %v1321_v35, %v1325_v36  ;;  %v1185_v39 = vld [vmem:[%s6952_s14 + $0xb80] sm:$0xff]  ;;  %v6041_v61 = vcombine.low %v1321_v35, %v1325_v36  ;;  %v506_v35 = vrot.slane %v7076_v46, %v505_v32 }
 0x1ab   : > { %4019 = vmatpush1.bf16.msra.mxu1 %v5953_v7  ;;  %3979 = vmatprep.subr.bf16.mxu0 %v5818_v8  ;;  %v1189_v41 = vld [vmem:[%s6952_s14 + $0xba0] sm:$0xff] }
 0x1ac   : > { %4020 = vmatprep.subr.bf16.mxu1 %v5946_v9  ;;  %v1313_v57 = vld [vmem:[%s6952_s14 + $0xf80] sm:$0xff]  ;;  %v5906_v0 = vcombine.high %v1185_v39, %v1189_v41  ;;  %v5905_v7 = vcombine.low %v1185_v39, %v1189_v41 }
 0x1ad   : > { %v1317_v59 = vld [vmem:[%s6952_s14 + $0xfa0] sm:$0xff] }
 0x1ae   : > { %3980 = vmatpush1.bf16.msra.mxu0 %v5817_v14  ;;  %v6034_v1 = vcombine.high %v1313_v57, %v1317_v59  ;;  %v1177_v2 = vld [vmem:[%s6952_s14 + $0xb40] sm:$0xff]  ;;  %v6033_v8 = vcombine.low %v1313_v57, %v1317_v59 }
 0x1af   : > { %4021 = vmatpush1.bf16.msra.mxu1 %v5945_v15  ;;  %3981 = vmatprep.subr.bf16.mxu0 %v5810_v16  ;;  %v1181_v4 = vld [vmem:[%s6952_s14 + $0xb60] sm:$0xff] }
 0x1b0   : > { %4022 = vmatprep.subr.bf16.mxu1 %v5938_v18  ;;  %v1305_v5 = vld [vmem:[%s6952_s14 + $0xf40] sm:$0xff]  ;;  %v5898_v9 = vcombine.high %v1177_v2, %v1181_v4  ;;  %v5897_v15 = vcombine.low %v1177_v2, %v1181_v4 }
 0x1b1   : > { %v1309_v6 = vld [vmem:[%s6952_s14 + $0xf60] sm:$0xff] }
 0x1b2   : > { %3982 = vmatpush1.bf16.msra.mxu0 %v5809_v28  ;;  %v6026_v10 = vcombine.high %v1305_v5, %v1309_v6  ;;  %v1169_v11 = vld [vmem:[%s6952_s14 + $0xb00] sm:$0xff]  ;;  %v6025_v16 = vcombine.low %v1305_v5, %v1309_v6 }
 0x1b3   : > { %4023 = vmatpush1.bf16.msra.mxu1 %v5937_v29  ;;  %3983 = vmatprep.subr.bf16.mxu0 %v5802_v30  ;;  %v1173_v12 = vld [vmem:[%s6952_s14 + $0xb20] sm:$0xff] }
 0x1b4   : > { %4024 = vmatprep.subr.bf16.mxu1 %v5930_v31  ;;  %v1297_v13 = vld [vmem:[%s6952_s14 + $0xf00] sm:$0xff]  ;;  %v5890_v18 = vcombine.high %v1169_v11, %v1173_v12  ;;  %v5889_v29 = vcombine.low %v1169_v11, %v1173_v12  ;;  %v1002_v11 = vld [vmem:[%s6952_s14 + $0x5c8] sm:$0xff] }
 0x1b5   : > { %v1301_v14 = vld [vmem:[%s6952_s14 + $0xf20] sm:$0xff]  ;;  %v1006_v12 = vld [vmem:[%s6952_s14 + $0x5e8] sm:$0xff] }
 0x1b6   : > { %3984 = vmatpush1.bf16.msra.mxu0 %v5801_v42  ;;  %v6018_v20 = vcombine.high %v1297_v13, %v1301_v14  ;;  %v1161_v23 = vld [vmem:[%s6952_s14 + $0xac0] sm:$0xff]  ;;  %v6017_v30 = vcombine.low %v1297_v13, %v1301_v14  ;;  %v513_v42 = vsub.s32 6, %v7072_v44 }
 0x1b7   : > { %4025 = vmatpush1.bf16.msra.mxu1 %v5929_v43  ;;  %3985 = vmatprep.subr.bf16.mxu0 %v5794_v50  ;;  %v1165_v26 = vld [vmem:[%s6952_s14 + $0xae0] sm:$0xff] }
 0x1b8   : > { %4026 = vmatprep.subr.bf16.mxu1 %v5922_v51  ;;  %v1289_v27 = vld [vmem:[%s6952_s14 + $0xec0] sm:$0xff]  ;;  %v5882_v31 = vcombine.high %v1161_v23, %v1165_v26  ;;  %v5881_v51 = vcombine.low %v1161_v23, %v1165_v26  ;;  %v866_v23 = vld [vmem:[%s6952_s14 + $0x188] sm:$0xff] }
 0x1b9   : > { %v1293_v28 = vld [vmem:[%s6952_s14 + $0xee0] sm:$0xff]  ;;  %v870_v26 = vld [vmem:[%s6952_s14 + $0x1a8] sm:$0xff] }
 0x1ba   : > { %3986 = vmatpush1.bf16.msra.mxu0 %v5793_v40  ;;  %v6010_v33 = vcombine.high %v1289_v27, %v1293_v28  ;;  %v1153_v34 = vld [vmem:[%s6952_s14 + $0xa80] sm:$0xff]  ;;  %v6009_v52 = vcombine.low %v1289_v27, %v1293_v28  ;;  %v994_v27 = vld [vmem:[%s6952_s14 + $0x588] sm:$0xff] }
 0x1bb   : > { %4027 = vmatpush1.bf16.msra.mxu1 %v5921_v55  ;;  %3987 = vmatprep.subr.bf16.mxu0 %v5914_v56  ;;  %v1157_v38 = vld [vmem:[%s6952_s14 + $0xaa0] sm:$0xff]  ;;  %v514_v56 = vrot.slane %v7076_v46, %v513_v42  ;;  %v998_v28 = vld [vmem:[%s6952_s14 + $0x5a8] sm:$0xff] }
 0x1bc   : > { %4028 = vmatprep.subr.bf16.mxu1 %v6042_v37  ;;  %v1281_v43 = vld [vmem:[%s6952_s14 + $0xe80] sm:$0xff]  ;;  %v5874_v53 = vcombine.high %v1153_v34, %v1157_v38  ;;  %v5873_v41 = vcombine.low %v1153_v34, %v1157_v38  ;;  %v858_v34 = vld [vmem:[%s6952_s14 + $0x148] sm:$0xff] }
 0x1bd   : > { %v1285_v50 = vld [vmem:[%s6952_s14 + $0xea0] sm:$0xff]  ;;  %v769_v2 = vadd.f32 %v7119_v24, %v514_v56  ;;  %v862_v38 = vld [vmem:[%s6952_s14 + $0x168] sm:$0xff] }
 0x1be   : > { %3988 = vmatpush2.bf16.msra.mxu0 %v5913_v60  ;;  %v6002_v36 = vcombine.high %v1281_v43, %v1285_v50  ;;  %v1145_v40 = vld [vmem:[%s6952_s14 + $0xa40] sm:$0xff]  ;;  %v6001_v57 = vcombine.low %v1281_v43, %v1285_v50  ;;  %v728_v60 = vadd.f32 %v7110_v19, %v506_v35  ;;  %v5716_v43 = vcombine.high %v994_v27, %v998_v28  ;;  %v986_v50 = vld [vmem:[%s6952_s14 + $0x548] sm:$0xff] }
 0x1bf   : > { %4029 = vmatpush2.bf16.msra.mxu1 %v6041_v61  ;;  %3989 = vmatprep.subr.bf16.mxu0 %v5906_v0  ;;  %v1149_v55 = vld [vmem:[%s6952_s14 + $0xa60] sm:$0xff]  ;;  %v791_v24 = vmul.f32 %v7090_v54, %v769_v2  ;;  %vm782_vm8 = vcmp.gt.f32.partialorder %v769_v2, 0.0  ;;  %v5580_v35 = vcombine.high %v858_v34, %v862_v38  ;;  %v978_v56 = vld [vmem:[%s6952_s14 + $0x508] sm:$0xff] }
 0x1c0   : > { %4030 = vmatprep.subr.bf16.mxu1 %v6034_v1  ;;  %v1273_v37 = vld [vmem:[%s6952_s14 + $0xe40] sm:$0xff]  ;;  %v5866_v59 = vcombine.high %v1145_v40, %v1149_v55  ;;  %v5865_v5 = vcombine.low %v1145_v40, %v1149_v55  ;;  %v789_v19 = vmul.f32 %v7090_v54, %v728_v60  ;;  %vm780_vm7 = vcmp.gt.f32.partialorder %v728_v60, 0.0  ;;  %v850_v40 = vld [vmem:[%s6952_s14 + $0x108] sm:$0xff] }
 0x1c1   : > { %v1277_v39 = vld [vmem:[%s6952_s14 + $0xe60] sm:$0xff]  ;;  %v854_v55 = vld [vmem:[%s6952_s14 + $0x128] sm:$0xff] }
 0x1c2   : > { %3990 = vmatpush2.bf16.msra.mxu0 %v5905_v7  ;;  %v5994_v61 = vcombine.high %v1273_v37, %v1277_v39  ;;  %v1137_v0 = vld [vmem:[%s6952_s14 + $0xa00] sm:$0xff]  ;;  %v5993_v6 = vcombine.low %v1273_v37, %v1277_v39  ;;  %v982_v37 = vld [vmem:[%s6952_s14 + $0x528] sm:$0xff]  ;;  %v5579_v39 = vcombine.low %v858_v34, %v862_v38 }
 0x1c3   : > { %4031 = vmatpush2.bf16.msra.mxu1 %v6033_v8  ;;  %3991 = vmatprep.subr.bf16.mxu0 %v5898_v9  ;;  %v1141_v1 = vld [vmem:[%s6952_s14 + $0xa20] sm:$0xff]  ;;  %v874_v9 = vld [vmem:[%s6952_s14 + $0x1c8] sm:$0xff] }
 0x1c4   : > { %4032 = vmatprep.subr.bf16.mxu1 %v6026_v10  ;;  %v1265_v46 = vld [vmem:[%s6952_s14 + $0xe00] sm:$0xff]  ;;  %v5858_v7 = vcombine.high %v1137_v0, %v1141_v1  ;;  %v878_v10 = vld [vmem:[%s6952_s14 + $0x1e8] sm:$0xff]  ;;  %v5857_v13 = vcombine.low %v1137_v0, %v1141_v1 }
 0x1c5   : > { %v1269_v4 = vld [vmem:[%s6952_s14 + $0xe20] sm:$0xff]  ;;  %v5595_v54 = vcombine.low %v874_v9, %v878_v10  ;;  %v970_v0 = vld [vmem:[%s6952_s14 + $0x4c8] sm:$0xff] }
 0x1c6   : > { %3992 = vmatpush2.bf16.msra.mxu0 %v5897_v15  ;;  %v5986_v8 = vcombine.high %v1265_v46, %v1269_v4  ;;  %v5985_v14 = vcombine.low %v1265_v46, %v1269_v4  ;;  %v5596_v15 = vcombine.high %v874_v9, %v878_v10  ;;  %v974_v1 = vld [vmem:[%s6952_s14 + $0x4e8] sm:$0xff]  ;;  %v5699_v46 = vcombine.low %v978_v56, %v982_v37 }
 0x1c7   : > { %4033 = vmatpush2.bf16.msra.mxu1 %v6025_v16  ;;  %3993 = vmatprep.subr.bf16.mxu0 %v5890_v18  ;;  %v797_v16 = vsel %vm780_vm7, %v728_v60, %v789_v19  ;;  %v5724_v18 = vcombine.high %v1002_v11, %v1006_v12  ;;  %v842_v60 = vld [vmem:[%s6952_s14 + $0xc8] sm:$0xff]  ;;  %v5691_v10 = vcombine.low %v970_v0, %v974_v1 }
 0x1c8   : > { %4034 = vmatprep.subr.bf16.mxu1 %v6018_v20  ;;  %v799_v20 = vsel %vm782_vm8, %v769_v2, %v791_v24  ;;  %v5571_v2 = vcombine.low %v850_v40, %v854_v55  ;;  %v962_v19 = vld [vmem:[%s6952_s14 + $0x488] sm:$0xff] }
 0x1ca   : > { %3994 = vmatpush2.bf16.msra.mxu0 %v5889_v29  ;;  %v7217_v29 = vpack.c.bf16 %v797_v16, %v797_v16 }
 0x1cb   : > { %4035 = vmatpush2.bf16.msra.mxu1 %v6017_v30  ;;  %3995 = vmatprep.subr.bf16.mxu0 %v5882_v31  ;;  %v5723_v30 = vcombine.low %v1002_v11, %v1006_v12  ;;  %v7219_v31 = vpack.c.bf16 %v799_v20, %v799_v20  ;;  %v826_v12 = vld [vmem:[%s6952_s14 + $0x48] sm:$0xff] }
 0x1cc   : > { %4036 = vmatprep.subr.bf16.mxu1 %v6010_v33  ;;  %v5588_v33 = vcombine.high %v866_v23, %v870_v26 }
 0x1ce   : > { %3996 = vmatpush2.bf16.msra.mxu0 %v5881_v51  ;;  %v990_v51 = vld [vmem:[%s6952_s14 + $0x568] sm:$0xff] }
 0x1cf   : > { %4037 = vmatpush2.bf16.msra.mxu1 %v6009_v52  ;;  %3997 = vmatprep.subr.bf16.mxu0 %v5874_v53  ;;  %v5587_v52 = vcombine.low %v866_v23, %v870_v26  ;;  %v5715_v53 = vcombine.low %v994_v27, %v998_v28  ;;  %v818_v26 = vld [vmem:[%s6952_s14 + $0x8] sm:$0xff] }
 0x1d0   : > { %4038 = vmatprep.subr.bf16.mxu1 %v6002_v36  ;;  %v5708_v36 = vcombine.high %v986_v50, %v990_v51  ;;  %v946_v27 = vld [vmem:[%s6952_s14 + $0x408] sm:$0xff] }
 0x1d1   : > { %v950_v28 = vld [vmem:[%s6952_s14 + $0x428] sm:$0xff] }
 0x1d2   : > { %3998 = vmatpush2.bf16.msra.mxu0 %v5873_v41  ;;  %v5707_v41 = vcombine.low %v986_v50, %v990_v51  ;;  %v5668_v38 = vcombine.high %v946_v27, %v950_v28  ;;  %v942_v50 = vld [vmem:[%s6952_s14 + $0x3e8] sm:$0xff] }
 0x1d3   : > { %4039 = vmatpush2.bf16.msra.mxu1 %v6001_v57  ;;  %3999 = vmatprep.subr.bf16.mxu0 %v5866_v59  ;;  %v5572_v57 = vcombine.high %v850_v40, %v854_v55  ;;  %v5700_v59 = vcombine.high %v978_v56, %v982_v37  ;;  %v1066_v51 = vld [vmem:[%s6952_s14 + $0x7c8] sm:$0xff] }
 0x1d4   : > { %4040 = vmatprep.subr.bf16.mxu1 %v5994_v61  ;;  %v846_v61 = vld [vmem:[%s6952_s14 + $0xe8] sm:$0xff] }
 0x1d5   : > { %v5564_v4 = vcombine.high %v842_v60, %v846_v61  ;;  %v5563_v9 = vcombine.low %v842_v60, %v846_v61  ;;  %v930_v55 = vld [vmem:[%s6952_s14 + $0x388] sm:$0xff] }
 0x1d6   : > { %4000 = vmatpush2.bf16.msra.mxu0 %v5865_v5  ;;  %v5692_v5 = vcombine.high %v970_v0, %v974_v1  ;;  %v934_v56 = vld [vmem:[%s6952_s14 + $0x3a8] sm:$0xff] }
 0x1d7   : > { %4041 = vmatpush2.bf16.msra.mxu1 %v5993_v6  ;;  %4001 = vmatprep.subr.bf16.mxu0 %v5858_v7  ;;  %v834_v6 = vld [vmem:[%s6952_s14 + $0x88] sm:$0xff] }
 0x1d8   : > { %4042 = vmatprep.subr.bf16.mxu1 %v5986_v8  ;;  %v838_v7 = vld [vmem:[%s6952_s14 + $0xa8] sm:$0xff] }
 0x1d9   : > { %v966_v8 = vld [vmem:[%s6952_s14 + $0x4a8] sm:$0xff]  ;;  %v5556_v24 = vcombine.high %v834_v6, %v838_v7  ;;  %v5555_v16 = vcombine.low %v834_v6, %v838_v7 }
 0x1da   : > { %4002 = vmatpush2.bf16.msra.mxu0 %v5857_v13  ;;  %v5684_v11 = vcombine.high %v962_v19, %v966_v8  ;;  %v830_v13 = vld [vmem:[%s6952_s14 + $0x68] sm:$0xff] }
 0x1db   : > { %4043 = vmatpush2.bf16.msra.mxu1 %v5985_v14  ;;  %4053 = vmatprep.subr.bf16.mxu0 %v5596_v15  ;;  %v954_v14 = vld [vmem:[%s6952_s14 + $0x448] sm:$0xff]  ;;  %v5548_v20 = vcombine.high %v826_v12, %v830_v13 }
 0x1dc   : > { %4094 = vmatprep.subr.bf16.mxu1 %v5724_v18  ;;  %v958_v15 = vld [vmem:[%s6952_s14 + $0x468] sm:$0xff]  ;;  %v5683_v18 = vcombine.low %v962_v19, %v966_v8 }
 0x1dd   : > { %4004 = vmatmul.mubr.bf16.vlgmr.msra.gmra.mxu0 %v7217_v29  ;;  %v5676_v23 = vcombine.high %v954_v14, %v958_v15  ;;  %v1058_v37 = vld [vmem:[%s6952_s14 + $0x788] sm:$0xff] }
 0x1de   : > { %4045 = vmatmul.mubr.bf16.vlgmr.msra.gmra.mxu1 %v7219_v31  ;;  %4054 = vmatpush1.bf16.msra.mxu0 %v5595_v54  ;;  %v822_v54 = vld [vmem:[%s6952_s14 + $0x28] sm:$0xff] }
 0x1df   : > { %4085 = vmatprep.mubr.bf16.mxu0 %v7108_v17  ;;  %4095 = vmatpush1.bf16.msra.mxu1 %v5723_v30  ;;  %v5547_v30 = vcombine.low %v826_v12, %v830_v13  ;;  %v5540_v34 = vcombine.high %v818_v26, %v822_v54  ;;  %v922_v61 = vld [vmem:[%s6952_s14 + $0x348] sm:$0xff] }
 0x1e0   : > { %4126 = vmatprep.mubr.bf16.mxu1 %v7117_v22  ;;  %4055 = vmatprep.subr.bf16.mxu0 %v5588_v33  ;;  %v5675_v33 = vcombine.low %v954_v14, %v958_v15  ;;  %v926_v0 = vld [vmem:[%s6952_s14 + $0x368] sm:$0xff] }
 0x1e1   : > { %4096 = vmatprep.subr.bf16.mxu1 %v5716_v43  ;;  %v938_v43 = vld [vmem:[%s6952_s14 + $0x3c8] sm:$0xff] }
 0x1e2   : > { %4056 = vmatpush1.bf16.msra.mxu0 %v5587_v52  ;;  %v1070_v52 = vld [vmem:[%s6952_s14 + $0x7e8] sm:$0xff] }
 0x1e3   : > { %4097 = vmatpush1.bf16.msra.mxu1 %v5715_v53  ;;  %4057 = vmatprep.subr.bf16.mxu0 %v5580_v35  ;;  %v5539_v53 = vcombine.low %v818_v26, %v822_v54  ;;  %v5667_v35 = vcombine.low %v946_v27, %v950_v28  ;;  %v5788_v40 = vcombine.high %v1066_v51, %v1070_v52  ;;  %v1050_v1 = vld [vmem:[%s6952_s14 + $0x748] sm:$0xff] }
 0x1e4   : > { %4098 = vmatprep.subr.bf16.mxu1 %v5708_v36  ;;  %v5660_v36 = vcombine.high %v938_v43, %v942_v50  ;;  %v914_v7 = vld [vmem:[%s6952_s14 + $0x308] sm:$0xff] }
 0x1e5   : > { %v918_v19 = vld [vmem:[%s6952_s14 + $0x328] sm:$0xff] }
 0x1e6   : > { %4058 = vmatpush1.bf16.msra.mxu0 %v5579_v39  ;;  %v1062_v39 = vld [vmem:[%s6952_s14 + $0x7a8] sm:$0xff] }
 0x1e7   : > { %4099 = vmatpush1.bf16.msra.mxu1 %v5707_v41  ;;  %4059 = vmatprep.subr.bf16.mxu0 %v5572_v57  ;;  %v5659_v41 = vcombine.low %v938_v43, %v942_v50  ;;  %v5787_v57 = vcombine.low %v1066_v51, %v1070_v52  ;;  %v5780_v60 = vcombine.high %v1058_v37, %v1062_v39  ;;  %v1042_v8 = vld [vmem:[%s6952_s14 + $0x708] sm:$0xff] }
 0x1e8   : > { %4100 = vmatprep.subr.bf16.mxu1 %v5700_v59  ;;  %v5652_v59 = vcombine.high %v930_v55, %v934_v56  ;;  %v906_v13 = vld [vmem:[%s6952_s14 + $0x2c8] sm:$0xff] }
 0x1e9   : > { %v910_v14 = vld [vmem:[%s6952_s14 + $0x2e8] sm:$0xff] }
 0x1ea   : > { %4060 = vmatpush1.bf16.msra.mxu0 %v5571_v2  ;;  %v1054_v2 = vld [vmem:[%s6952_s14 + $0x768] sm:$0xff] }
 0x1eb   : > { %4101 = vmatpush1.bf16.msra.mxu1 %v5699_v46  ;;  %4061 = vmatprep.subr.bf16.mxu0 %v5564_v4  ;;  %v5651_v46 = vcombine.low %v930_v55, %v934_v56  ;;  %v5779_v4 = vcombine.low %v1058_v37, %v1062_v39  ;;  %v5772_v6 = vcombine.high %v1050_v1, %v1054_v2  ;;  %v1034_v15 = vld [vmem:[%s6952_s14 + $0x6c8] sm:$0xff] }
 0x1ec   : > { %4102 = vmatprep.subr.bf16.mxu1 %v5692_v5  ;;  %v5644_v5 = vcombine.high %v922_v61, %v926_v0  ;;  %v898_v54 = vld [vmem:[%s6952_s14 + $0x288] sm:$0xff] }
 0x1ed   : > { %v902_v27 = vld [vmem:[%s6952_s14 + $0x2a8] sm:$0xff] }
 0x1ee   : > { %4062 = vmatpush1.bf16.msra.mxu0 %v5563_v9  ;;  %v1046_v9 = vld [vmem:[%s6952_s14 + $0x728] sm:$0xff] }
 0x1ef   : > { %4103 = vmatpush1.bf16.msra.mxu1 %v5691_v10  ;;  %4063 = vmatprep.subr.bf16.mxu0 %v5556_v24  ;;  %v5643_v10 = vcombine.low %v922_v61, %v926_v0  ;;  %v5771_v24 = vcombine.low %v1050_v1, %v1054_v2  ;;  %v5764_v12 = vcombine.high %v1042_v8, %v1046_v9  ;;  %v1026_v28 = vld [vmem:[%s6952_s14 + $0x688] sm:$0xff] }
 0x1f0   : > { %4104 = vmatprep.subr.bf16.mxu1 %v5684_v11  ;;  %v5636_v11 = vcombine.high %v914_v7, %v918_v19  ;;  %v890_v50 = vld [vmem:[%s6952_s14 + $0x248] sm:$0xff] }
 0x1f1   : > { %v894_v51 = vld [vmem:[%s6952_s14 + $0x268] sm:$0xff] }
 0x1f2   : > { %4064 = vmatpush1.bf16.msra.mxu0 %v5555_v16  ;;  %v1038_v16 = vld [vmem:[%s6952_s14 + $0x6e8] sm:$0xff] }
 0x1f3   : > { %4105 = vmatpush1.bf16.msra.mxu1 %v5683_v18  ;;  %4065 = vmatprep.subr.bf16.mxu0 %v5548_v20  ;;  %v5635_v18 = vcombine.low %v914_v7, %v918_v19  ;;  %v5763_v20 = vcombine.low %v1042_v8, %v1046_v9  ;;  %v5756_v26 = vcombine.high %v1034_v15, %v1038_v16  ;;  %v1018_v52 = vld [vmem:[%s6952_s14 + $0x648] sm:$0xff] }
 0x1f4   : > { %4106 = vmatprep.subr.bf16.mxu1 %v5676_v23  ;;  %v5628_v23 = vcombine.high %v906_v13, %v910_v14  ;;  %v882_v56 = vld [vmem:[%s6952_s14 + $0x208] sm:$0xff] }
 0x1f5   : > { %v886_v37 = vld [vmem:[%s6952_s14 + $0x228] sm:$0xff] }
 0x1f6   : > { %4066 = vmatpush1.bf16.msra.mxu0 %v5547_v30  ;;  %v1030_v30 = vld [vmem:[%s6952_s14 + $0x6a8] sm:$0xff] }
 0x1f7   : > { %4107 = vmatpush1.bf16.msra.mxu1 %v5675_v33  ;;  %4067 = vmatprep.subr.bf16.mxu0 %v5540_v34  ;;  %v5627_v33 = vcombine.low %v906_v13, %v910_v14  ;;  %v5755_v34 = vcombine.low %v1034_v15, %v1038_v16  ;;  %v5748_v43 = vcombine.high %v1026_v28, %v1030_v30  ;;  %v1010_v39 = vld [vmem:[%s6952_s14 + $0x608] sm:$0xff] }
 0x1f8   : > { %4108 = vmatprep.subr.bf16.mxu1 %v5668_v38  ;;  %v5620_v38 = vcombine.high %v898_v54, %v902_v27  ;;  %v1130_v0 = vld [vmem:[%s6952_s14 + $0x9c8] sm:$0xff] }
 0x1f9   : > { %v1134_v1 = vld [vmem:[%s6952_s14 + $0x9e8] sm:$0xff] }
 0x1fa   : > { %4068 = vmatpush1.bf16.msra.mxu0 %v5539_v53  ;;  %v1022_v53 = vld [vmem:[%s6952_s14 + $0x668] sm:$0xff]  ;;  %v5851_v9 = vcombine.low %v1130_v0, %v1134_v1 }
 0x1fb   : > { %4109 = vmatpush1.bf16.msra.mxu1 %v5667_v35  ;;  %4069 = vmatprep.subr.bf16.mxu0 %v5660_v36  ;;  %v5619_v35 = vcombine.low %v898_v54, %v902_v27  ;;  %v5747_v36 = vcombine.low %v1026_v28, %v1030_v30  ;;  %v5740_v55 = vcombine.high %v1018_v52, %v1022_v53  ;;  %v1258_v2 = vld [vmem:[%s6952_s14 + $0xdc8] sm:$0xff] }
 0x1fc   : > { %4110 = vmatprep.subr.bf16.mxu1 %v5788_v40  ;;  %v5612_v40 = vcombine.high %v890_v50, %v894_v51  ;;  %v1122_v19 = vld [vmem:[%s6952_s14 + $0x988] sm:$0xff] }
 0x1fd   : > { %v1126_v8 = vld [vmem:[%s6952_s14 + $0x9a8] sm:$0xff] }
 0x1fe   : > { %4070 = vmatpush2.bf16.msra.mxu0 %v5659_v41  ;;  %v1014_v41 = vld [vmem:[%s6952_s14 + $0x628] sm:$0xff] }
 0x1ff   : > { %4111 = vmatpush2.bf16.msra.mxu1 %v5787_v57  ;;  %4071 = vmatprep.subr.bf16.mxu0 %v5652_v59  ;;  %v5611_v57 = vcombine.low %v890_v50, %v894_v51  ;;  %v5739_v59 = vcombine.low %v1018_v52, %v1022_v53  ;;  %v5732_v61 = vcombine.high %v1010_v39, %v1014_v41  ;;  %v1114_v13 = vld [vmem:[%s6952_s14 + $0x948] sm:$0xff] }
 0x200   : > { %4112 = vmatprep.subr.bf16.mxu1 %v5780_v60  ;;  %v5604_v60 = vcombine.high %v882_v56, %v886_v37  ;;  %v1118_v14 = vld [vmem:[%s6952_s14 + $0x968] sm:$0xff] }
 0x201   : > { %v1242_v16 = vld [vmem:[%s6952_s14 + $0xd48] sm:$0xff] }
 0x202   : > { %4072 = vmatpush2.bf16.msra.mxu0 %v5651_v46  ;;  %v1262_v46 = vld [vmem:[%s6952_s14 + $0xde8] sm:$0xff] }
 0x203   : > { %4113 = vmatpush2.bf16.msra.mxu1 %v5779_v4  ;;  %4073 = vmatprep.subr.bf16.mxu0 %v5644_v5  ;;  %v5603_v4 = vcombine.low %v882_v56, %v886_v37  ;;  %v5731_v5 = vcombine.low %v1010_v39, %v1014_v41  ;;  %v5980_v7 = vcombine.high %v1258_v2, %v1262_v46  ;;  %v1106_v27 = vld [vmem:[%s6952_s14 + $0x908] sm:$0xff] }
 0x204   : > { %4114 = vmatprep.subr.bf16.mxu1 %v5772_v6  ;;  %v5852_v6 = vcombine.high %v1130_v0, %v1134_v1  ;;  %v1110_v28 = vld [vmem:[%s6952_s14 + $0x928] sm:$0xff] }
 0x205   : > { %v1234_v30 = vld [vmem:[%s6952_s14 + $0xd08] sm:$0xff] }
 0x206   : > { %4074 = vmatpush2.bf16.msra.mxu0 %v5643_v10  ;;  %v1250_v10 = vld [vmem:[%s6952_s14 + $0xd88] sm:$0xff] }
 0x207   : > { %4115 = vmatpush2.bf16.msra.mxu1 %v5771_v24  ;;  %4075 = vmatprep.subr.bf16.mxu0 %v5636_v11  ;;  %v1254_v24 = vld [vmem:[%s6952_s14 + $0xda8] sm:$0xff]  ;;  %v5979_v11 = vcombine.low %v1258_v2, %v1262_v46 }
 0x208   : > { %4116 = vmatprep.subr.bf16.mxu1 %v5764_v12  ;;  %v5844_v12 = vcombine.high %v1122_v19, %v1126_v8  ;;  %v5972_v15 = vcombine.high %v1250_v10, %v1254_v24  ;;  %v1098_v51 = vld [vmem:[%s6952_s14 + $0x8c8] sm:$0xff] }
 0x209   : > { %v1102_v52 = vld [vmem:[%s6952_s14 + $0x8e8] sm:$0xff] }
 0x20a   : > { %4076 = vmatpush2.bf16.msra.mxu0 %v5635_v18  ;;  %v1246_v18 = vld [vmem:[%s6952_s14 + $0xd68] sm:$0xff] }
 0x20b   : > { %4117 = vmatpush2.bf16.msra.mxu1 %v5763_v20  ;;  %4077 = vmatprep.subr.bf16.mxu0 %v5628_v23  ;;  %v5843_v20 = vcombine.low %v1122_v19, %v1126_v8  ;;  %v5971_v23 = vcombine.low %v1250_v10, %v1254_v24  ;;  %v5964_v54 = vcombine.high %v1242_v16, %v1246_v18  ;;  %v1226_v53 = vld [vmem:[%s6952_s14 + $0xcc8] sm:$0xff] }
 0x20c   : > { %4118 = vmatprep.subr.bf16.mxu1 %v5756_v26  ;;  %v5836_v26 = vcombine.high %v1114_v13, %v1118_v14  ;;  %v1090_v37 = vld [vmem:[%s6952_s14 + $0x888] sm:$0xff] }
 0x20d   : > { %v1094_v39 = vld [vmem:[%s6952_s14 + $0x8a8] sm:$0xff] }
 0x20e   : > { %4078 = vmatpush2.bf16.msra.mxu0 %v5627_v33  ;;  %v1238_v33 = vld [vmem:[%s6952_s14 + $0xd28] sm:$0xff] }
 0x20f   : > { %4119 = vmatpush2.bf16.msra.mxu1 %v5755_v34  ;;  %4079 = vmatprep.subr.bf16.mxu0 %v5620_v38  ;;  %v5835_v34 = vcombine.low %v1114_v13, %v1118_v14  ;;  %v5963_v38 = vcombine.low %v1242_v16, %v1246_v18  ;;  %v5956_v50 = vcombine.high %v1234_v30, %v1238_v33  ;;  %v1218_v41 = vld [vmem:[%s6952_s14 + $0xc88] sm:$0xff] }
 0x210   : > { %4120 = vmatprep.subr.bf16.mxu1 %v5748_v43  ;;  %v5828_v43 = vcombine.high %v1106_v27, %v1110_v28  ;;  %v1082_v1 = vld [vmem:[%s6952_s14 + $0x848] sm:$0xff] }
 0x211   : > { %v1086_v2 = vld [vmem:[%s6952_s14 + $0x868] sm:$0xff] }
 0x212   : > { %4080 = vmatpush2.bf16.msra.mxu0 %v5619_v35  ;;  %v1230_v35 = vld [vmem:[%s6952_s14 + $0xce8] sm:$0xff] }
 0x213   : > { %4121 = vmatpush2.bf16.msra.mxu1 %v5747_v36  ;;  %4081 = vmatprep.subr.bf16.mxu0 %v5612_v40  ;;  %v5827_v36 = vcombine.low %v1106_v27, %v1110_v28  ;;  %v5955_v40 = vcombine.low %v1234_v30, %v1238_v33  ;;  %v5948_v56 = vcombine.high %v1226_v53, %v1230_v35  ;;  %v1210_v46 = vld [vmem:[%s6952_s14 + $0xc48] sm:$0xff] }
 0x214   : > { %4122 = vmatprep.subr.bf16.mxu1 %v5740_v55  ;;  %v5820_v55 = vcombine.high %v1098_v51, %v1102_v52  ;;  %v1074_v8 = vld [vmem:[%s6952_s14 + $0x808] sm:$0xff] }
 0x215   : > { %v1202_v10 = vld [vmem:[%s6952_s14 + $0xc08] sm:$0xff] }
 0x216   : > { %4082 = vmatpush2.bf16.msra.mxu0 %v5611_v57  ;;  %v1222_v57 = vld [vmem:[%s6952_s14 + $0xca8] sm:$0xff] }
 0x217   : > { %4123 = vmatpush2.bf16.msra.mxu1 %v5739_v59  ;;  %4083 = vmatprep.subr.bf16.mxu0 %v5604_v60  ;;  %v5819_v59 = vcombine.low %v1098_v51, %v1102_v52  ;;  %v5947_v60 = vcombine.low %v1226_v53, %v1230_v35  ;;  %v5940_v0 = vcombine.high %v1218_v41, %v1222_v57  ;;  %v1206_v24 = vld [vmem:[%s6952_s14 + $0xc28] sm:$0xff] }
 0x218   : > { %4124 = vmatprep.subr.bf16.mxu1 %v5732_v61  ;;  %v5812_v61 = vcombine.high %v1090_v37, %v1094_v39  ;;  %v5924_v14 = vcombine.high %v1202_v10, %v1206_v24  ;;  %v1198_v16 = vld [vmem:[%s6952_s14 + $0xbe8] sm:$0xff] }
 0x219   : > { %v1322_v18 = vld [vmem:[%s6952_s14 + $0xfc8] sm:$0xff] }
 0x21a   : > { %4084 = vmatpush2.bf16.msra.mxu0 %v5603_v4  ;;  %v1214_v4 = vld [vmem:[%s6952_s14 + $0xc68] sm:$0xff] }
 0x21b   : > { %4125 = vmatpush2.bf16.msra.mxu1 %v5731_v5  ;;  %4135 = vmatprep.subr.bf16.mxu0 %v5852_v6  ;;  %v5811_v5 = vcombine.low %v1090_v37, %v1094_v39  ;;  %v5939_v6 = vcombine.low %v1218_v41, %v1222_v57  ;;  %v5932_v19 = vcombine.high %v1210_v46, %v1214_v4  ;;  %v1186_v28 = vld [vmem:[%s6952_s14 + $0xb88] sm:$0xff] }
 0x21c   : > { %4176 = vmatprep.subr.bf16.mxu1 %v5980_v7  ;;  %v5804_v7 = vcombine.high %v1082_v1, %v1086_v2  ;;  %v1190_v30 = vld [vmem:[%s6952_s14 + $0xba8] sm:$0xff] }
 0x21d   : > { %4086 = vmatmul.mubr.bf16.vlgmr.msra.gmra.mxu0 %v7115_v21  ;;  %v1314_v33 = vld [vmem:[%s6952_s14 + $0xf88] sm:$0xff] }
 0x21e   : > { %4127 = vmatmul.mubr.bf16.vlgmr.msra.gmra.mxu1 %v7121_v25  ;;  %4136 = vmatpush1.bf16.msra.mxu0 %v5851_v9  ;;  %v1078_v9 = vld [vmem:[%s6952_s14 + $0x828] sm:$0xff] }
 0x21f   : > { %4167 = vmatprep.mubr.bf16.mxu0 %v7143_v58  ;;  %4177 = vmatpush1.bf16.msra.mxu1 %v5979_v11  ;;  %v5803_v11 = vcombine.low %v1082_v1, %v1086_v2  ;;  %v5796_v13 = vcombine.high %v1074_v8, %v1078_v9  ;;  %v1178_v52 = vld [vmem:[%s6952_s14 + $0xb48] sm:$0xff] }
 0x220   : > { %4208 = vmatprep.mubr.bf16.mxu1 %v7145_v62  ;;  %4137 = vmatprep.subr.bf16.mxu0 %v5844_v12  ;;  %v5931_v12 = vcombine.low %v1210_v46, %v1214_v4  ;;  %v1182_v53 = vld [vmem:[%s6952_s14 + $0xb68] sm:$0xff] }
 0x221   : > { %4178 = vmatprep.subr.bf16.mxu1 %v5972_v15  ;;  %v1194_v15 = vld [vmem:[%s6952_s14 + $0xbc8] sm:$0xff] }
 0x222   : > { %4138 = vmatpush1.bf16.msra.mxu0 %v5843_v20  ;;  %v1326_v20 = vld [vmem:[%s6952_s14 + $0xfe8] sm:$0xff] }
 0x223   : > { %4179 = vmatpush1.bf16.msra.mxu1 %v5971_v23  ;;  %4139 = vmatprep.subr.bf16.mxu0 %v5836_v26  ;;  %v5795_v23 = vcombine.low %v1074_v8, %v1078_v9  ;;  %v5923_v26 = vcombine.low %v1202_v10, %v1206_v24  ;;  %v6044_v27 = vcombine.high %v1322_v18, %v1326_v20  ;;  %v1306_v35 = vld [vmem:[%s6952_s14 + $0xf48] sm:$0xff] }
 0x224   : > { %4180 = vmatprep.subr.bf16.mxu1 %v5964_v54  ;;  %v5916_v54 = vcombine.high %v1194_v15, %v1198_v16  ;;  %v1170_v39 = vld [vmem:[%s6952_s14 + $0xb08] sm:$0xff] }
 0x225   : > { %v1174_v41 = vld [vmem:[%s6952_s14 + $0xb28] sm:$0xff] }
 0x226   : > { %4140 = vmatpush1.bf16.msra.mxu0 %v5835_v34  ;;  %v1318_v34 = vld [vmem:[%s6952_s14 + $0xfa8] sm:$0xff] }
 0x227   : > { %4181 = vmatpush1.bf16.msra.mxu1 %v5963_v38  ;;  %4141 = vmatprep.subr.bf16.mxu0 %v5828_v43  ;;  %v5915_v38 = vcombine.low %v1194_v15, %v1198_v16  ;;  %v6043_v43 = vcombine.low %v1322_v18, %v1326_v20  ;;  %v6036_v51 = vcombine.high %v1314_v33, %v1318_v34  ;;  %v1298_v57 = vld [vmem:[%s6952_s14 + $0xf08] sm:$0xff] }
 0x228   : > { %4182 = vmatprep.subr.bf16.mxu1 %v5956_v50  ;;  %v5908_v50 = vcombine.high %v1186_v28, %v1190_v30  ;;  %v1162_v2 = vld [vmem:[%s6952_s14 + $0xac8] sm:$0xff] }
 0x229   : > { %v1166_v46 = vld [vmem:[%s6952_s14 + $0xae8] sm:$0xff] }
 0x22a   : > { %4142 = vmatpush1.bf16.msra.mxu0 %v5827_v36  ;;  %v1310_v36 = vld [vmem:[%s6952_s14 + $0xf68] sm:$0xff] }
 0x22b   : > { %4183 = vmatpush1.bf16.msra.mxu1 %v5955_v40  ;;  %4143 = vmatprep.subr.bf16.mxu0 %v5820_v55  ;;  %v5907_v40 = vcombine.low %v1186_v28, %v1190_v30  ;;  %v6035_v55 = vcombine.low %v1314_v33, %v1318_v34  ;;  %v6028_v37 = vcombine.high %v1306_v35, %v1310_v36  ;;  %v1290_v4 = vld [vmem:[%s6952_s14 + $0xec8] sm:$0xff] }
 0x22c   : > { %4184 = vmatprep.subr.bf16.mxu1 %v5948_v56  ;;  %v5900_v56 = vcombine.high %v1178_v52, %v1182_v53  ;;  %v1154_v9 = vld [vmem:[%s6952_s14 + $0xa88] sm:$0xff] }
 0x22d   : > { %v1158_v10 = vld [vmem:[%s6952_s14 + $0xaa8] sm:$0xff] }
 0x22e   : > { %4144 = vmatpush1.bf16.msra.mxu0 %v5819_v59  ;;  %v1302_v59 = vld [vmem:[%s6952_s14 + $0xf28] sm:$0xff] }
 0x22f   : > { %4185 = vmatpush1.bf16.msra.mxu1 %v5947_v60  ;;  %4145 = vmatprep.subr.bf16.mxu0 %v5812_v61  ;;  %v5899_v60 = vcombine.low %v1178_v52, %v1182_v53  ;;  %v6027_v61 = vcombine.low %v1306_v35, %v1310_v36  ;;  %v6020_v1 = vcombine.high %v1298_v57, %v1302_v59  ;;  %v1282_v24 = vld [vmem:[%s6952_s14 + $0xe88] sm:$0xff]  ;;  %v875_v53 = vld [vmem:[%s6952_s14 + $0x1d0] sm:$0xff] }
 0x230   : > { %4186 = vmatprep.subr.bf16.mxu1 %v5940_v0  ;;  %v5892_v0 = vcombine.high %v1170_v39, %v1174_v41  ;;  %v1146_v16 = vld [vmem:[%s6952_s14 + $0xa48] sm:$0xff]  ;;  %v879_v35 = vld [vmem:[%s6952_s14 + $0x1f0] sm:$0xff] }
 0x231   : > { %v1150_v18 = vld [vmem:[%s6952_s14 + $0xa68] sm:$0xff]  ;;  %v1003_v36 = vld [vmem:[%s6952_s14 + $0x5d0] sm:$0xff] }
 0x232   : > { %4146 = vmatpush1.bf16.msra.mxu0 %v5811_v5  ;;  %v1294_v5 = vld [vmem:[%s6952_s14 + $0xee8] sm:$0xff] }
 0x233   : > { %4187 = vmatpush1.bf16.msra.mxu1 %v5939_v6  ;;  %4147 = vmatprep.subr.bf16.mxu0 %v5804_v7  ;;  %v5891_v6 = vcombine.low %v1170_v39, %v1174_v41  ;;  %v6019_v7 = vcombine.low %v1298_v57, %v1302_v59  ;;  %v6012_v8 = vcombine.high %v1290_v4, %v1294_v5  ;;  %v1274_v20 = vld [vmem:[%s6952_s14 + $0xe48] sm:$0xff]  ;;  %v867_v41 = vld [vmem:[%s6952_s14 + $0x190] sm:$0xff] }
 0x234   : > { %4188 = vmatprep.subr.bf16.mxu1 %v5932_v19  ;;  %v5884_v19 = vcombine.high %v1162_v2, %v1166_v46  ;;  %v1138_v30 = vld [vmem:[%s6952_s14 + $0xa08] sm:$0xff]  ;;  %v871_v57 = vld [vmem:[%s6952_s14 + $0x1b0] sm:$0xff]  ;;  %v5597_v59 = vcombine.low %v875_v53, %v879_v35 }
 0x235   : > { %v1142_v33 = vld [vmem:[%s6952_s14 + $0xa28] sm:$0xff] }
 0x236   : > { %4148 = vmatpush1.bf16.msra.mxu0 %v5803_v11  ;;  %v1286_v11 = vld [vmem:[%s6952_s14 + $0xea8] sm:$0xff] }
 0x237   : > { %4189 = vmatpush1.bf16.msra.mxu1 %v5931_v12  ;;  %4149 = vmatprep.subr.bf16.mxu0 %v5796_v13  ;;  %v5883_v12 = vcombine.low %v1162_v2, %v1166_v46  ;;  %v6011_v13 = vcombine.low %v1290_v4, %v1294_v5  ;;  %v6004_v15 = vcombine.high %v1282_v24, %v1286_v11  ;;  %v1266_v34 = vld [vmem:[%s6952_s14 + $0xe08] sm:$0xff]  ;;  %v859_v2 = vld [vmem:[%s6952_s14 + $0x150] sm:$0xff] }
 0x238   : > { %4190 = vmatprep.subr.bf16.mxu1 %v5924_v14  ;;  %v5876_v14 = vcombine.high %v1154_v9, %v1158_v10  ;;  %v863_v46 = vld [vmem:[%s6952_s14 + $0x170] sm:$0xff] }
 0x23a   : > { %4150 = vmatpush1.bf16.msra.mxu0 %v5795_v23  ;;  %v1278_v23 = vld [vmem:[%s6952_s14 + $0xe68] sm:$0xff] }
 0x23b   : > { %4191 = vmatpush1.bf16.msra.mxu1 %v5923_v26  ;;  %4151 = vmatprep.subr.bf16.mxu0 %v5916_v54  ;;  %v5875_v26 = vcombine.low %v1154_v9, %v1158_v10  ;;  %v6003_v54 = vcombine.low %v1282_v24, %v1286_v11  ;;  %v5996_v28 = vcombine.high %v1274_v20, %v1278_v23 }
 0x23c   : > { %4192 = vmatprep.subr.bf16.mxu1 %v6044_v27  ;;  %v5868_v27 = vcombine.high %v1146_v16, %v1150_v18  ;;  %v5582_v24 = vcombine.high %v859_v2, %v863_v46 }
 0x23e   : > { %4152 = vmatpush2.bf16.msra.mxu0 %v5915_v38  ;;  %v1270_v38 = vld [vmem:[%s6952_s14 + $0xe28] sm:$0xff] }
 0x23f   : > { %4193 = vmatpush2.bf16.msra.mxu1 %v6043_v43  ;;  %4153 = vmatprep.subr.bf16.mxu0 %v5908_v50  ;;  %v5867_v43 = vcombine.low %v1146_v16, %v1150_v18  ;;  %v5995_v50 = vcombine.low %v1274_v20, %v1278_v23  ;;  %v5988_v52 = vcombine.high %v1266_v34, %v1270_v38  ;;  %v979_v16 = vld [vmem:[%s6952_s14 + $0x510] sm:$0xff] }
 0x240   : > { %4194 = vmatprep.subr.bf16.mxu1 %v6036_v51  ;;  %v5860_v51 = vcombine.high %v1138_v30, %v1142_v33  ;;  %v983_v18 = vld [vmem:[%s6952_s14 + $0x530] sm:$0xff]  ;;  %v5581_v23 = vcombine.low %v859_v2, %v863_v46 }
 0x242   : > { %4154 = vmatpush2.bf16.msra.mxu0 %v5907_v40  ;;  %v1007_v40 = vld [vmem:[%s6952_s14 + $0x5f0] sm:$0xff] }
 0x243   : > { %4195 = vmatpush2.bf16.msra.mxu1 %v6035_v55  ;;  %4155 = vmatprep.subr.bf16.mxu0 %v5900_v56  ;;  %v5859_v55 = vcombine.low %v1138_v30, %v1142_v33  ;;  %v5987_v56 = vcombine.low %v1266_v34, %v1270_v38  ;;  %v5726_v39 = vcombine.high %v1003_v36, %v1007_v40  ;;  %v843_v33 = vld [vmem:[%s6952_s14 + $0xd0] sm:$0xff] }
 0x244   : > { %4196 = vmatprep.subr.bf16.mxu1 %v6028_v37  ;;  %v5598_v37 = vcombine.high %v875_v53, %v879_v35  ;;  %v5702_v30 = vcombine.high %v979_v16, %v983_v18  ;;  %v847_v34 = vld [vmem:[%s6952_s14 + $0xf0] sm:$0xff] }
 0x245   : > { %v971_v38 = vld [vmem:[%s6952_s14 + $0x4d0] sm:$0xff] }
 0x246   : > { %4156 = vmatpush2.bf16.msra.mxu0 %v5899_v60  ;;  %v995_v60 = vld [vmem:[%s6952_s14 + $0x590] sm:$0xff] }
 0x247   : > { %4197 = vmatpush2.bf16.msra.mxu1 %v6027_v61  ;;  %4157 = vmatprep.subr.bf16.mxu0 %v5892_v0  ;;  %v999_v61 = vld [vmem:[%s6952_s14 + $0x5b0] sm:$0xff]  ;;  %v5725_v0 = vcombine.low %v1003_v36, %v1007_v40 }
 0x248   : > { %4198 = vmatprep.subr.bf16.mxu1 %v6020_v1  ;;  %v5590_v1 = vcombine.high %v867_v41, %v871_v57  ;;  %v5718_v5 = vcombine.high %v995_v60, %v999_v61  ;;  %v5717_v10 = vcombine.low %v995_v60, %v999_v61  ;;  %v835_v35 = vld [vmem:[%s6952_s14 + $0x90] sm:$0xff] }
 0x249   : > { %v839_v36 = vld [vmem:[%s6952_s14 + $0xb0] sm:$0xff] }
 0x24a   : > { %4158 = vmatpush2.bf16.msra.mxu0 %v5891_v6  ;;  %v987_v6 = vld [vmem:[%s6952_s14 + $0x550] sm:$0xff] }
 0x24b   : > { %4199 = vmatpush2.bf16.msra.mxu1 %v6019_v7  ;;  %4159 = vmatprep.subr.bf16.mxu0 %v5884_v19  ;;  %v991_v7 = vld [vmem:[%s6952_s14 + $0x570] sm:$0xff] }
 0x24c   : > { %4200 = vmatprep.subr.bf16.mxu1 %v6012_v8  ;;  %v5589_v8 = vcombine.low %v867_v41, %v871_v57  ;;  %v963_v40 = vld [vmem:[%s6952_s14 + $0x490] sm:$0xff] }
 0x24d   : > { %v827_v57 = vld [vmem:[%s6952_s14 + $0x50] sm:$0xff] }
 0x24e   : > { %4160 = vmatpush2.bf16.msra.mxu0 %v5883_v12  ;;  %v5710_v12 = vcombine.high %v987_v6, %v991_v7  ;;  %v955_v60 = vld [vmem:[%s6952_s14 + $0x450] sm:$0xff] }
 0x24f   : > { %4201 = vmatpush2.bf16.msra.mxu1 %v6011_v13  ;;  %4161 = vmatprep.subr.bf16.mxu0 %v5876_v14  ;;  %v851_v13 = vld [vmem:[%s6952_s14 + $0x110] sm:$0xff] }
 0x250   : > { %4202 = vmatprep.subr.bf16.mxu1 %v6004_v15  ;;  %v855_v14 = vld [vmem:[%s6952_s14 + $0x130] sm:$0xff] }
 0x251   : > { %v959_v61 = vld [vmem:[%s6952_s14 + $0x470] sm:$0xff] }
 0x252   : > { %4162 = vmatpush2.bf16.msra.mxu0 %v5875_v26  ;;  %v5678_v46 = vcombine.high %v955_v60, %v959_v61 }
 0x253   : > { %4203 = vmatpush2.bf16.msra.mxu1 %v6003_v54  ;;  %4163 = vmatprep.subr.bf16.mxu0 %v5868_v27  ;;  %v5709_v54 = vcombine.low %v987_v6, %v991_v7  ;;  %v5574_v27 = vcombine.high %v851_v13, %v855_v14  ;;  %v823_v6 = vld [vmem:[%s6952_s14 + $0x30] sm:$0xff] }
 0x254   : > { %4204 = vmatprep.subr.bf16.mxu1 %v5996_v28  ;;  %v947_v7 = vld [vmem:[%s6952_s14 + $0x410] sm:$0xff] }
 0x256   : > { %4164 = vmatpush2.bf16.msra.mxu0 %v5867_v43  ;;  %v975_v43 = vld [vmem:[%s6952_s14 + $0x4f0] sm:$0xff] }
 0x257   : > { %4205 = vmatpush2.bf16.msra.mxu1 %v5995_v50  ;;  %4165 = vmatprep.subr.bf16.mxu0 %v5860_v51  ;;  %v5573_v50 = vcombine.low %v851_v13, %v855_v14  ;;  %v5701_v51 = vcombine.low %v979_v16, %v983_v18  ;;  %v5694_v53 = vcombine.high %v971_v38, %v975_v43  ;;  %v939_v14 = vld [vmem:[%s6952_s14 + $0x3d0] sm:$0xff] }
 0x258   : > { %4206 = vmatprep.subr.bf16.mxu1 %v5988_v52  ;;  %v5566_v52 = vcombine.high %v843_v33, %v847_v34  ;;  %v1067_v16 = vld [vmem:[%s6952_s14 + $0x7d0] sm:$0xff] }
 0x259   : > { %v1071_v18 = vld [vmem:[%s6952_s14 + $0x7f0] sm:$0xff] }
 0x25a   : > { %4166 = vmatpush2.bf16.msra.mxu0 %v5859_v55  ;;  %v967_v55 = vld [vmem:[%s6952_s14 + $0x4b0] sm:$0xff] }
 0x25b   : > { %4207 = vmatpush2.bf16.msra.mxu1 %v5987_v56  ;;  %4217 = vmatprep.subr.bf16.mxu0 %v5598_v37  ;;  %v5565_v56 = vcombine.low %v843_v33, %v847_v34  ;;  %v5693_v37 = vcombine.low %v971_v38, %v975_v43  ;;  %v5686_v41 = vcombine.high %v963_v40, %v967_v55  ;;  %v1063_v33 = vld [vmem:[%s6952_s14 + $0x7b0] sm:$0xff] }
 0x25c   : > { %4258 = vmatprep.subr.bf16.mxu1 %v5726_v39  ;;  %v5558_v39 = vcombine.high %v835_v35, %v839_v36  ;;  %v5789_v38 = vcombine.low %v1067_v16, %v1071_v18 }
 0x25d   : > { %4168 = vmatmul.mubr.bf16.vlgmr.msra.gmra.mxu0 %v7217_v29  ;;  %v7360_v4 = vpop.f32.mrf.mxu0 }
 0x25e   : > { %4209 = vmatmul.mubr.bf16.vlgmr.msra.gmra.mxu1 %v7219_v31  ;;  %v7365_v19 = vpop.f32.mrf.mxu1  ;;  %4218 = vmatpush1.bf16.msra.mxu0 %v5597_v59  ;;  %v831_v59 = vld [vmem:[%s6952_s14 + $0x70] sm:$0xff] }
 0x25f   : > { %4249 = vmatprep.mubr.bf16.mxu0 %v7108_v17  ;;  %4259 = vmatpush1.bf16.msra.mxu1 %v5725_v0  ;;  %v7368_v9 = vpop.f32.mrf.mxu0  ;;  %v5557_v0 = vcombine.low %v835_v35, %v839_v36  ;;  %v5550_v2 = vcombine.high %v827_v57, %v831_v59  ;;  %v1055_v35 = vld [vmem:[%s6952_s14 + $0x770] sm:$0xff] }
 0x260   : > { %4290 = vmatprep.mubr.bf16.mxu1 %v7117_v22  ;;  %v7371_v11 = vpop.f32.mrf.mxu1  ;;  %4219 = vmatprep.subr.bf16.mxu0 %v5590_v1  ;;  %v5685_v1 = vcombine.low %v963_v40, %v967_v55 }
 0x261   : > { %4260 = vmatprep.subr.bf16.mxu1 %v5718_v5  ;;  %v3927_v15 = vpop.f32.mrf.mxu0  ;;  %v819_v5 = vld [vmem:[%s6952_s14 + $0x10] sm:$0xff] }
 0x262   : > { %v3968_v20 = vpop.f32.mrf.mxu1  ;;  %4220 = vmatpush1.bf16.msra.mxu0 %v5589_v8  ;;  %v951_v8 = vld [vmem:[%s6952_s14 + $0x430] sm:$0xff] }
 0x263   : > { %4261 = vmatpush1.bf16.msra.mxu1 %v5717_v10  ;;  %v3928_v26 = vpop.f32.mrf.mxu0  ;;  %4221 = vmatprep.subr.bf16.mxu0 %v5582_v24  ;;  %v5549_v10 = vcombine.low %v827_v57, %v831_v59  ;;  %v5677_v24 = vcombine.low %v955_v60, %v959_v61  ;;  %v5670_v13 = vcombine.high %v947_v7, %v951_v8  ;;  %v943_v15 = vld [vmem:[%s6952_s14 + $0x3f0] sm:$0xff] }
 0x264   : > { %v3969_v28 = vpop.f32.mrf.mxu1  ;;  %4262 = vmatprep.subr.bf16.mxu1 %v5710_v12  ;;  %v5542_v12 = vcombine.high %v819_v5, %v823_v6  ;;  %v5541_v20 = vcombine.low %v819_v5, %v823_v6  ;;  %v5662_v26 = vcombine.high %v939_v14, %v943_v15  ;;  %v5661_v34 = vcombine.low %v939_v14, %v943_v15  ;;  %v1047_v57 = vld [vmem:[%s6952_s14 + $0x730] sm:$0xff] }
 0x265   : > { %v935_v28 = vld [vmem:[%s6952_s14 + $0x3b0] sm:$0xff] }
 0x266   : > { %4222 = vmatpush1.bf16.msra.mxu0 %v5581_v23  ;;  %v5669_v23 = vcombine.low %v947_v7, %v951_v8  ;;  %v1039_v5 = vld [vmem:[%s6952_s14 + $0x6f0] sm:$0xff] }
 0x267   : > { %4263 = vmatpush1.bf16.msra.mxu1 %v5709_v54  ;;  %4223 = vmatprep.subr.bf16.mxu0 %v5574_v27  ;;  %v5790_v54 = vcombine.high %v1067_v16, %v1071_v18  ;;  %v931_v27 = vld [vmem:[%s6952_s14 + $0x390] sm:$0xff] }
 0x268   : > { %4264 = vmatprep.subr.bf16.mxu1 %v5702_v30  ;;  %v1059_v30 = vld [vmem:[%s6952_s14 + $0x790] sm:$0xff]  ;;  %v5654_v43 = vcombine.high %v931_v27, %v935_v28  ;;  %v5653_v36 = vcombine.low %v931_v27, %v935_v28 }
 0x269   : > { %v5781_v40 = vcombine.low %v1059_v30, %v1063_v33  ;;  %v1031_v14 = vld [vmem:[%s6952_s14 + $0x6b0] sm:$0xff] }
 0x26a   : > { %4224 = vmatpush1.bf16.msra.mxu0 %v5573_v50  ;;  %v5782_v50 = vcombine.high %v1059_v30, %v1063_v33  ;;  %v1023_v27 = vld [vmem:[%s6952_s14 + $0x670] sm:$0xff] }
 0x26b   : > { %4265 = vmatpush1.bf16.msra.mxu1 %v5701_v51  ;;  %4225 = vmatprep.subr.bf16.mxu0 %v5566_v52  ;;  %v923_v51 = vld [vmem:[%s6952_s14 + $0x350] sm:$0xff] }
 0x26c   : > { %4266 = vmatprep.subr.bf16.mxu1 %v5694_v53  ;;  %v927_v52 = vld [vmem:[%s6952_s14 + $0x370] sm:$0xff] }
 0x26d   : > { %v1051_v53 = vld [vmem:[%s6952_s14 + $0x750] sm:$0xff]  ;;  %v5646_v55 = vcombine.high %v923_v51, %v927_v52  ;;  %v5645_v59 = vcombine.low %v923_v51, %v927_v52 }
 0x26e   : > { %4226 = vmatpush1.bf16.msra.mxu0 %v5565_v56  ;;  %v5774_v56 = vcombine.high %v1051_v53, %v1055_v35  ;;  %v5773_v60 = vcombine.low %v1051_v53, %v1055_v35  ;;  %v1015_v51 = vld [vmem:[%s6952_s14 + $0x630] sm:$0xff] }
 0x26f   : > { %4267 = vmatpush1.bf16.msra.mxu1 %v5693_v37  ;;  %4227 = vmatprep.subr.bf16.mxu0 %v5558_v39  ;;  %v915_v37 = vld [vmem:[%s6952_s14 + $0x310] sm:$0xff] }
 0x270   : > { %4268 = vmatprep.subr.bf16.mxu1 %v5686_v41  ;;  %v919_v39 = vld [vmem:[%s6952_s14 + $0x330] sm:$0xff] }
 0x271   : > { %v1043_v41 = vld [vmem:[%s6952_s14 + $0x710] sm:$0xff]  ;;  %v5638_v61 = vcombine.high %v915_v37, %v919_v39  ;;  %v5637_v6 = vcombine.low %v915_v37, %v919_v39 }
 0x272   : > { %4228 = vmatpush1.bf16.msra.mxu0 %v5557_v0  ;;  %v5766_v0 = vcombine.high %v1043_v41, %v1047_v57  ;;  %v5765_v7 = vcombine.low %v1043_v41, %v1047_v57  ;;  %v1263_v37 = vld [vmem:[%s6952_s14 + $0xdf0] sm:$0xff] }
 0x273   : > { %4269 = vmatpush1.bf16.msra.mxu1 %v5685_v1  ;;  %4229 = vmatprep.subr.bf16.mxu0 %v5550_v2  ;;  %v907_v1 = vld [vmem:[%s6952_s14 + $0x2d0] sm:$0xff] }
 0x274   : > { %4270 = vmatprep.subr.bf16.mxu1 %v5678_v46  ;;  %v911_v2 = vld [vmem:[%s6952_s14 + $0x2f0] sm:$0xff] }
 0x275   : > { %v1035_v46 = vld [vmem:[%s6952_s14 + $0x6d0] sm:$0xff]  ;;  %v5630_v8 = vcombine.high %v907_v1, %v911_v2  ;;  %v5629_v15 = vcombine.low %v907_v1, %v911_v2 }
 0x276   : > { %4230 = vmatpush1.bf16.msra.mxu0 %v5549_v10  ;;  %v5758_v10 = vcombine.high %v1035_v46, %v1039_v5  ;;  %v5757_v16 = vcombine.low %v1035_v46, %v1039_v5  ;;  %v1251_v1 = vld [vmem:[%s6952_s14 + $0xd90] sm:$0xff]  ;;  %v3965_v5 = vadd.f32 %v7365_v19, %v7360_v4  ;;  %v801_v19 = vld [vmem:[#allocation2 + $0x30] sm:$0xff] }
 0x277   : > { %4271 = vmatpush1.bf16.msra.mxu1 %v5677_v24  ;;  %4231 = vmatprep.subr.bf16.mxu0 %v5542_v12  ;;  %v899_v24 = vld [vmem:[%s6952_s14 + $0x290] sm:$0xff] }
 0x278   : > { %4272 = vmatprep.subr.bf16.mxu1 %v5670_v13  ;;  %v903_v12 = vld [vmem:[%s6952_s14 + $0x2b0] sm:$0xff] }
 0x279   : > { %v1027_v13 = vld [vmem:[%s6952_s14 + $0x690] sm:$0xff]  ;;  %v5622_v18 = vcombine.high %v899_v24, %v903_v12  ;;  %v5621_v28 = vcombine.low %v899_v24, %v903_v12 }
 0x27a   : > { %4232 = vmatpush1.bf16.msra.mxu0 %v5541_v20  ;;  %v5750_v20 = vcombine.high %v1027_v13, %v1031_v14  ;;  %v5749_v30 = vcombine.low %v1027_v13, %v1031_v14  ;;  %v1255_v2 = vld [vmem:[%s6952_s14 + $0xdb0] sm:$0xff]  ;;  %v3967_v14 = vadd.f32 %v7371_v11, %v7368_v9 }
 0x27b   : > { %4273 = vmatpush1.bf16.msra.mxu1 %v5669_v23  ;;  %4233 = vmatprep.subr.bf16.mxu0 %v5662_v26  ;;  %v891_v23 = vld [vmem:[%s6952_s14 + $0x250] sm:$0xff]  ;;  %v5974_v24 = vcombine.high %v1251_v1, %v1255_v2 }
 0x27c   : > { %4274 = vmatprep.subr.bf16.mxu1 %v5790_v54  ;;  %v895_v26 = vld [vmem:[%s6952_s14 + $0x270] sm:$0xff] }
 0x27d   : > { %v1019_v54 = vld [vmem:[%s6952_s14 + $0x650] sm:$0xff]  ;;  %v5614_v33 = vcombine.high %v891_v23, %v895_v26  ;;  %v5613_v52 = vcombine.low %v891_v23, %v895_v26 }
 0x27e   : > { %4234 = vmatpush2.bf16.msra.mxu0 %v5661_v34  ;;  %v5742_v34 = vcombine.high %v1019_v54, %v1023_v27  ;;  %v5741_v53 = vcombine.low %v1019_v54, %v1023_v27  ;;  %v1243_v12 = vld [vmem:[%s6952_s14 + $0xd50] sm:$0xff] }
 0x27f   : > { %4275 = vmatpush2.bf16.msra.mxu1 %v5789_v38  ;;  %4235 = vmatprep.subr.bf16.mxu0 %v5654_v43  ;;  %v883_v38 = vld [vmem:[%s6952_s14 + $0x210] sm:$0xff] }
 0x280   : > { %4276 = vmatprep.subr.bf16.mxu1 %v5782_v50  ;;  %v887_v43 = vld [vmem:[%s6952_s14 + $0x230] sm:$0xff] }
 0x281   : > { %v1011_v50 = vld [vmem:[%s6952_s14 + $0x610] sm:$0xff]  ;;  %v5606_v35 = vcombine.high %v883_v38, %v887_v43  ;;  %v5605_v39 = vcombine.low %v883_v38, %v887_v43 }
 0x282   : > { %4236 = vmatpush2.bf16.msra.mxu0 %v5653_v36  ;;  %v5734_v36 = vcombine.high %v1011_v50, %v1015_v51  ;;  %v5733_v41 = vcombine.low %v1011_v50, %v1015_v51  ;;  %v1247_v13 = vld [vmem:[%s6952_s14 + $0xd70] sm:$0xff] }
 0x283   : > { %4277 = vmatpush2.bf16.msra.mxu1 %v5781_v40  ;;  %4237 = vmatprep.subr.bf16.mxu0 %v5646_v55  ;;  %v1131_v40 = vld [vmem:[%s6952_s14 + $0x9d0] sm:$0xff]  ;;  %v5966_v54 = vcombine.high %v1243_v12, %v1247_v13 }
 0x284   : > { %4278 = vmatprep.subr.bf16.mxu1 %v5774_v56  ;;  %v1135_v55 = vld [vmem:[%s6952_s14 + $0x9f0] sm:$0xff] }
 0x285   : > { %v1259_v56 = vld [vmem:[%s6952_s14 + $0xdd0] sm:$0xff]  ;;  %v5854_v57 = vcombine.high %v1131_v40, %v1135_v55 }
 0x286   : > { %4238 = vmatpush2.bf16.msra.mxu0 %v5645_v59  ;;  %v5982_v59 = vcombine.high %v1259_v56, %v1263_v37  ;;  %v5981_v46 = vcombine.low %v1259_v56, %v1263_v37  ;;  %v1107_v27 = vld [vmem:[%s6952_s14 + $0x910] sm:$0xff] }
 0x287   : > { %4279 = vmatpush2.bf16.msra.mxu1 %v5773_v60  ;;  %4239 = vmatprep.subr.bf16.mxu0 %v5638_v61  ;;  %v1123_v60 = vld [vmem:[%s6952_s14 + $0x990] sm:$0xff] }
 0x288   : > { %4280 = vmatprep.subr.bf16.mxu1 %v5766_v0  ;;  %v1127_v61 = vld [vmem:[%s6952_s14 + $0x9b0] sm:$0xff]  ;;  %v5853_v0 = vcombine.low %v1131_v40, %v1135_v55 }
 0x289   : > { %v5845_v4 = vcombine.low %v1123_v60, %v1127_v61  ;;  %v1239_v38 = vld [vmem:[%s6952_s14 + $0xd30] sm:$0xff] }
 0x28a   : > { %4240 = vmatpush2.bf16.msra.mxu0 %v5637_v6  ;;  %v5846_v6 = vcombine.high %v1123_v60, %v1127_v61  ;;  %v1099_v37 = vld [vmem:[%s6952_s14 + $0x8d0] sm:$0xff] }
 0x28b   : > { %4281 = vmatpush2.bf16.msra.mxu1 %v5765_v7  ;;  %4241 = vmatprep.subr.bf16.mxu0 %v5630_v8  ;;  %v1115_v7 = vld [vmem:[%s6952_s14 + $0x950] sm:$0xff] }
 0x28c   : > { %4282 = vmatprep.subr.bf16.mxu1 %v5758_v10  ;;  %v1119_v8 = vld [vmem:[%s6952_s14 + $0x970] sm:$0xff] }
 0x28d   : > { %v5838_v23 = vcombine.high %v1115_v7, %v1119_v8 }
 0x28e   : > { %4242 = vmatpush2.bf16.msra.mxu0 %v5629_v15 }
 0x28f   : > { %4283 = vmatpush2.bf16.msra.mxu1 %v5757_v16  ;;  %4243 = vmatprep.subr.bf16.mxu0 %v5622_v18 }
 0x290   : > { %4284 = vmatprep.subr.bf16.mxu1 %v5750_v20  ;;  %v5973_v20 = vcombine.low %v1251_v1, %v1255_v2  ;;  %v1091_v1 = vld [vmem:[%s6952_s14 + $0x890] sm:$0xff] }
 0x291   : > { %v1095_v2 = vld [vmem:[%s6952_s14 + $0x8b0] sm:$0xff] }
 0x292   : > { %4244 = vmatpush2.bf16.msra.mxu0 %v5621_v28  ;;  %v1111_v28 = vld [vmem:[%s6952_s14 + $0x930] sm:$0xff] }
 0x293   : > { %4285 = vmatpush2.bf16.msra.mxu1 %v5749_v30  ;;  %4245 = vmatprep.subr.bf16.mxu0 %v5614_v33  ;;  %v802_v30 = vld [vmem:[#allocation2] sm:$0xff] }
 0x294   : > { %4286 = vmatprep.subr.bf16.mxu1 %v5742_v34  ;;  %v1235_v34 = vld [vmem:[%s6952_s14 + $0xd10] sm:$0xff] }
 0x295   : > { %v5958_v56 = vcombine.high %v1235_v34, %v1239_v38  ;;  %v5957_v60 = vcombine.low %v1235_v34, %v1239_v38  ;;  %v1327_v34 = vld [vmem:[%s6952_s14 + $0xff0] sm:$0xff] }
 0x296   : > { %4246 = vmatpush2.bf16.msra.mxu0 %v5613_v52  ;;  %v5837_v52 = vcombine.low %v1115_v7, %v1119_v8  ;;  %v5814_v8 = vcombine.high %v1091_v1, %v1095_v2 }
 0x297   : > { %4287 = vmatpush2.bf16.msra.mxu1 %v5741_v53  ;;  %4247 = vmatprep.subr.bf16.mxu0 %v5606_v35  ;;  %v5965_v35 = vcombine.low %v1243_v12, %v1247_v13  ;;  %v1087_v12 = vld [vmem:[%s6952_s14 + $0x870] sm:$0xff] }
 0x298   : > { %4288 = vmatprep.subr.bf16.mxu1 %v5734_v36  ;;  %v5830_v36 = vcombine.high %v1107_v27, %v1111_v28  ;;  %v1211_v13 = vld [vmem:[%s6952_s14 + $0xc50] sm:$0xff] }
 0x29a   : > { %4248 = vmatpush2.bf16.msra.mxu0 %v5605_v39  ;;  %v1103_v39 = vld [vmem:[%s6952_s14 + $0x8f0] sm:$0xff] }
 0x29b   : > { %4289 = vmatpush2.bf16.msra.mxu1 %v5733_v41  ;;  %4299 = vmatprep.subr.bf16.mxu0 %v5854_v57  ;;  %v1227_v41 = vld [vmem:[%s6952_s14 + $0xcd0] sm:$0xff]  ;;  %v5822_v61 = vcombine.high %v1099_v37, %v1103_v39 }
 0x29c   : > { %4340 = vmatprep.subr.bf16.mxu1 %v5982_v59  ;;  %v1231_v57 = vld [vmem:[%s6952_s14 + $0xcf0] sm:$0xff]  ;;  %v5829_v59 = vcombine.low %v1107_v27, %v1111_v28 }
 0x29d   : > { %v4005_v10 = vpop.f32.mrf.mxu0  ;;  %4250 = vmatmul.mubr.bf16.vlgmr.msra.gmra.mxu0 %v7115_v21  ;;  %v5949_v7 = vcombine.low %v1227_v41, %v1231_v57  ;;  %v1195_v28 = vld [vmem:[%s6952_s14 + $0xbd0] sm:$0xff] }
 0x29e   : > { %v4006_v15 = vadd.f32 %v4005_v10, %v3965_v5  ;;  %v4046_v16 = vpop.f32.mrf.mxu1  ;;  %4291 = vmatmul.mubr.bf16.vlgmr.msra.gmra.mxu1 %v7121_v25  ;;  %4300 = vmatpush1.bf16.msra.mxu0 %v5853_v0  ;;  %v5950_v0 = vcombine.high %v1227_v41, %v1231_v57  ;;  %v1223_v5 = vld [vmem:[%s6952_s14 + $0xcb0] sm:$0xff] }
 0x29f   : > { %4331 = vmatprep.mubr.bf16.mxu0 %v7143_v58  ;;  %4341 = vmatpush1.bf16.msra.mxu1 %v5981_v46  ;;  %v4007_v18 = vpop.f32.mrf.mxu0  ;;  %v1219_v46 = vld [vmem:[%s6952_s14 + $0xc90] sm:$0xff] }
 0x2a0   : > { %v4047_v26 = vadd.f32 %v4046_v16, %v4006_v15  ;;  %4372 = vmatprep.mubr.bf16.mxu1 %v7145_v62  ;;  %v4008_v9 = vadd.f32 %v4007_v18, %v3967_v14  ;;  %v4048_v11 = vpop.f32.mrf.mxu1  ;;  %4301 = vmatprep.subr.bf16.mxu0 %v5846_v6  ;;  %v5821_v6 = vcombine.low %v1099_v37, %v1103_v39  ;;  %v1215_v14 = vld [vmem:[%s6952_s14 + $0xc70] sm:$0xff] }
 0x2a1   : > { %v4009_v33 = vpop.f32.mrf.mxu0  ;;  %4342 = vmatprep.subr.bf16.mxu1 %v5974_v24  ;;  %v5942_v10 = vcombine.high %v1219_v46, %v1223_v5  ;;  %v1083_v24 = vld [vmem:[%s6952_s14 + $0x850] sm:$0xff]  ;;  %v5813_v15 = vcombine.low %v1091_v1, %v1095_v2  ;;  %v5941_v16 = vcombine.low %v1219_v46, %v1223_v5 }
 0x2a2   : > { %v4545_v43 = vadd.f32 %v4047_v26, %v801_v19  ;;  %v4049_v50 = vadd.f32 %v4048_v11, %v4008_v9  ;;  %v4050_v51 = vpop.f32.mrf.mxu1  ;;  %4302 = vmatpush1.bf16.msra.mxu0 %v5845_v4  ;;  %v5806_v4 = vcombine.high %v1083_v24, %v1087_v12  ;;  %v5934_v19 = vcombine.high %v1211_v13, %v1215_v14  ;;  %v1075_v18 = vld [vmem:[%s6952_s14 + $0x810] sm:$0xff] }
 0x2a3   : > { %4343 = vmatpush1.bf16.msra.mxu1 %v5973_v20  ;;  %v4010_v53 = vpop.f32.mrf.mxu0  ;;  %4303 = vmatprep.subr.bf16.mxu0 %v5838_v23  ;;  %v1079_v20 = vld [vmem:[%s6952_s14 + $0x830] sm:$0xff]  ;;  %v5805_v9 = vcombine.low %v1083_v24, %v1087_v12  ;;  %v5933_v11 = vcombine.low %v1211_v13, %v1215_v14 }
 0x2a4   : > { %4553 = vst [vmem:[#allocation2 + $0x30] sm:$0xff] %v4545_v43  ;;  %v4546_v40 = vadd.f32 %v4049_v50, %v802_v30  ;;  %v4051_v55 = vpop.f32.mrf.mxu1  ;;  %4344 = vmatprep.subr.bf16.mxu1 %v5966_v54  ;;  %v1203_v23 = vld [vmem:[%s6952_s14 + $0xc10] sm:$0xff]  ;;  %v5798_v54 = vcombine.high %v1075_v18, %v1079_v20  ;;  %v5797_v38 = vcombine.low %v1075_v18, %v1079_v20 }
 0x2a5   : > { %v1207_v26 = vld [vmem:[%s6952_s14 + $0xc30] sm:$0xff] }
 0x2a6   : > { %4554 = vst [vmem:[#allocation2] sm:$0xff] %v4546_v40  ;;  %4304 = vmatpush1.bf16.msra.mxu0 %v5837_v52  ;;  %v5926_v27 = vcombine.high %v1203_v23, %v1207_v26  ;;  %v1199_v30 = vld [vmem:[%s6952_s14 + $0xbf0] sm:$0xff]  ;;  %v5925_v43 = vcombine.low %v1203_v23, %v1207_v26 }
 0x2a7   : > { %4345 = vmatpush1.bf16.msra.mxu1 %v5965_v35  ;;  %4305 = vmatprep.subr.bf16.mxu0 %v5830_v36  ;;  %v1323_v33 = vld [vmem:[%s6952_s14 + $0xfd0] sm:$0xff]  ;;  %v5918_v50 = vcombine.high %v1195_v28, %v1199_v30  ;;  %v5917_v40 = vcombine.low %v1195_v28, %v1199_v30 }
 0x2a8   : > { %4346 = vmatprep.subr.bf16.mxu1 %v5958_v56  ;;  %v6046_v51 = vcombine.high %v1323_v33, %v1327_v34  ;;  %v1187_v52 = vld [vmem:[%s6952_s14 + $0xb90] sm:$0xff]  ;;  %v6045_v55 = vcombine.low %v1323_v33, %v1327_v34 }
 0x2a9   : > { %v1191_v53 = vld [vmem:[%s6952_s14 + $0xbb0] sm:$0xff] }
 0x2aa   : > { %4306 = vmatpush1.bf16.msra.mxu0 %v5829_v59  ;;  %v1315_v35 = vld [vmem:[%s6952_s14 + $0xf90] sm:$0xff]  ;;  %v5910_v56 = vcombine.high %v1187_v52, %v1191_v53 }
 0x2ab   : > { %4347 = vmatpush1.bf16.msra.mxu1 %v5957_v60  ;;  %4307 = vmatprep.subr.bf16.mxu0 %v5822_v61  ;;  %v1319_v36 = vld [vmem:[%s6952_s14 + $0xfb0] sm:$0xff]  ;;  %v5909_v60 = vcombine.low %v1187_v52, %v1191_v53 }
 0x2ac   : > { %4348 = vmatprep.subr.bf16.mxu1 %v5950_v0  ;;  %v6038_v37 = vcombine.high %v1315_v35, %v1319_v36  ;;  %v1179_v39 = vld [vmem:[%s6952_s14 + $0xb50] sm:$0xff]  ;;  %v6037_v61 = vcombine.low %v1315_v35, %v1319_v36 }
 0x2ad   : > { %v1183_v41 = vld [vmem:[%s6952_s14 + $0xb70] sm:$0xff] }
 0x2ae   : > { %4308 = vmatpush1.bf16.msra.mxu0 %v5821_v6  ;;  %v1307_v57 = vld [vmem:[%s6952_s14 + $0xf50] sm:$0xff]  ;;  %v5902_v0 = vcombine.high %v1179_v39, %v1183_v41 }
 0x2af   : > { %4349 = vmatpush1.bf16.msra.mxu1 %v5949_v7  ;;  %4309 = vmatprep.subr.bf16.mxu0 %v5814_v8  ;;  %v1311_v59 = vld [vmem:[%s6952_s14 + $0xf70] sm:$0xff]  ;;  %v5901_v7 = vcombine.low %v1179_v39, %v1183_v41  ;;  %v876_v41 = vld [vmem:[%s6952_s14 + $0x1d8] sm:$0xff] }
 0x2b0   : > { %4350 = vmatprep.subr.bf16.mxu1 %v5942_v10  ;;  %v6030_v1 = vcombine.high %v1307_v57, %v1311_v59  ;;  %v1171_v2 = vld [vmem:[%s6952_s14 + $0xb10] sm:$0xff]  ;;  %v6029_v8 = vcombine.low %v1307_v57, %v1311_v59  ;;  %v880_v57 = vld [vmem:[%s6952_s14 + $0x1f8] sm:$0xff] }
 0x2b1   : > { %v1175_v46 = vld [vmem:[%s6952_s14 + $0xb30] sm:$0xff]  ;;  %v1004_v59 = vld [vmem:[%s6952_s14 + $0x5d8] sm:$0xff] }
 0x2b2   : > { %4310 = vmatpush1.bf16.msra.mxu0 %v5813_v15  ;;  %v1299_v5 = vld [vmem:[%s6952_s14 + $0xf10] sm:$0xff]  ;;  %v5894_v10 = vcombine.high %v1171_v2, %v1175_v46 }
 0x2b3   : > { %4351 = vmatpush1.bf16.msra.mxu1 %v5941_v16  ;;  %4311 = vmatprep.subr.bf16.mxu0 %v5806_v4  ;;  %v1303_v6 = vld [vmem:[%s6952_s14 + $0xf30] sm:$0xff]  ;;  %v5893_v16 = vcombine.low %v1171_v2, %v1175_v46  ;;  %v868_v46 = vld [vmem:[%s6952_s14 + $0x198] sm:$0xff] }
 0x2b4   : > { %4352 = vmatprep.subr.bf16.mxu1 %v5934_v19  ;;  %v6022_v24 = vcombine.high %v1299_v5, %v1303_v6  ;;  %v1163_v12 = vld [vmem:[%s6952_s14 + $0xad0] sm:$0xff]  ;;  %v6021_v4 = vcombine.low %v1299_v5, %v1303_v6  ;;  %v872_v5 = vld [vmem:[%s6952_s14 + $0x1b8] sm:$0xff]  ;;  %v5599_v6 = vcombine.low %v876_v41, %v880_v57 }
 0x2b5   : > { %v1167_v13 = vld [vmem:[%s6952_s14 + $0xaf0] sm:$0xff] }
 0x2b6   : > { %4312 = vmatpush1.bf16.msra.mxu0 %v5805_v9  ;;  %v1291_v14 = vld [vmem:[%s6952_s14 + $0xed0] sm:$0xff]  ;;  %v5886_v19 = vcombine.high %v1163_v12, %v1167_v13 }
 0x2b7   : > { %4353 = vmatpush1.bf16.msra.mxu1 %v5933_v11  ;;  %4313 = vmatprep.subr.bf16.mxu0 %v5798_v54  ;;  %v1295_v15 = vld [vmem:[%s6952_s14 + $0xef0] sm:$0xff]  ;;  %v5885_v11 = vcombine.low %v1163_v12, %v1167_v13  ;;  %v860_v12 = vld [vmem:[%s6952_s14 + $0x158] sm:$0xff] }
 0x2b8   : > { %4354 = vmatprep.subr.bf16.mxu1 %v5926_v27  ;;  %v6014_v18 = vcombine.high %v1291_v14, %v1295_v15  ;;  %v1155_v20 = vld [vmem:[%s6952_s14 + $0xa90] sm:$0xff]  ;;  %v6013_v54 = vcombine.low %v1291_v14, %v1295_v15  ;;  %v864_v13 = vld [vmem:[%s6952_s14 + $0x178] sm:$0xff] }
 0x2b9   : > { %v1159_v23 = vld [vmem:[%s6952_s14 + $0xab0] sm:$0xff] }
 0x2ba   : > { %4314 = vmatpush1.bf16.msra.mxu0 %v5797_v38  ;;  %v1283_v26 = vld [vmem:[%s6952_s14 + $0xe90] sm:$0xff]  ;;  %v5878_v27 = vcombine.high %v1155_v20, %v1159_v23 }
 0x2bb   : > { %4355 = vmatpush1.bf16.msra.mxu1 %v5925_v43  ;;  %4315 = vmatprep.subr.bf16.mxu0 %v5918_v50  ;;  %v1287_v9 = vld [vmem:[%s6952_s14 + $0xeb0] sm:$0xff]  ;;  %v5877_v43 = vcombine.low %v1155_v20, %v1159_v23 }
 0x2bc   : > { %4356 = vmatprep.subr.bf16.mxu1 %v6046_v51  ;;  %v6006_v28 = vcombine.high %v1283_v26, %v1287_v9  ;;  %v1147_v30 = vld [vmem:[%s6952_s14 + $0xa50] sm:$0xff]  ;;  %v6005_v50 = vcombine.low %v1283_v26, %v1287_v9  ;;  %v5584_v26 = vcombine.high %v860_v12, %v864_v13 }
 0x2bd   : > { %v1151_v33 = vld [vmem:[%s6952_s14 + $0xa70] sm:$0xff] }
 0x2be   : > { %4316 = vmatpush2.bf16.msra.mxu0 %v5917_v40  ;;  %v1275_v34 = vld [vmem:[%s6952_s14 + $0xe50] sm:$0xff]  ;;  %v5870_v51 = vcombine.high %v1147_v30, %v1151_v33 }
 0x2bf   : > { %4357 = vmatpush2.bf16.msra.mxu1 %v6045_v55  ;;  %4317 = vmatprep.subr.bf16.mxu0 %v5910_v56  ;;  %v1279_v38 = vld [vmem:[%s6952_s14 + $0xe70] sm:$0xff]  ;;  %v5869_v55 = vcombine.low %v1147_v30, %v1151_v33  ;;  %v980_v30 = vld [vmem:[%s6952_s14 + $0x518] sm:$0xff] }
 0x2c0   : > { %4358 = vmatprep.subr.bf16.mxu1 %v6038_v37  ;;  %v5998_v52 = vcombine.high %v1275_v34, %v1279_v38  ;;  %v1139_v53 = vld [vmem:[%s6952_s14 + $0xa10] sm:$0xff]  ;;  %v5997_v56 = vcombine.low %v1275_v34, %v1279_v38  ;;  %v5583_v34 = vcombine.low %v860_v12, %v864_v13  ;;  %v820_v12 = vld [vmem:[%s6952_s14 + $0x18] sm:$0xff] }
 0x2c1   : > { %v1143_v35 = vld [vmem:[%s6952_s14 + $0xa30] sm:$0xff]  ;;  %v824_v13 = vld [vmem:[%s6952_s14 + $0x38] sm:$0xff] }
 0x2c2   : > { %4318 = vmatpush2.bf16.msra.mxu0 %v5909_v60  ;;  %v1267_v36 = vld [vmem:[%s6952_s14 + $0xe10] sm:$0xff]  ;;  %v5862_v37 = vcombine.high %v1139_v53, %v1143_v35  ;;  %v1008_v60 = vld [vmem:[%s6952_s14 + $0x5f8] sm:$0xff] }
 0x2c3   : > { %4359 = vmatpush2.bf16.msra.mxu1 %v6037_v61  ;;  %4319 = vmatprep.subr.bf16.mxu0 %v5902_v0  ;;  %v1271_v40 = vld [vmem:[%s6952_s14 + $0xe30] sm:$0xff]  ;;  %v5861_v61 = vcombine.low %v1139_v53, %v1143_v35  ;;  %v5728_v2 = vcombine.high %v1004_v59, %v1008_v60  ;;  %v848_v53 = vld [vmem:[%s6952_s14 + $0xf8] sm:$0xff] }
 0x2c4   : > { %4360 = vmatprep.subr.bf16.mxu1 %v6030_v1  ;;  %v5990_v39 = vcombine.high %v1267_v36, %v1271_v40  ;;  %v5989_v0 = vcombine.low %v1267_v36, %v1271_v40  ;;  %v5600_v1 = vcombine.high %v876_v41, %v880_v57  ;;  %v972_v35 = vld [vmem:[%s6952_s14 + $0x4d8] sm:$0xff] }
 0x2c5   : > { %v976_v36 = vld [vmem:[%s6952_s14 + $0x4f8] sm:$0xff] }
 0x2c6   : > { %4320 = vmatpush2.bf16.msra.mxu0 %v5901_v7  ;;  %v996_v7 = vld [vmem:[%s6952_s14 + $0x598] sm:$0xff] }
 0x2c7   : > { %4361 = vmatpush2.bf16.msra.mxu1 %v6029_v8  ;;  %4321 = vmatprep.subr.bf16.mxu0 %v5894_v10  ;;  %v1000_v8 = vld [vmem:[%s6952_s14 + $0x5b8] sm:$0xff]  ;;  %v5727_v10 = vcombine.low %v1004_v59, %v1008_v60 }
 0x2c8   : > { %4362 = vmatprep.subr.bf16.mxu1 %v6022_v24  ;;  %v5592_v24 = vcombine.high %v868_v46, %v872_v5  ;;  %v5720_v15 = vcombine.high %v996_v7, %v1000_v8  ;;  %v5719_v23 = vcombine.low %v996_v7, %v1000_v8  ;;  %v840_v41 = vld [vmem:[%s6952_s14 + $0xb8] sm:$0xff] }
 0x2c9   : > { %v964_v57 = vld [vmem:[%s6952_s14 + $0x498] sm:$0xff] }
 0x2ca   : > { %4322 = vmatpush2.bf16.msra.mxu0 %v5893_v16  ;;  %v988_v16 = vld [vmem:[%s6952_s14 + $0x558] sm:$0xff] }
 0x2cb   : > { %4363 = vmatpush2.bf16.msra.mxu1 %v6021_v4  ;;  %4323 = vmatprep.subr.bf16.mxu0 %v5886_v19  ;;  %v992_v4 = vld [vmem:[%s6952_s14 + $0x578] sm:$0xff] }
 0x2cc   : > { %4364 = vmatprep.subr.bf16.mxu1 %v6014_v18  ;;  %v5591_v18 = vcombine.low %v868_v46, %v872_v5  ;;  %v968_v59 = vld [vmem:[%s6952_s14 + $0x4b8] sm:$0xff] }
 0x2cd   : > { %v832_v46 = vld [vmem:[%s6952_s14 + $0x78] sm:$0xff]  ;;  %v5687_v8 = vcombine.low %v964_v57, %v968_v59 }
 0x2ce   : > { %4324 = vmatpush2.bf16.msra.mxu0 %v5885_v11  ;;  %v5712_v11 = vcombine.high %v988_v16, %v992_v4  ;;  %v956_v5 = vld [vmem:[%s6952_s14 + $0x458] sm:$0xff] }
 0x2cf   : > { %4365 = vmatpush2.bf16.msra.mxu1 %v6013_v54  ;;  %4325 = vmatprep.subr.bf16.mxu0 %v5878_v27  ;;  %v852_v54 = vld [vmem:[%s6952_s14 + $0x118] sm:$0xff] }
 0x2d0   : > { %4366 = vmatprep.subr.bf16.mxu1 %v6006_v28  ;;  %v856_v27 = vld [vmem:[%s6952_s14 + $0x138] sm:$0xff] }
 0x2d1   : > { %v5575_v40 = vcombine.low %v852_v54, %v856_v27 }
 0x2d2   : > { %4326 = vmatpush2.bf16.msra.mxu0 %v5877_v43  ;;  %v5576_v43 = vcombine.high %v852_v54, %v856_v27  ;;  %v944_v54 = vld [vmem:[%s6952_s14 + $0x3f8] sm:$0xff] }
 0x2d3   : > { %4367 = vmatpush2.bf16.msra.mxu1 %v6005_v50  ;;  %4327 = vmatprep.subr.bf16.mxu0 %v5870_v51  ;;  %v1068_v27 = vld [vmem:[%s6952_s14 + $0x7d8] sm:$0xff] }
 0x2d4   : > { %4368 = vmatprep.subr.bf16.mxu1 %v5998_v52  ;;  %v844_v52 = vld [vmem:[%s6952_s14 + $0xd8] sm:$0xff] }
 0x2d5   : > { %v5567_v60 = vcombine.low %v844_v52, %v848_v53 }
 0x2d6   : > { %4328 = vmatpush2.bf16.msra.mxu0 %v5869_v55 }
 0x2d7   : > { %4369 = vmatpush2.bf16.msra.mxu1 %v5997_v56  ;;  %4329 = vmatprep.subr.bf16.mxu0 %v5862_v37  ;;  %v5568_v56 = vcombine.high %v844_v52, %v848_v53  ;;  %v5696_v37 = vcombine.high %v972_v35, %v976_v36 }
 0x2d8   : > { %4370 = vmatprep.subr.bf16.mxu1 %v5990_v39  ;;  %v836_v39 = vld [vmem:[%s6952_s14 + $0x98] sm:$0xff] }
 0x2d9   : > { %v5559_v7 = vcombine.low %v836_v39, %v840_v41 }
 0x2da   : > { %4330 = vmatpush2.bf16.msra.mxu0 %v5861_v61  ;;  %v5695_v61 = vcombine.low %v972_v35, %v976_v36  ;;  %v924_v36 = vld [vmem:[%s6952_s14 + $0x358] sm:$0xff] }
 0x2db   : > { %4371 = vmatpush2.bf16.msra.mxu1 %v5989_v0  ;;  %4381 = vmatprep.subr.bf16.mxu0 %v5600_v1  ;;  %v5560_v0 = vcombine.high %v836_v39, %v840_v41  ;;  %v5688_v1 = vcombine.high %v964_v57, %v968_v59  ;;  %v916_v59 = vld [vmem:[%s6952_s14 + $0x318] sm:$0xff] }
 0x2dc   : > { %4422 = vmatprep.subr.bf16.mxu1 %v5728_v2  ;;  %v828_v2 = vld [vmem:[%s6952_s14 + $0x58] sm:$0xff] }
 0x2dd   : > { %v7507_v14 = vpop.f32.mrf.mxu0  ;;  %4332 = vmatmul.mubr.bf16.vlgmr.msra.gmra.mxu0 %v7217_v29 }
 0x2de   : > { %v7512_v19 = vpop.f32.mrf.mxu1  ;;  %4373 = vmatmul.mubr.bf16.vlgmr.msra.gmra.mxu1 %v7219_v31  ;;  %4382 = vmatpush1.bf16.msra.mxu0 %v5599_v6  ;;  %v960_v6 = vld [vmem:[%s6952_s14 + $0x478] sm:$0xff] }
 0x2df   : > { %4413 = vmatprep.mubr.bf16.mxu0 %v7108_v17  ;;  %4423 = vmatpush1.bf16.msra.mxu1 %v5727_v10  ;;  %v7516_v20 = vpop.f32.mrf.mxu0  ;;  %v984_v17 = vld [vmem:[%s6952_s14 + $0x538] sm:$0xff]  ;;  %v5552_v10 = vcombine.high %v828_v2, %v832_v46 }
 0x2e0   : > { %4454 = vmatprep.mubr.bf16.mxu1 %v7117_v22  ;;  %v7519_v9 = vpop.f32.mrf.mxu1  ;;  %4383 = vmatprep.subr.bf16.mxu0 %v5592_v24  ;;  %v5711_v22 = vcombine.low %v988_v16, %v992_v4  ;;  %v5704_v51 = vcombine.high %v980_v30, %v984_v17  ;;  %v5703_v55 = vcombine.low %v980_v30, %v984_v17  ;;  %v952_v16 = vld [vmem:[%s6952_s14 + $0x438] sm:$0xff] }
 0x2e1   : > { %v4091_v28 = vpop.f32.mrf.mxu0  ;;  %4424 = vmatprep.subr.bf16.mxu1 %v5720_v15  ;;  %v5680_v24 = vcombine.high %v956_v5, %v960_v6  ;;  %v948_v15 = vld [vmem:[%s6952_s14 + $0x418] sm:$0xff]  ;;  %v5551_v4 = vcombine.low %v828_v2, %v832_v46  ;;  %v5543_v30 = vcombine.low %v820_v12, %v824_v13 }
 0x2e2   : > { %v4132_v33 = vpop.f32.mrf.mxu1  ;;  %4384 = vmatpush1.bf16.msra.mxu0 %v5591_v18  ;;  %v5679_v18 = vcombine.low %v956_v5, %v960_v6  ;;  %v1072_v28 = vld [vmem:[%s6952_s14 + $0x7f8] sm:$0xff]  ;;  %v5671_v17 = vcombine.low %v948_v15, %v952_v16 }
 0x2e3   : > { %4425 = vmatpush1.bf16.msra.mxu1 %v5719_v23  ;;  %v4092_v38 = vpop.f32.mrf.mxu0  ;;  %4385 = vmatprep.subr.bf16.mxu0 %v5584_v26  ;;  %v5544_v23 = vcombine.high %v820_v12, %v824_v13  ;;  %v5672_v26 = vcombine.high %v948_v15, %v952_v16  ;;  %v5791_v52 = vcombine.low %v1068_v27, %v1072_v28  ;;  %v908_v6 = vld [vmem:[%s6952_s14 + $0x2d8] sm:$0xff] }
 0x2e4   : > { %v4133_v50 = vpop.f32.mrf.mxu1  ;;  %4426 = vmatprep.subr.bf16.mxu1 %v5712_v11  ;;  %v940_v11 = vld [vmem:[%s6952_s14 + $0x3d8] sm:$0xff] }
 0x2e5   : > { %v5664_v33 = vcombine.high %v940_v11, %v944_v54  ;;  %v932_v38 = vld [vmem:[%s6952_s14 + $0x398] sm:$0xff] }
 0x2e6   : > { %4386 = vmatpush1.bf16.msra.mxu0 %v5583_v34  ;;  %v5792_v34 = vcombine.high %v1068_v27, %v1072_v28  ;;  %v1064_v50 = vld [vmem:[%s6952_s14 + $0x7b8] sm:$0xff] }
 0x2e7   : > { %4427 = vmatpush1.bf16.msra.mxu1 %v5711_v22  ;;  %4387 = vmatprep.subr.bf16.mxu0 %v5576_v43  ;;  %v936_v22 = vld [vmem:[%s6952_s14 + $0x3b8] sm:$0xff] }
 0x2e8   : > { %4428 = vmatprep.subr.bf16.mxu1 %v5704_v51  ;;  %v1060_v43 = vld [vmem:[%s6952_s14 + $0x798] sm:$0xff]  ;;  %v5663_v51 = vcombine.low %v940_v11, %v944_v54  ;;  %v5656_v53 = vcombine.high %v932_v38, %v936_v22 }
 0x2e9   : > { %v5784_v35 = vcombine.high %v1060_v43, %v1064_v50  ;;  %v5783_v39 = vcombine.low %v1060_v43, %v1064_v50  ;;  %v900_v16 = vld [vmem:[%s6952_s14 + $0x298] sm:$0xff] }
 0x2ea   : > { %4388 = vmatpush1.bf16.msra.mxu0 %v5575_v40  ;;  %v928_v40 = vld [vmem:[%s6952_s14 + $0x378] sm:$0xff] }
 0x2eb   : > { %4429 = vmatpush1.bf16.msra.mxu1 %v5703_v55  ;;  %4389 = vmatprep.subr.bf16.mxu0 %v5568_v56  ;;  %v1052_v55 = vld [vmem:[%s6952_s14 + $0x758] sm:$0xff]  ;;  %v5648_v41 = vcombine.high %v924_v36, %v928_v40 }
 0x2ec   : > { %4430 = vmatprep.subr.bf16.mxu1 %v5696_v37  ;;  %v1056_v56 = vld [vmem:[%s6952_s14 + $0x778] sm:$0xff]  ;;  %v5655_v37 = vcombine.low %v932_v38, %v936_v22 }
 0x2ed   : > { %v5776_v57 = vcombine.high %v1052_v55, %v1056_v56  ;;  %v5775_v2 = vcombine.low %v1052_v55, %v1056_v56  ;;  %v892_v28 = vld [vmem:[%s6952_s14 + $0x258] sm:$0xff] }
 0x2ee   : > { %4390 = vmatpush1.bf16.msra.mxu0 %v5567_v60  ;;  %v920_v60 = vld [vmem:[%s6952_s14 + $0x338] sm:$0xff] }
 0x2ef   : > { %4431 = vmatpush1.bf16.msra.mxu1 %v5695_v61  ;;  %4391 = vmatprep.subr.bf16.mxu0 %v5560_v0  ;;  %v1044_v61 = vld [vmem:[%s6952_s14 + $0x718] sm:$0xff]  ;;  %v5640_v46 = vcombine.high %v916_v59, %v920_v60 }
 0x2f0   : > { %4432 = vmatprep.subr.bf16.mxu1 %v5688_v1  ;;  %v1048_v0 = vld [vmem:[%s6952_s14 + $0x738] sm:$0xff]  ;;  %v5647_v1 = vcombine.low %v924_v36, %v928_v40 }
 0x2f1   : > { %v5768_v5 = vcombine.high %v1044_v61, %v1048_v0  ;;  %v5767_v12 = vcombine.low %v1044_v61, %v1048_v0  ;;  %v884_v50 = vld [vmem:[%s6952_s14 + $0x218] sm:$0xff] }
 0x2f2   : > { %4392 = vmatpush1.bf16.msra.mxu0 %v5559_v7  ;;  %v912_v7 = vld [vmem:[%s6952_s14 + $0x2f8] sm:$0xff] }
 0x2f3   : > { %4433 = vmatpush1.bf16.msra.mxu1 %v5687_v8  ;;  %4393 = vmatprep.subr.bf16.mxu0 %v5552_v10  ;;  %v1036_v8 = vld [vmem:[%s6952_s14 + $0x6d8] sm:$0xff]  ;;  %v5632_v13 = vcombine.high %v908_v6, %v912_v7 }
 0x2f4   : > { %4434 = vmatprep.subr.bf16.mxu1 %v5680_v24  ;;  %v1040_v10 = vld [vmem:[%s6952_s14 + $0x6f8] sm:$0xff]  ;;  %v5639_v24 = vcombine.low %v916_v59, %v920_v60 }
 0x2f5   : > { %v5760_v15 = vcombine.high %v1036_v8, %v1040_v10  ;;  %v5759_v11 = vcombine.low %v1036_v8, %v1040_v10  ;;  %v1132_v56 = vld [vmem:[%s6952_s14 + $0x9d8] sm:$0xff] }
 0x2f6   : > { %4394 = vmatpush1.bf16.msra.mxu0 %v5551_v4  ;;  %v904_v4 = vld [vmem:[%s6952_s14 + $0x2b8] sm:$0xff] }
 0x2f7   : > { %4435 = vmatpush1.bf16.msra.mxu1 %v5679_v18  ;;  %4395 = vmatprep.subr.bf16.mxu0 %v5544_v23  ;;  %v1028_v18 = vld [vmem:[%s6952_s14 + $0x698] sm:$0xff]  ;;  %v5624_v54 = vcombine.high %v900_v16, %v904_v4 }
 0x2f8   : > { %4436 = vmatprep.subr.bf16.mxu1 %v5672_v26  ;;  %v1032_v23 = vld [vmem:[%s6952_s14 + $0x6b8] sm:$0xff]  ;;  %v5631_v26 = vcombine.low %v908_v6, %v912_v7  ;;  %v4129_v7 = vadd.f32 %v7512_v19, %v7507_v14  ;;  %v803_v19 = vld [vmem:[#allocation2 + $0x18] sm:$0xff] }
 0x2f9   : > { %v5752_v27 = vcombine.high %v1028_v18, %v1032_v23  ;;  %v5751_v38 = vcombine.low %v1028_v18, %v1032_v23  ;;  %v1124_v0 = vld [vmem:[%s6952_s14 + $0x998] sm:$0xff] }
 0x2fa   : > { %4396 = vmatpush1.bf16.msra.mxu0 %v5543_v30  ;;  %v896_v30 = vld [vmem:[%s6952_s14 + $0x278] sm:$0xff] }
 0x2fb   : > { %4437 = vmatpush1.bf16.msra.mxu1 %v5671_v17  ;;  %4397 = vmatprep.subr.bf16.mxu0 %v5664_v33  ;;  %v1020_v17 = vld [vmem:[%s6952_s14 + $0x658] sm:$0xff]  ;;  %v5616_v22 = vcombine.high %v892_v28, %v896_v30 }
 0x2fc   : > { %4438 = vmatprep.subr.bf16.mxu1 %v5792_v34  ;;  %v1024_v33 = vld [vmem:[%s6952_s14 + $0x678] sm:$0xff]  ;;  %v5623_v34 = vcombine.low %v900_v16, %v904_v4  ;;  %v4131_v4 = vadd.f32 %v7519_v9, %v7516_v20 }
 0x2fd   : > { %v5744_v43 = vcombine.high %v1020_v17, %v1024_v33  ;;  %v5743_v36 = vcombine.low %v1020_v17, %v1024_v33  ;;  %v1116_v10 = vld [vmem:[%s6952_s14 + $0x958] sm:$0xff] }
 0x2fe   : > { %4398 = vmatpush2.bf16.msra.mxu0 %v5663_v51  ;;  %v888_v51 = vld [vmem:[%s6952_s14 + $0x238] sm:$0xff] }
 0x2ff   : > { %4439 = vmatpush2.bf16.msra.mxu1 %v5791_v52  ;;  %4399 = vmatprep.subr.bf16.mxu0 %v5656_v53  ;;  %v1012_v52 = vld [vmem:[%s6952_s14 + $0x618] sm:$0xff]  ;;  %v5608_v40 = vcombine.high %v884_v50, %v888_v51 }
 0x300   : > { %4440 = vmatprep.subr.bf16.mxu1 %v5784_v35  ;;  %v1016_v53 = vld [vmem:[%s6952_s14 + $0x638] sm:$0xff]  ;;  %v5615_v35 = vcombine.low %v892_v28, %v896_v30 }
 0x301   : > { %v5736_v55 = vcombine.high %v1012_v52, %v1016_v53  ;;  %v5735_v59 = vcombine.low %v1012_v52, %v1016_v53  ;;  %v1248_v16 = vld [vmem:[%s6952_s14 + $0xd78] sm:$0xff] }
 0x302   : > { %4400 = vmatpush2.bf16.msra.mxu0 %v5655_v37  ;;  %v1136_v37 = vld [vmem:[%s6952_s14 + $0x9f8] sm:$0xff] }
 0x303   : > { %4441 = vmatpush2.bf16.msra.mxu1 %v5783_v39  ;;  %4401 = vmatprep.subr.bf16.mxu0 %v5648_v41  ;;  %v1260_v39 = vld [vmem:[%s6952_s14 + $0xdd8] sm:$0xff]  ;;  %v5856_v60 = vcombine.high %v1132_v56, %v1136_v37 }
 0x304   : > { %4442 = vmatprep.subr.bf16.mxu1 %v5776_v57  ;;  %v1264_v41 = vld [vmem:[%s6952_s14 + $0xdf8] sm:$0xff]  ;;  %v5607_v57 = vcombine.low %v884_v50, %v888_v51 }
 0x305   : > { %v5984_v61 = vcombine.high %v1260_v39, %v1264_v41  ;;  %v5983_v6 = vcombine.low %v1260_v39, %v1264_v41  ;;  %v1112_v28 = vld [vmem:[%s6952_s14 + $0x938] sm:$0xff] }
 0x306   : > { %4402 = vmatpush2.bf16.msra.mxu0 %v5647_v1  ;;  %v1128_v1 = vld [vmem:[%s6952_s14 + $0x9b8] sm:$0xff] }
 0x307   : > { %4443 = vmatpush2.bf16.msra.mxu1 %v5775_v2  ;;  %4403 = vmatprep.subr.bf16.mxu0 %v5640_v46  ;;  %v5855_v2 = vcombine.low %v1132_v56, %v1136_v37  ;;  %v1252_v46 = vld [vmem:[%s6952_s14 + $0xd98] sm:$0xff]  ;;  %v5848_v8 = vcombine.high %v1124_v0, %v1128_v1  ;;  %v5847_v14 = vcombine.low %v1124_v0, %v1128_v1 }
 0x308   : > { %4444 = vmatprep.subr.bf16.mxu1 %v5768_v5  ;;  %v1256_v5 = vld [vmem:[%s6952_s14 + $0xdb8] sm:$0xff] }
 0x309   : > { %v804_v30 = vld [vmem:[#allocation2 + $0x10] sm:$0xff] }
 0x30a   : > { %4404 = vmatpush2.bf16.msra.mxu0 %v5639_v24  ;;  %v1120_v24 = vld [vmem:[%s6952_s14 + $0x978] sm:$0xff] }
 0x30b   : > { %4445 = vmatpush2.bf16.msra.mxu1 %v5767_v12  ;;  %4405 = vmatprep.subr.bf16.mxu0 %v5632_v13  ;;  %v5976_v13 = vcombine.high %v1252_v46, %v1256_v5  ;;  %v1236_v33 = vld [vmem:[%s6952_s14 + $0xd18] sm:$0xff] }
 0x30c   : > { %4446 = vmatprep.subr.bf16.mxu1 %v5760_v15  ;;  %v1244_v15 = vld [vmem:[%s6952_s14 + $0xd58] sm:$0xff] }
 0x30d   : > { %v5967_v50 = vcombine.low %v1244_v15, %v1248_v16  ;;  %v1232_v56 = vld [vmem:[%s6952_s14 + $0xcf8] sm:$0xff] }
 0x30e   : > { %4406 = vmatpush2.bf16.msra.mxu0 %v5631_v26  ;;  %v5975_v26 = vcombine.low %v1252_v46, %v1256_v5  ;;  %v1224_v0 = vld [vmem:[%s6952_s14 + $0xcb8] sm:$0xff] }
 0x30f   : > { %4447 = vmatpush2.bf16.msra.mxu1 %v5759_v11  ;;  %4407 = vmatprep.subr.bf16.mxu0 %v5624_v54  ;;  %v5840_v11 = vcombine.high %v1116_v10, %v1120_v24 }
 0x310   : > { %4448 = vmatprep.subr.bf16.mxu1 %v5752_v27  ;;  %v5968_v27 = vcombine.high %v1244_v15, %v1248_v16  ;;  %v1076_v16 = vld [vmem:[%s6952_s14 + $0x818] sm:$0xff] }
 0x312   : > { %4408 = vmatpush2.bf16.msra.mxu0 %v5623_v34 }
 0x313   : > { %4449 = vmatpush2.bf16.msra.mxu1 %v5751_v38  ;;  %4409 = vmatprep.subr.bf16.mxu0 %v5616_v22 }
 0x314   : > { %4450 = vmatprep.subr.bf16.mxu1 %v5744_v43 }
 0x316   : > { %4410 = vmatpush2.bf16.msra.mxu0 %v5615_v35 }
 0x317   : > { %4451 = vmatpush2.bf16.msra.mxu1 %v5743_v36  ;;  %4411 = vmatprep.subr.bf16.mxu0 %v5608_v40  ;;  %v1100_v36 = vld [vmem:[%s6952_s14 + $0x8d8] sm:$0xff] }
 0x318   : > { %4452 = vmatprep.subr.bf16.mxu1 %v5736_v55  ;;  %v1104_v40 = vld [vmem:[%s6952_s14 + $0x8f8] sm:$0xff] }
 0x319   : > { %v1228_v55 = vld [vmem:[%s6952_s14 + $0xcd8] sm:$0xff]  ;;  %v5824_v41 = vcombine.high %v1100_v36, %v1104_v40  ;;  %v5823_v1 = vcombine.low %v1100_v36, %v1104_v40 }
 0x31a   : > { %4412 = vmatpush2.bf16.msra.mxu0 %v5607_v57  ;;  %v5952_v57 = vcombine.high %v1228_v55, %v1232_v56 }
 0x31b   : > { %4453 = vmatpush2.bf16.msra.mxu1 %v5735_v59  ;;  %4463 = vmatprep.subr.bf16.mxu0 %v5856_v60  ;;  %v1092_v59 = vld [vmem:[%s6952_s14 + $0x898] sm:$0xff] }
 0x31c   : > { %4504 = vmatprep.subr.bf16.mxu1 %v5984_v61  ;;  %v1096_v60 = vld [vmem:[%s6952_s14 + $0x8b8] sm:$0xff] }
 0x31d   : > { %v4169_v12 = vpop.f32.mrf.mxu0  ;;  %4414 = vmatmul.mubr.bf16.vlgmr.msra.gmra.mxu0 %v7115_v21  ;;  %v1220_v61 = vld [vmem:[%s6952_s14 + $0xc98] sm:$0xff]  ;;  %v5816_v46 = vcombine.high %v1092_v59, %v1096_v60 }
 0x31e   : > { %v4170_v18 = vadd.f32 %v4169_v12, %v4129_v7  ;;  %v4210_v23 = vpop.f32.mrf.mxu1  ;;  %4455 = vmatmul.mubr.bf16.vlgmr.msra.gmra.mxu1 %v7121_v25  ;;  %4464 = vmatpush1.bf16.msra.mxu0 %v5855_v2  ;;  %v1108_v25 = vld [vmem:[%s6952_s14 + $0x918] sm:$0xff]  ;;  %v5951_v2 = vcombine.low %v1228_v55, %v1232_v56  ;;  %v5944_v5 = vcombine.high %v1220_v61, %v1224_v0 }
 0x31f   : > { %4495 = vmatprep.mubr.bf16.mxu0 %v7143_v58  ;;  %4505 = vmatpush1.bf16.msra.mxu1 %v5983_v6  ;;  %v4171_v21 = vpop.f32.mrf.mxu0  ;;  %v1240_v58 = vld [vmem:[%s6952_s14 + $0xd38] sm:$0xff]  ;;  %v5832_v51 = vcombine.high %v1108_v25, %v1112_v28  ;;  %v5831_v37 = vcombine.low %v1108_v25, %v1112_v28  ;;  %v5943_v12 = vcombine.low %v1220_v61, %v1224_v0 }
 0x320   : > { %v4211_v54 = vadd.f32 %v4210_v23, %v4170_v18  ;;  %4536 = vmatprep.mubr.bf16.mxu1 %v7145_v62  ;;  %v4172_v20 = vadd.f32 %v4171_v21, %v4131_v4  ;;  %v4212_v9 = vpop.f32.mrf.mxu1  ;;  %4465 = vmatprep.subr.bf16.mxu0 %v5848_v8  ;;  %v5839_v62 = vcombine.low %v1116_v10, %v1120_v24  ;;  %v1084_v6 = vld [vmem:[%s6952_s14 + $0x858] sm:$0xff] }
 0x321   : > { %v4173_v17 = vpop.f32.mrf.mxu0  ;;  %4506 = vmatprep.subr.bf16.mxu1 %v5976_v13  ;;  %v5960_v35 = vcombine.high %v1236_v33, %v1240_v58  ;;  %v5959_v39 = vcombine.low %v1236_v33, %v1240_v58  ;;  %v1088_v7 = vld [vmem:[%s6952_s14 + $0x878] sm:$0xff]  ;;  %v5815_v24 = vcombine.low %v1092_v59, %v1096_v60 }
 0x322   : > { %v4547_v34 = vadd.f32 %v4211_v54, %v803_v19  ;;  %v4213_v38 = vadd.f32 %v4212_v9, %v4172_v20  ;;  %v4214_v22 = vpop.f32.mrf.mxu1  ;;  %4466 = vmatpush1.bf16.msra.mxu0 %v5847_v14  ;;  %v1212_v8 = vld [vmem:[%s6952_s14 + $0xc58] sm:$0xff]  ;;  %v5808_v13 = vcombine.high %v1084_v6, %v1088_v7  ;;  %v5807_v14 = vcombine.low %v1084_v6, %v1088_v7 }
 0x323   : > { %4507 = vmatpush1.bf16.msra.mxu1 %v5975_v26  ;;  %v4174_v43 = vpop.f32.mrf.mxu0  ;;  %4467 = vmatprep.subr.bf16.mxu0 %v5840_v11  ;;  %v1216_v10 = vld [vmem:[%s6952_s14 + $0xc78] sm:$0xff] }
 0x324   : > { %4555 = vst [vmem:[#allocation2 + $0x18] sm:$0xff] %v4547_v34  ;;  %v4548_v52 = vadd.f32 %v4213_v38, %v804_v30  ;;  %v4215_v53 = vpop.f32.mrf.mxu1  ;;  %4508 = vmatprep.subr.bf16.mxu1 %v5968_v27  ;;  %v5936_v15 = vcombine.high %v1212_v8, %v1216_v10  ;;  %v1080_v4 = vld [vmem:[%s6952_s14 + $0x838] sm:$0xff]  ;;  %v5935_v19 = vcombine.low %v1212_v8, %v1216_v10 }
 0x325   : > { %v1204_v18 = vld [vmem:[%s6952_s14 + $0xc18] sm:$0xff]  ;;  %v5800_v21 = vcombine.high %v1076_v16, %v1080_v4  ;;  %v5799_v27 = vcombine.low %v1076_v16, %v1080_v4 }
 0x326   : > { %4556 = vst [vmem:[#allocation2 + $0x10] sm:$0xff] %v4548_v52  ;;  %4468 = vmatpush1.bf16.msra.mxu0 %v5839_v62  ;;  %v1208_v23 = vld [vmem:[%s6952_s14 + $0xc38] sm:$0xff] }
 0x327   : > { %4509 = vmatpush1.bf16.msra.mxu1 %v5967_v50  ;;  %4469 = vmatprep.subr.bf16.mxu0 %v5832_v51  ;;  %v5928_v26 = vcombine.high %v1204_v18, %v1208_v23  ;;  %v1196_v11 = vld [vmem:[%s6952_s14 + $0xbd8] sm:$0xff]  ;;  %v5927_v25 = vcombine.low %v1204_v18, %v1208_v23 }
 0x328   : > { %4510 = vmatprep.subr.bf16.mxu1 %v5960_v35  ;;  %v1200_v54 = vld [vmem:[%s6952_s14 + $0xbf8] sm:$0xff] }
 0x329   : > { %v1324_v20 = vld [vmem:[%s6952_s14 + $0xfd8] sm:$0xff]  ;;  %v5920_v28 = vcombine.high %v1196_v11, %v1200_v54  ;;  %v5919_v38 = vcombine.low %v1196_v11, %v1200_v54 }
 0x32a   : > { %4470 = vmatpush1.bf16.msra.mxu0 %v5831_v37  ;;  %v1328_v9 = vld [vmem:[%s6952_s14 + $0xff8] sm:$0xff] }
 0x32b   : > { %4511 = vmatpush1.bf16.msra.mxu1 %v5959_v39  ;;  %4471 = vmatprep.subr.bf16.mxu0 %v5824_v41  ;;  %v6048_v30 = vcombine.high %v1324_v20, %v1328_v9  ;;  %v1188_v17 = vld [vmem:[%s6952_s14 + $0xb98] sm:$0xff]  ;;  %v6047_v22 = vcombine.low %v1324_v20, %v1328_v9 }
 0x32c   : > { %4512 = vmatprep.subr.bf16.mxu1 %v5952_v57  ;;  %v1192_v33 = vld [vmem:[%s6952_s14 + $0xbb8] sm:$0xff] }
 0x32d   : > { %v1316_v58 = vld [vmem:[%s6952_s14 + $0xf98] sm:$0xff]  ;;  %v5912_v62 = vcombine.high %v1188_v17, %v1192_v33  ;;  %v5911_v35 = vcombine.low %v1188_v17, %v1192_v33 }
 0x32e   : > { %4472 = vmatpush1.bf16.msra.mxu0 %v5823_v1  ;;  %v1320_v34 = vld [vmem:[%s6952_s14 + $0xfb8] sm:$0xff] }
 0x32f   : > { %4513 = vmatpush1.bf16.msra.mxu1 %v5951_v2  ;;  %4473 = vmatprep.subr.bf16.mxu0 %v5816_v46  ;;  %v6040_v43 = vcombine.high %v1316_v58, %v1320_v34  ;;  %v1180_v50 = vld [vmem:[%s6952_s14 + $0xb58] sm:$0xff]  ;;  %v6039_v36 = vcombine.low %v1316_v58, %v1320_v34 }
 0x330   : > { %4514 = vmatprep.subr.bf16.mxu1 %v5944_v5  ;;  %v1184_v51 = vld [vmem:[%s6952_s14 + $0xb78] sm:$0xff] }
 0x331   : > { %v1308_v52 = vld [vmem:[%s6952_s14 + $0xf58] sm:$0xff]  ;;  %v5904_v40 = vcombine.high %v1180_v50, %v1184_v51  ;;  %v5903_v57 = vcombine.low %v1180_v50, %v1184_v51 }
 0x332   : > { %4474 = vmatpush1.bf16.msra.mxu0 %v5815_v24  ;;  %v1312_v53 = vld [vmem:[%s6952_s14 + $0xf78] sm:$0xff] }
 0x333   : > { %4515 = vmatpush1.bf16.msra.mxu1 %v5943_v12  ;;  %4475 = vmatprep.subr.bf16.mxu0 %v5808_v13  ;;  %v6032_v55 = vcombine.high %v1308_v52, %v1312_v53  ;;  %v1172_v56 = vld [vmem:[%s6952_s14 + $0xb18] sm:$0xff]  ;;  %v6031_v59 = vcombine.low %v1308_v52, %v1312_v53 }
 0x334   : > { %4516 = vmatprep.subr.bf16.mxu1 %v5936_v15  ;;  %v1176_v37 = vld [vmem:[%s6952_s14 + $0xb38] sm:$0xff] }
 0x335   : > { %v1300_v39 = vld [vmem:[%s6952_s14 + $0xf18] sm:$0xff]  ;;  %v5896_v60 = vcombine.high %v1172_v56, %v1176_v37  ;;  %v5895_v5 = vcombine.low %v1172_v56, %v1176_v37 }
 0x336   : > { %4476 = vmatpush1.bf16.msra.mxu0 %v5807_v14  ;;  %v1304_v41 = vld [vmem:[%s6952_s14 + $0xf38] sm:$0xff] }
 0x337   : > { %4517 = vmatpush1.bf16.msra.mxu1 %v5935_v19  ;;  %4477 = vmatprep.subr.bf16.mxu0 %v5800_v21  ;;  %v6024_v61 = vcombine.high %v1300_v39, %v1304_v41  ;;  %v1164_v0 = vld [vmem:[%s6952_s14 + $0xad8] sm:$0xff]  ;;  %v6023_v6 = vcombine.low %v1300_v39, %v1304_v41 }
 0x338   : > { %4518 = vmatprep.subr.bf16.mxu1 %v5928_v26  ;;  %v1168_v1 = vld [vmem:[%s6952_s14 + $0xaf8] sm:$0xff] }
 0x339   : > { %v1292_v2 = vld [vmem:[%s6952_s14 + $0xed8] sm:$0xff]  ;;  %v5888_v7 = vcombine.high %v1164_v0, %v1168_v1  ;;  %v5887_v15 = vcombine.low %v1164_v0, %v1168_v1 }
 0x33a   : > { %4478 = vmatpush1.bf16.msra.mxu0 %v5799_v27  ;;  %v1296_v46 = vld [vmem:[%s6952_s14 + $0xef8] sm:$0xff] }
 0x33b   : > { %4519 = vmatpush1.bf16.msra.mxu1 %v5927_v25  ;;  %4479 = vmatprep.subr.bf16.mxu0 %v5920_v28  ;;  %v6016_v8 = vcombine.high %v1292_v2, %v1296_v46  ;;  %v1156_v10 = vld [vmem:[%s6952_s14 + $0xa98] sm:$0xff]  ;;  %v6015_v16 = vcombine.low %v1292_v2, %v1296_v46 }
 0x33c   : > { %4520 = vmatprep.subr.bf16.mxu1 %v6048_v30  ;;  %v1160_v24 = vld [vmem:[%s6952_s14 + $0xab8] sm:$0xff] }
 0x33d   : > { %v1284_v12 = vld [vmem:[%s6952_s14 + $0xe98] sm:$0xff]  ;;  %v5880_v4 = vcombine.high %v1156_v10, %v1160_v24  ;;  %v5879_v26 = vcombine.low %v1156_v10, %v1160_v24 }
 0x33e   : > { %4480 = vmatpush2.bf16.msra.mxu0 %v5919_v38  ;;  %v1288_v13 = vld [vmem:[%s6952_s14 + $0xeb8] sm:$0xff] }
 0x33f   : > { %4521 = vmatpush2.bf16.msra.mxu1 %v6047_v22  ;;  %4481 = vmatprep.subr.bf16.mxu0 %v5912_v62  ;;  %v6008_v18 = vcombine.high %v1284_v12, %v1288_v13  ;;  %v1148_v23 = vld [vmem:[%s6952_s14 + $0xa58] sm:$0xff]  ;;  %v6007_v11 = vcombine.low %v1284_v12, %v1288_v13 }
 0x340   : > { %4522 = vmatprep.subr.bf16.mxu1 %v6040_v43  ;;  %v1152_v14 = vld [vmem:[%s6952_s14 + $0xa78] sm:$0xff] }
 0x341   : > { %v1276_v19 = vld [vmem:[%s6952_s14 + $0xe58] sm:$0xff]  ;;  %v5872_v54 = vcombine.high %v1148_v23, %v1152_v14  ;;  %v5871_v30 = vcombine.low %v1148_v23, %v1152_v14 }
 0x342   : > { %4482 = vmatpush2.bf16.msra.mxu0 %v5911_v35  ;;  %v1280_v21 = vld [vmem:[%s6952_s14 + $0xe78] sm:$0xff] }
 0x343   : > { %4523 = vmatpush2.bf16.msra.mxu1 %v6039_v36  ;;  %4483 = vmatprep.subr.bf16.mxu0 %v5904_v40  ;;  %v6000_v20 = vcombine.high %v1276_v19, %v1280_v21  ;;  %v1140_v9 = vld [vmem:[%s6952_s14 + $0xa18] sm:$0xff]  ;;  %v5999_v17 = vcombine.low %v1276_v19, %v1280_v21 }
 0x344   : > { %4524 = vmatprep.subr.bf16.mxu1 %v6032_v55  ;;  %v1144_v27 = vld [vmem:[%s6952_s14 + $0xa38] sm:$0xff] }
 0x345   : > { %v1268_v25 = vld [vmem:[%s6952_s14 + $0xe18] sm:$0xff]  ;;  %v5864_v33 = vcombine.high %v1140_v9, %v1144_v27  ;;  %v5863_v34 = vcombine.low %v1140_v9, %v1144_v27 }
 0x346   : > { %4484 = vmatpush2.bf16.msra.mxu0 %v5903_v57  ;;  %v1272_v28 = vld [vmem:[%s6952_s14 + $0xe38] sm:$0xff] }
 0x347   : > { %4525 = vmatpush2.bf16.msra.mxu1 %v6031_v59  ;;  %4485 = vmatprep.subr.bf16.mxu0 %v5896_v60  ;;  %v5992_v58 = vcombine.high %v1268_v25, %v1272_v28  ;;  %v5991_v38 = vcombine.low %v1268_v25, %v1272_v28  ;;  %v805_v39 = vld [vmem:[#allocation2 + $0x8] sm:$0xff] }
 0x348   : > { %4526 = vmatprep.subr.bf16.mxu1 %v6024_v61  ;;  %v807_v19 = vld [vmem:[#allocation2 + $0x28] sm:$0xff] }
 0x34a   : > { %4486 = vmatpush2.bf16.msra.mxu0 %v5895_v5 }
 0x34b   : > { %4527 = vmatpush2.bf16.msra.mxu1 %v6023_v6  ;;  %4487 = vmatprep.subr.bf16.mxu0 %v5888_v7 }
 0x34c   : > { %4528 = vmatprep.subr.bf16.mxu1 %v6016_v8 }
 0x34e   : > { %4488 = vmatpush2.bf16.msra.mxu0 %v5887_v15 }
 0x34f   : > { %4529 = vmatpush2.bf16.msra.mxu1 %v6015_v16  ;;  %4489 = vmatprep.subr.bf16.mxu0 %v5880_v4 }
 0x350   : > { %4530 = vmatprep.subr.bf16.mxu1 %v6008_v18 }
 0x352   : > { %4490 = vmatpush2.bf16.msra.mxu0 %v5879_v26 }
 0x353   : > { %4531 = vmatpush2.bf16.msra.mxu1 %v6007_v11  ;;  %4491 = vmatprep.subr.bf16.mxu0 %v5872_v54 }
 0x354   : > { %4532 = vmatprep.subr.bf16.mxu1 %v6000_v20  ;;  %v808_v20 = vld [vmem:[#allocation2 + $0x38] sm:$0xff] }
 0x356   : > { %4492 = vmatpush2.bf16.msra.mxu0 %v5871_v30 }
 0x357   : > { %4533 = vmatpush2.bf16.msra.mxu1 %v5999_v17  ;;  %4493 = vmatprep.subr.bf16.mxu0 %v5864_v33 }
 0x358   : > { %4534 = vmatprep.subr.bf16.mxu1 %v5992_v58 }
 0x35a   : > { %4494 = vmatpush2.bf16.msra.mxu0 %v5863_v34 }
 0x35b   : > { %4535 = vmatpush2.bf16.msra.mxu1 %v5991_v38 }
 0x35d   : > { %v4251_v22 = vpop.f32.mrf.mxu0  ;;  %4496 = vmatmul.mubr.bf16.vlgmr.msra.gmra.mxu0 %v7217_v29  ;;  %v806_v29 = vld [vmem:[#allocation2 + $0x20] sm:$0xff] }
 0x35e   : > { %v4292_v62 = vpop.f32.mrf.mxu1  ;;  %4537 = vmatmul.mubr.bf16.vlgmr.msra.gmra.mxu1 %v7219_v31 }
 0x35f   : > { %v4253_v43 = vpop.f32.mrf.mxu0  ;;  %v4293_v36 = vadd.f32 %v4292_v62, %v4251_v22 }
 0x360   : > { %v4294_v50 = vpop.f32.mrf.mxu1 }
 0x361   : > { %v4255_v51 = vpop.f32.mrf.mxu0  ;;  %v4295_v55 = vadd.f32 %v4294_v50, %v4253_v43 }
 0x362   : > { %v4296_v52 = vpop.f32.mrf.mxu1 }
 0x363   : > { %v4256_v53 = vpop.f32.mrf.mxu0 }
 0x364   : > { %v4297_v35 = vpop.f32.mrf.mxu1 }
 0x39d   : > { %v4333_v40 = vpop.f32.mrf.mxu0 }
 0x39e   : > { %v4334_v56 = vadd.f32 %v4333_v40, %v4293_v36  ;;  %v4374_v37 = vpop.f32.mrf.mxu1 }
 0x39f   : > { %v4335_v41 = vpop.f32.mrf.mxu0 }
 0x3a0   : > { %v4375_v57 = vadd.f32 %v4374_v37, %v4334_v56  ;;  %v4336_v59 = vadd.f32 %v4335_v41, %v4295_v55  ;;  %v4376_v60 = vpop.f32.mrf.mxu1 }
 0x3a1   : > { %v4337_v61 = vpop.f32.mrf.mxu0 }
 0x3a2   : > { %v4549_v0 = vadd.f32 %v4375_v57, %v805_v39  ;;  %v4377_v31 = vadd.f32 %v4376_v60, %v4336_v59  ;;  %v4378_v1 = vpop.f32.mrf.mxu1 }
 0x3a3   : > { %v4338_v2 = vpop.f32.mrf.mxu0 }
 0x3a4   : > { %4557 = vst [vmem:[#allocation2 + $0x8] sm:$0xff] %v4549_v0  ;;  %v4550_v46 = vadd.f32 %v4377_v31, %v806_v29  ;;  %v4379_v5 = vpop.f32.mrf.mxu1 }
 0x3a6   : > { %4558 = vst [vmem:[#allocation2 + $0x20] sm:$0xff] %v4550_v46 }
 0x3dd   : > { %v4415_v6 = vpop.f32.mrf.mxu0 }
 0x3de   : > { %v4456_v7 = vpop.f32.mrf.mxu1 }
 0x3df   : > { %v4417_v8 = vpop.f32.mrf.mxu0  ;;  %v4457_v16 = vadd.f32 %v4456_v7, %v4415_v6 }
 0x3e0   : > { %v4458_v10 = vpop.f32.mrf.mxu1 }
 0x3e1   : > { %v4419_v24 = vpop.f32.mrf.mxu0  ;;  %v4459_v18 = vadd.f32 %v4458_v10, %v4417_v8 }
 0x3e2   : > { %v4460_v12 = vpop.f32.mrf.mxu1 }
 0x3e3   : > { %v4420_v13 = vpop.f32.mrf.mxu0 }
 0x3e4   : > { %v4461_v15 = vpop.f32.mrf.mxu1 }
 0x41d   : > { %v4497_v4 = vpop.f32.mrf.mxu0 }
 0x41e   : > { %v4498_v23 = vadd.f32 %v4497_v4, %v4457_v16  ;;  %v4538_v14 = vpop.f32.mrf.mxu1 }
 0x41f   : > { %v4499_v21 = vpop.f32.mrf.mxu0 }
 0x420   : > { %v4539_v26 = vadd.f32 %v4538_v14, %v4498_v23  ;;  %v4500_v11 = vadd.f32 %v4499_v21, %v4459_v18  ;;  %v4540_v54 = vpop.f32.mrf.mxu1 }
 0x421   : > { %v4501_v9 = vpop.f32.mrf.mxu0 }
 0x422   : > { %v4551_v27 = vadd.f32 %v4539_v26, %v807_v19  ;;  %v4541_v25 = vadd.f32 %v4540_v54, %v4500_v11  ;;  %v4542_v28 = vpop.f32.mrf.mxu1  ;;  %4564 = sbr.rel (%p6049_p5) target bundleno = 1331 (0x533), region = 92 }
 0x423   : > { %v4502_v30 = vpop.f32.mrf.mxu0 }
 0x424   : > { %4559 = vst [vmem:[#allocation2 + $0x28] sm:$0xff] %v4551_v27  ;;  %v4552_v17 = vadd.f32 %v4541_v25, %v808_v20  ;;  %v4543_v33 = vpop.f32.mrf.mxu1 }
 0x426   : > { %4560 = vst [vmem:[#allocation2 + $0x38] sm:$0xff] %v4552_v17 }
 0x427   : > { %v6326_v58 = vld [vmem:[#allocation14 + $0x78] sm:$0xff]   ;;  %v6330_v62 = vld [vmem:[#allocation14 + $0x70] sm:$0xff]   ;;  %v6334_v52 = vld [vmem:[#allocation14 + $0x68] sm:$0xff]  }
 0x428   : > { %v6327_v34 = vld [vmem:[#allocation14 + $0xf8] sm:$0xff]   ;;  %6124 = vmatprep.subr.bf16.mxu0 %v6326_v58  ;;  %v6331_v43 = vld [vmem:[#allocation14 + $0xf0] sm:$0xff]   ;;  %v6335_v53 = vld [vmem:[#allocation14 + $0xe8] sm:$0xff]  }
 0x429   : > { %v6328_v38 = vld [vmem:[#allocation14 + $0x38] sm:$0xff]   ;;  %6146 = vmatprep.subr.bf16.mxu1 %v6327_v34  ;;  %v6332_v50 = vld [vmem:[#allocation14 + $0x30] sm:$0xff]   ;;  %v6336_v35 = vld [vmem:[#allocation14 + $0x28] sm:$0xff]  }
 0x42a   : > { %v6329_v22 = vld [vmem:[#allocation14 + $0xb8] sm:$0xff]   ;;  %6125 = vmatpush3.bf16.msra.mxu0 %v6328_v38  ;;  %v6333_v51 = vld [vmem:[#allocation14 + $0xb0] sm:$0xff]   ;;  %v6337_v36 = vld [vmem:[#allocation14 + $0xa8] sm:$0xff]  }
 0x42b   : > { %6147 = vmatpush3.bf16.msra.mxu1 %v6329_v22  ;;  %6126 = vmatprep.subr.bf16.mxu0 %v6330_v62  ;;  %v6338_v40 = vld [vmem:[#allocation14 + $0x60] sm:$0xff]   ;;  %v6342_v39 = vld [vmem:[#allocation14 + $0x58] sm:$0xff]   ;;  %v6346_v60 = vld [vmem:[#allocation14 + $0x50] sm:$0xff]  }
 0x42c   : > { %6148 = vmatprep.subr.bf16.mxu1 %v6331_v43  ;;  %v6339_v55 = vld [vmem:[#allocation14 + $0xe0] sm:$0xff]   ;;  %v6343_v41 = vld [vmem:[#allocation14 + $0xd8] sm:$0xff]   ;;  %v6347_v29 = vld [vmem:[#allocation14 + $0xd0] sm:$0xff]  }
 0x42d   : > { %v6340_v56 = vld [vmem:[#allocation14 + $0x20] sm:$0xff]   ;;  %v6344_v57 = vld [vmem:[#allocation14 + $0x18] sm:$0xff]   ;;  %v6348_v61 = vld [vmem:[#allocation14 + $0x10] sm:$0xff]  }
 0x42e   : > { %6127 = vmatpush3.bf16.msra.mxu0 %v6332_v50  ;;  %v6341_v37 = vld [vmem:[#allocation14 + $0xa0] sm:$0xff]   ;;  %v6345_v59 = vld [vmem:[#allocation14 + $0x98] sm:$0xff]   ;;  %v6349_v0 = vld [vmem:[#allocation14 + $0x90] sm:$0xff]  }
 0x42f   : > { %6149 = vmatpush3.bf16.msra.mxu1 %v6333_v51  ;;  %6128 = vmatprep.subr.bf16.mxu0 %v6334_v52  ;;  %v6350_v31 = vld [vmem:[#allocation14 + $0x48] sm:$0xff]   ;;  %v6354_v5 = vld [vmem:[#allocation14 + $0x40] sm:$0xff]   ;;  %v7648_v24 = vld [vmem:[#allocation13] sm:$0xff] }
 0x430   : > { %6150 = vmatprep.subr.bf16.mxu1 %v6335_v53  ;;  %v6351_v1 = vld [vmem:[#allocation14 + $0xc8] sm:$0xff]   ;;  %v6355_v6 = vld [vmem:[#allocation14 + $0xc0] sm:$0xff]   ;;  %v4568_v12 = vld [vmem:[#allocation2 + $0x10] sm:$0xff]  ;;  %v4582_v13 = vrot.slane %v7648_v24, %v493_v48  ;;  %v4590_v15 = vrot.slane %v7648_v24, %v501_v49  ;;  %v4578_v4 = vrot.slane %v7648_v24, %v489_v45  ;;  %v4586_v23 = vrot.slane %v7648_v24, %v497_v47 }
 0x431   : > { %v6352_v2 = vld [vmem:[#allocation14 + $0x8] sm:$0xff]   ;;  %v6356_v7 = vld [vmem:[#allocation14] sm:$0xff]   ;;  %v4565_v16 = vld [vmem:[#allocation2 + $0x30] sm:$0xff]  ;;  %v7662_v49 = vstv %s6050_s24 }
 0x432   : > { %6129 = vmatpush3.bf16.msra.mxu0 %v6336_v35  ;;  %v6353_v46 = vld [vmem:[#allocation14 + $0x88] sm:$0xff]   ;;  %v6357_v8 = vld [vmem:[#allocation14 + $0x80] sm:$0xff]   ;;  %v6358_v14 = vld [vmem:[#allocation14 + $0x178] sm:$0xff]   ;;  %v4618_v21 = vadd.f32 %v4590_v15, %v4568_v12  ;;  %v4615_v26 = vadd.f32 %v4578_v4, %v4565_v16 }
 0x433   : > { %6151 = vmatpush3.bf16.msra.mxu1 %v6337_v36  ;;  %6130 = vmatprep.subr.bf16.mxu0 %v6338_v40  ;;  %v4566_v10 = vld [vmem:[#allocation2] sm:$0xff]  ;;  %v4567_v18 = vld [vmem:[#allocation2 + $0x18] sm:$0xff]  ;;  %v6362_v22 = vld [vmem:[#allocation14 + $0x170] sm:$0xff]  }
 0x434   : > { %6152 = vmatprep.subr.bf16.mxu1 %v6339_v55  ;;  %v4616_v19 = vadd.f32 %v4582_v13, %v4566_v10  ;;  %v4617_v11 = vadd.f32 %v4586_v23, %v4567_v18  ;;  %v6359_v48 = vld [vmem:[#allocation14 + $0x1f8] sm:$0xff]   ;;  %vm4627_vm10 = vcmp.gt.f32.partialorder %v4618_v21, 0.0  ;;  %vm4624_vm11 = vcmp.gt.f32.partialorder %v4615_v26, 0.0  ;;  %v6363_v62 = vld [vmem:[#allocation14 + $0x1f0] sm:$0xff]   ;;  %v6366_v51 = vld [vmem:[#allocation14 + $0x168] sm:$0xff]  }
 0x435   : > { %v4636_v54 = vmul.f32 %v7662_v49, %v4618_v21  ;;  %v4633_v47 = vmul.f32 %v7662_v49, %v4615_v26  ;;  %v6360_v9 = vld [vmem:[#allocation14 + $0x138] sm:$0xff]   ;;  %v6364_v43 = vld [vmem:[#allocation14 + $0x130] sm:$0xff]   ;;  %v6367_v52 = vld [vmem:[#allocation14 + $0x1e8] sm:$0xff]  }
 0x436   : > { %6131 = vmatpush3.bf16.msra.mxu0 %v6340_v56  ;;  %vm4625_vm9 = vcmp.gt.f32.partialorder %v4616_v19, 0.0  ;;  %vm4626_vm12 = vcmp.gt.f32.partialorder %v4617_v11, 0.0  ;;  %v4634_v45 = vmul.f32 %v7662_v49, %v4616_v19  ;;  %v4635_v20 = vmul.f32 %v7662_v49, %v4617_v11  ;;  %v6361_v17 = vld [vmem:[#allocation14 + $0x1b8] sm:$0xff]   ;;  %v6365_v50 = vld [vmem:[#allocation14 + $0x1b0] sm:$0xff]   ;;  %v6368_v53 = vld [vmem:[#allocation14 + $0x128] sm:$0xff]  }
 0x437   : > { %6153 = vmatpush3.bf16.msra.mxu1 %v6341_v37  ;;  %6132 = vmatprep.subr.bf16.mxu0 %v6342_v39  ;;  %v4644_v25 = vsel %vm4627_vm10, %v4618_v21, %v4636_v54  ;;  %v4641_v28 = vsel %vm4624_vm11, %v4615_v26, %v4633_v47  ;;  %v6369_v35 = vld [vmem:[#allocation14 + $0x1a8] sm:$0xff]   ;;  %v6370_v36 = vld [vmem:[#allocation14 + $0x160] sm:$0xff]   ;;  %v6374_v37 = vld [vmem:[#allocation14 + $0x158] sm:$0xff]  }
 0x438   : > { %6154 = vmatprep.subr.bf16.mxu1 %v6343_v41  ;;  %v4642_v27 = vsel %vm4625_vm9, %v4616_v19, %v4634_v45  ;;  %v4643_v30 = vsel %vm4626_vm12, %v4617_v11, %v4635_v20  ;;  %v4652_v58 = vpack.c.bf16 %v4644_v25, %v4644_v25  ;;  %v4649_v34 = vpack.c.bf16 %v4641_v28, %v4641_v28  ;;  %v6371_v40 = vld [vmem:[#allocation14 + $0x1e0] sm:$0xff]   ;;  %v6375_v39 = vld [vmem:[#allocation14 + $0x1d8] sm:$0xff]   ;;  %v4569_v15 = vld [vmem:[#allocation2 + $0x8] sm:$0xff] }
 0x439   : > { %v4650_v33 = vpack.c.bf16 %v4642_v27, %v4642_v27  ;;  %v4651_v38 = vpack.c.bf16 %v4643_v30, %v4643_v30  ;;  %v6372_v55 = vld [vmem:[#allocation14 + $0x120] sm:$0xff]   ;;  %v6376_v41 = vld [vmem:[#allocation14 + $0x118] sm:$0xff]   ;;  %v4571_v16 = vld [vmem:[#allocation2 + $0x28] sm:$0xff] }
 0x43a   : > { %6133 = vmatpush3.bf16.msra.mxu0 %v6344_v57  ;;  %5248 = vmatprep.mubr.bf16.mxu1 %v4652_v58  ;;  %v6373_v56 = vld [vmem:[#allocation14 + $0x1a0] sm:$0xff]   ;;  %v6377_v57 = vld [vmem:[#allocation14 + $0x198] sm:$0xff]  }
 0x43b   : > { %6155 = vmatpush3.bf16.msra.mxu1 %v6345_v59  ;;  %6134 = vmatprep.subr.bf16.mxu0 %v6346_v60  ;;  %v6378_v59 = vld [vmem:[#allocation14 + $0x150] sm:$0xff]   ;;  %v4570_v10 = vld [vmem:[#allocation2 + $0x20] sm:$0xff]  ;;  %v4572_v12 = vld [vmem:[#allocation2 + $0x38] sm:$0xff] }
 0x43c   : > { %6156 = vmatprep.subr.bf16.mxu1 %v6347_v29  ;;  %5208 = vmatprep.mubr.bf16.mxu0 %v4650_v33  ;;  %v6379_v60 = vld [vmem:[#allocation14 + $0x1d0] sm:$0xff]   ;;  %v6051_v58 = vld [vmem:[#allocation16] ss:$0 sm:$0xff] }
 0x43d   : > { %v6380_v29 = vld [vmem:[#allocation14 + $0x110] sm:$0xff]  }
 0x43e   : > { %6135 = vmatpush3.bf16.msra.mxu0 %v6348_v61  ;;  %v6381_v61 = vld [vmem:[#allocation14 + $0x190] sm:$0xff]  }
 0x43f   : > { %6157 = vmatpush3.bf16.msra.mxu1 %v6349_v0  ;;  %6136 = vmatprep.subr.bf16.mxu0 %v6350_v31  ;;  %v6382_v0 = vld [vmem:[#allocation14 + $0x148] sm:$0xff]  }
 0x440   : > { %6158 = vmatprep.subr.bf16.mxu1 %v6351_v1  ;;  %v6383_v31 = vld [vmem:[#allocation14 + $0x1c8] sm:$0xff]   ;;  %v4598_v1 = vrot.slane %v7648_v24, %v509_v63  ;;  %v6387_v63 = vld [vmem:[#allocation14 + $0x1c0] sm:$0xff]  }
 0x442   : > { %6137 = vmatpush3.bf16.msra.mxu0 %v6352_v2  ;;  %v4606_v2 = vrot.slane %v7648_v24, %v517_v3  ;;  %v4620_v13 = vadd.f32 %v4598_v1, %v4570_v10 }
 0x443   : > { %6159 = vmatpush3.bf16.msra.mxu1 %v6353_v46  ;;  %6138 = vmatprep.subr.bf16.mxu0 %v6354_v5  ;;  %v6384_v46 = vld [vmem:[#allocation14 + $0x108] sm:$0xff]   ;;  %v4594_v5 = vrot.slane %v7648_v24, %v505_v32 }
 0x444   : > { %6160 = vmatprep.subr.bf16.mxu1 %v6355_v6  ;;  %v4602_v6 = vrot.slane %v7648_v24, %v513_v42  ;;  %v4622_v3 = vadd.f32 %v4606_v2, %v4572_v12  ;;  %vm4629_vm13 = vcmp.gt.f32.partialorder %v4620_v13, 0.0  ;;  %v4638_v44 = vmul.f32 %v7662_v49, %v4620_v13  ;;  %v6388_v42 = vld [vmem:[#allocation14 + $0x100] sm:$0xff]  }
 0x445   : > { %v4619_v4 = vadd.f32 %v4594_v5, %v4569_v15  ;;  %v6389_v24 = vld [vmem:[#allocation14 + $0x180] sm:$0xff]  }
 0x446   : > { %6139 = vmatpush3.bf16.msra.mxu0 %v6356_v7  ;;  %v6385_v7 = vld [vmem:[#allocation14 + $0x188] sm:$0xff]   ;;  %v4621_v18 = vadd.f32 %v4602_v6, %v4571_v16  ;;  %vm4631_vm14 = vcmp.gt.f32.partialorder %v4622_v3, 0.0  ;;  %v4640_v32 = vmul.f32 %v7662_v49, %v4622_v3  ;;  %v4646_v19 = vsel %vm4629_vm13, %v4620_v13, %v4638_v44 }
 0x447   : > { %6161 = vmatpush3.bf16.msra.mxu1 %v6357_v8  ;;  %6168 = vmatprep.subr.bf16.mxu0 %v6358_v14  ;;  %v6386_v8 = vld [vmem:[#allocation14 + $0x140] sm:$0xff]   ;;  %vm4628_vm15 = vcmp.gt.f32.partialorder %v4619_v4, 0.0  ;;  %v4637_v23 = vmul.f32 %v7662_v49, %v4619_v4  ;;  %v4654_v26 = vpack.c.bf16 %v4646_v19, %v4646_v19 }
 0x448   : > { %6190 = vmatprep.subr.bf16.mxu1 %v6359_v48  ;;  %vm4630_vm0 = vcmp.gt.f32.partialorder %v4621_v18, 0.0  ;;  %v4639_v14 = vmul.f32 %v7662_v49, %v4621_v18  ;;  %v4648_v21 = vsel %vm4631_vm14, %v4622_v3, %v4640_v32 }
 0x449   : > { %5209 = vmatmul.mubr.bf16.vlgmr.msra.gmra.mxu0 %v4649_v34  ;;  %v4656_v11 = vpack.c.bf16 %v4648_v21, %v4648_v21  ;;  %v4645_v48 = vsel %vm4628_vm15, %v4619_v4, %v4637_v23 }
 0x44a   : > { %5249 = vmatmul.mubr.bf16.vlgmr.msra.gmra.mxu1 %v4651_v38  ;;  %6169 = vmatpush3.bf16.msra.mxu0 %v6360_v9  ;;  %v4647_v45 = vsel %vm4630_vm0, %v4621_v18, %v4639_v14  ;;  %v4653_v54 = vpack.c.bf16 %v4645_v48, %v4645_v48 }
 0x44b   : > { %6191 = vmatpush3.bf16.msra.mxu1 %v6361_v17  ;;  %6170 = vmatprep.subr.bf16.mxu0 %v6362_v22  ;;  %v4655_v47 = vpack.c.bf16 %v4647_v45, %v4647_v45 }
 0x44c   : > { %6192 = vmatprep.subr.bf16.mxu1 %v6363_v62  ;;  %5288 = vmatprep.mubr.bf16.mxu0 %v4654_v26 }
 0x44d   : > { %5328 = vmatprep.mubr.bf16.mxu1 %v4656_v11 }
 0x44e   : > { %6171 = vmatpush3.bf16.msra.mxu0 %v6364_v43 }
 0x44f   : > { %6193 = vmatpush3.bf16.msra.mxu1 %v6365_v50  ;;  %6172 = vmatprep.subr.bf16.mxu0 %v6366_v51 }
 0x450   : > { %6194 = vmatprep.subr.bf16.mxu1 %v6367_v52 }
 0x452   : > { %6173 = vmatpush3.bf16.msra.mxu0 %v6368_v53 }
 0x453   : > { %6195 = vmatpush3.bf16.msra.mxu1 %v6369_v35  ;;  %6174 = vmatprep.subr.bf16.mxu0 %v6370_v36 }
 0x454   : > { %6196 = vmatprep.subr.bf16.mxu1 %v6371_v40 }
 0x456   : > { %6175 = vmatpush3.bf16.msra.mxu0 %v6372_v55 }
 0x457   : > { %6197 = vmatpush3.bf16.msra.mxu1 %v6373_v56  ;;  %6176 = vmatprep.subr.bf16.mxu0 %v6374_v37 }
 0x458   : > { %6198 = vmatprep.subr.bf16.mxu1 %v6375_v39 }
 0x45a   : > { %6177 = vmatpush3.bf16.msra.mxu0 %v6376_v41 }
 0x45b   : > { %6199 = vmatpush3.bf16.msra.mxu1 %v6377_v57  ;;  %6178 = vmatprep.subr.bf16.mxu0 %v6378_v59 }
 0x45c   : > { %6200 = vmatprep.subr.bf16.mxu1 %v6379_v60 }
 0x45e   : > { %6179 = vmatpush3.bf16.msra.mxu0 %v6380_v29 }
 0x45f   : > { %6201 = vmatpush3.bf16.msra.mxu1 %v6381_v61  ;;  %6180 = vmatprep.subr.bf16.mxu0 %v6382_v0 }
 0x460   : > { %6202 = vmatprep.subr.bf16.mxu1 %v6383_v31 }
 0x462   : > { %6181 = vmatpush3.bf16.msra.mxu0 %v6384_v46 }
 0x463   : > { %6203 = vmatpush3.bf16.msra.mxu1 %v6385_v7  ;;  %6182 = vmatprep.subr.bf16.mxu0 %v6386_v8 }
 0x464   : > { %6204 = vmatprep.subr.bf16.mxu1 %v6387_v63 }
 0x466   : > { %6183 = vmatpush3.bf16.msra.mxu0 %v6388_v42 }
 0x467   : > { %6205 = vmatpush3.bf16.msra.mxu1 %v6389_v24 }
 0x469   : > { %5289 = vmatmul.mubr.bf16.vlgmr.msra.gmra.mxu0 %v4653_v54 }
 0x46a   : > { %5329 = vmatmul.mubr.bf16.vlgmr.msra.gmra.mxu1 %v4655_v47 }
 0x509   : > { %v6140_v20 = vpop.f32.mrf.mxu0 }
 0x50a   : > { %v6162_v9 = vpop.f32.mrf.mxu1 }
 0x50b   : > { %v6141_v27 = vpop.f32.mrf.mxu0 }
 0x50c   : > { %v6163_v49 = vpop.f32.mrf.mxu1  ;;  %v6142_v33 = vadd.f32 %v6141_v27, %v6140_v20 }
 0x50d   : > { %v6143_v25 = vpop.f32.mrf.mxu0  ;;  %v6164_v38 = vadd.f32 %v6163_v49, %v6162_v9 }
 0x50e   : > { %v6165_v28 = vpop.f32.mrf.mxu1  ;;  %v5211_v34 = vadd.f32 %v6142_v33, %v6051_v58 }
 0x50f   : > { %v6144_v30 = vpop.f32.mrf.mxu0 }
 0x510   : > { %v6166_v17 = vpop.f32.mrf.mxu1  ;;  %v5251_v51 = vadd.f32 %v6164_v38, %v5211_v34 }
 0x529   : > { %v6184_v22 = vpop.f32.mrf.mxu0 }
 0x52a   : > { %v6206_v62 = vpop.f32.mrf.mxu1 }
 0x52b   : > { %v6185_v43 = vpop.f32.mrf.mxu0 }
 0x52c   : > { %v6207_v50 = vpop.f32.mrf.mxu1  ;;  %v6186_v52 = vadd.f32 %v6185_v43, %v6184_v22 }
 0x52d   : > { %v6187_v53 = vpop.f32.mrf.mxu0  ;;  %v6208_v40 = vadd.f32 %v6207_v50, %v6206_v62 }
 0x52e   : > { %v6209_v35 = vpop.f32.mrf.mxu1  ;;  %v5291_v36 = vadd.f32 %v6186_v52, %v5251_v51 }
 0x52f   : > { %v6188_v55 = vpop.f32.mrf.mxu0 }
 0x530   : > { %v6210_v56 = vpop.f32.mrf.mxu1  ;;  %v5331_v37 = vadd.f32 %v6208_v40, %v5291_v36 }
 0x532   : > { %5336 = vst [vmem:[#allocation17] sm:$0xff] %v5331_v37 }
 0x533 PF: > { %p6279_p6 = scmp.eq.s32.totalorder %s6753_s9, 1  ;;  %s6688_s18 = smov [#allocation17]  }
 0x534   : > { %s5344_s20 = sshll.u32 %s6688_s18, 4  ;;  %s5345_s20 = int_to_ptr.vmem [resolvable:$true] %s5344_s20 }
 0x535   : > { %s6589_s12 = scalar_lea.vmem %s5345_s20, 128  ;;  %p6596_p0 = scmp.lt.s32.totalorder %s5345_s20, %s5345_s20 }
 0x536   : > { %p6590_p7 = scmp.ne.s32.totalorder %s5345_s20, %s6589_s12  ;;  %p6597_p3 = scmp.lt.s32.totalorder %s6589_s12, %s6589_s12 }
 0x538   : > { %p6591_p2 = pnand %p6590_p7, %p6279_p6  ;;  %p6598_p8 = por %p6597_p3, %p6596_p0 }
 0x53a   : > { %p6592_p12 = pneg %p6591_p2 }
 0x53c   : > { %p6599_p13 = pnand %p6598_p8, %p6592_p12 }
 0x53e   : > { %6602 = shalt.err (!%p6599_p13)
}
 0x53f   : > { %6239 = dma.vmem_to_hbm [thread:$0]  (%p6279_p6), %s5345_s20, 128, %s7717_s8, [#allocation5]  }
 0x540   : > { %6654 = dma.done.wait (%p6279_p6), [#allocation5], 128  }
 0x541   : > { %6656 = vsyncadd (%p6279_p6), [#allocation5], 4294967168 }
 0x542 PF: > { %s7756_s19 = sld [smem:[#allocation25_spill]]  ;;  %p25_p9 = scmp.ge.s32.totalorder %s6797_s25, 4  }
 0x543   : > { %s7757_s27 = smov %s6663_s28  ;;  %s7758_s28 = smov %s6667_s29 }
 0x544   : > { %s7760_s30 = smov %s6797_s25  ;;  %27 = sbr.rel (!%p25_p9) target bundleno = 13 (0xd), region = 143 }
 0x548   : > { %s7759_s29 = smov %s7756_s19 }
 0x549   :  { %5357 = vsyncpa [#allocation4], 1 }
 0x54a   :  { %5359 = vsyncpa [#allocation4 + $0x1], 1 }
 0x54b   :  { %5360 = vsyncpa [#allocation9], 1 }
 0x54c   :  { %5362 = vsyncpa [#allocation9 + $0x1], 1 }
 0x54d   :  { %5363 = vsyncpa [#allocation12], 1 }
 0x54e   :  { %5365 = vsyncpa [#allocation12 + $0x1], 1 }
 0x54f   :  { %5366 = vsyncpa [#allocation15], 1 }
 0x550   :  { %5367 = vsyncpa [#allocation5], 1 }
 0x551   :  { %5369 = vsyncpa [#allocation5 + $0x1], 1 }
 0x552   :  { %5370 = vsyncpa [#allocation6], 1 }
 0x553   :  { %5372 = vsyncpa [#allocation6 + $0x1], 1 }

</bundles_post_ra>
